<compile_context>
chip_gen: v5e
topology: v5e:2x2
jax: 0.10.0
libtpu: 0.0.40
codegen_flags: <defaults>
</compile_context>

<pallas_src>
import jax
import jax.numpy as jnp
import numpy as np
from jax.experimental import pallas as pl
from jax.experimental.pallas import tpu as pltpu

# ----- static model config (matches Encoder defaults, small synthetic sizes) ---
INPUT_DIM = 16          # number of input features
PRED_DIM = 8            # prediction_dim (n_d)
ATT_DIM = 8             # attention_dim constructor arg (n_a)
OUT_DIM = PRED_DIM + ATT_DIM           # FeatureTransformer output dim = 16
GROUP_DIM = INPUT_DIM   # self.attention_dim is overwritten to input_dim
N_STEPS = 3
N_GLU = 2
GAMMA = 1.3
EPSILON = 1e-15
BN_EPS = 1e-5
VIRTUAL_BATCH_SIZE = 128
BATCH = 8

SQRT_HALF = np.float32(np.sqrt(np.float32(0.5)))

# ----- packed parameter slab layout -------------------------------------------
# One f32 slab of shape (SLAB_ROWS, SLAB_COLS).  Rows 0..31 hold BN scale/bias
# vectors (one per row, zero-padded to 32 lanes); rows 32.. hold the weight
# matrices stacked along the sublane axis at 8-aligned offsets (pre-transposed
# to (in_dim, out_dim) so the kernel computes x @ W_t).
SLAB_COLS = 32

ROW_IBN_W, ROW_IBN_B = 0, 1            # initial BatchNorm1d scale / bias (16)
ROW_SP_BN0 = 4                          # splitter GLU0 BN: w at 4, b at 5 (32)
ROW_SP_BN1 = 6                          # splitter GLU1 BN: w at 6, b at 7 (32)

_VEC_STEP_BASE = 8
_VEC_STEP_STRIDE = 8


def ROW_ATT_BN(s):                      # att-transformer BN: w, b at +1 (16)
    return _VEC_STEP_BASE + _VEC_STEP_STRIDE * s


def ROW_FT_BN0(s):                      # step GLU0 BN: w, b at +1 (32)
    return _VEC_STEP_BASE + _VEC_STEP_STRIDE * s + 2


def ROW_FT_BN1(s):                      # step GLU1 BN: w, b at +1 (32)
    return _VEC_STEP_BASE + _VEC_STEP_STRIDE * s + 4


_W_BASE = _VEC_STEP_BASE + _VEC_STEP_STRIDE * N_STEPS      # 32
ROW_SP_W0 = _W_BASE                      # (16, 32)
ROW_SP_W1 = _W_BASE + INPUT_DIM          # (16, 32)
_W_STEP_BASE = _W_BASE + INPUT_DIM + OUT_DIM               # 64
_W_STEP_STRIDE = 2 * OUT_DIM + ATT_DIM   # 40 (multiple of 8 -> aligned tiles)


def ROW_FT_W0(s):                        # (16, 32)
    return _W_STEP_BASE + _W_STEP_STRIDE * s


def ROW_FT_W1(s):                        # (16, 32)
    return _W_STEP_BASE + _W_STEP_STRIDE * s + INPUT_DIM


def ROW_ATT_W(s):                        # (8, 16)
    return _W_STEP_BASE + _W_STEP_STRIDE * s + INPUT_DIM + OUT_DIM


SLAB_ROWS = _W_STEP_BASE + _W_STEP_STRIDE * N_STEPS        # 184

# ----- packed output layout ----------------------------------------------------
OUT_COLS = 128                            # lane-dense single writeback
ENT_COL = N_STEPS * PRED_DIM              # column 24: per-row entropy sum
USED_COLS = ENT_COL + 1                   # 25 meaningful columns


# ----- math helpers (traced inside the kernel) ---------------------------------
def _bn_train(h, w, b):
    """BatchNorm over the current block (batch stats, biased variance)."""
    mean = jnp.mean(h, axis=0, keepdims=True)
    var = jnp.mean((h - mean) ** 2, axis=0, keepdims=True)
    return (h - mean) * jax.lax.rsqrt(var + BN_EPS) * w + b


def _sparsemax(z):
    """Sparsemax over the last dim. Sort-free, exact (handles ties)."""
    z = z - jnp.max(z, axis=-1, keepdims=True)
    # ge[b, i, j] = 1 if z[b, j] >= z[b, i]
    ge = (z[:, None, :] >= z[:, :, None]).astype(jnp.float32)
    c = jnp.sum(ge, axis=-1)                      # rank counts
    s = jnp.sum(ge * z[:, None, :], axis=-1)      # sum of values >= z_i
    cond = (1.0 + c * z > s).astype(jnp.float32)  # element in support
    k = jnp.sum(cond, axis=-1, keepdims=True)
    zsum = jnp.sum(z * cond, axis=-1, keepdims=True)
    tau = (zsum - 1.0) / k
    return jnp.maximum(z - tau, 0.0)


# ----- kernel -------------------------------------------------------------------
def encoder_kernel(x_ref, slab_ref, stats_ref, out_ref):
    def vec(r, d):                        # (1, d) BN scale/bias row
        return slab_ref[r:r + 1, 0:d]

    def mat(r, kin, kout):                # (kin, kout) weight matrix
        return slab_ref[r:r + kin, 0:kout]

    def glu(h, w, bn_w, bn_b):
        y = jnp.dot(h, w, preferred_element_type=jnp.float32)
        y = _bn_train(y, bn_w, bn_b)      # per-chunk stats == GhostBatchNorm
        od = y.shape[-1] // 2
        return y[:, :od] * jax.nn.sigmoid(y[:, od:])

    def feature_transformer(h, r_w0, r_bn0, r_w1, r_bn1, in_dim):
        h = glu(h, mat(r_w0, in_dim, 2 * OUT_DIM),
                vec(r_bn0, 2 * OUT_DIM), vec(r_bn0 + 1, 2 * OUT_DIM))
        h2 = glu(h, mat(r_w1, OUT_DIM, 2 * OUT_DIM),
                 vec(r_bn1, 2 * OUT_DIM), vec(r_bn1 + 1, 2 * OUT_DIM))
        return (h + h2) * SQRT_HALF

    x = x_ref[...]                                      # (chunk, INPUT_DIM)
    chunk = x.shape[0]

    # Initial BatchNorm1d: full-batch statistics (precomputed, so chunking the
    # batch into ghost blocks never changes its semantics).
    mean = stats_ref[0:1, :]
    var = stats_ref[1:2, :]
    xn = (x - mean) * jax.lax.rsqrt(var + BN_EPS) \
        * vec(ROW_IBN_W, INPUT_DIM) + vec(ROW_IBN_B, INPUT_DIM)

    # Initial splitter -> keep only the attention part.
    out0 = feature_transformer(xn, ROW_SP_W0, ROW_SP_BN0, ROW_SP_W1, ROW_SP_BN1,
                               INPUT_DIM)
    att = out0[:, PRED_DIM:]

    ent = jnp.zeros((chunk, 1), jnp.float32)            # per-row entropy sum
    prior = None
    d_steps = []

    for s in range(N_STEPS):  # unrolled (N_STEPS is static)
        # AttentiveTransformer: fc -> GBN -> * prior -> sparsemax
        a = jnp.dot(att, mat(ROW_ATT_W(s), ATT_DIM, GROUP_DIM),
                    preferred_element_type=jnp.float32)
        a = _bn_train(a, vec(ROW_ATT_BN(s), GROUP_DIM),
                      vec(ROW_ATT_BN(s) + 1, GROUP_DIM))
        if s > 0:                      # step 0: prior is all-ones -> no-op mul
            a = a * prior
        M = _sparsemax(a)

        # entropy regularizer (per-row; reduced across batch in the wrapper)
        ent = ent + jnp.sum(M * jnp.log(M + EPSILON), axis=1, keepdims=True)

        # prior update and masking
        gm = GAMMA - M
        prior = gm if s == 0 else gm * prior
        masked_x = M * xn

        # step feature transformer
        out = feature_transformer(masked_x, ROW_FT_W0(s), ROW_FT_BN0(s),
                                  ROW_FT_W1(s), ROW_FT_BN1(s), INPUT_DIM)
        d_steps.append(jnp.maximum(out[:, :PRED_DIM], 0.0))   # ReLU
        att = out[:, PRED_DIM:]

    # Assemble the whole (chunk, 128) tile in registers and write it with a
    # single full (unmasked, lane-dense) store.
    payload = jnp.concatenate(d_steps + [ent], axis=1)         # (chunk, 25)
    pad = jnp.zeros((chunk, OUT_COLS - USED_COLS), jnp.float32)
    out_ref[...] = jnp.concatenate([payload, pad], axis=1)


# ----- wrapper -------------------------------------------------------------------
def encoder_forward(x, slab):
    b = x.shape[0]
    n_chunks = -(-b // VIRTUAL_BATCH_SIZE)      # ceil(B / virtual_batch_size)
    chunk = -(-b // n_chunks)                   # torch.chunk chunk size
    # TODO(synk): ragged / non-8-aligned ghost-batch chunks (torch.chunk remainder).
    assert b % chunk == 0 and (n_chunks == 1 or chunk % 8 == 0)

    # Full-batch stats for the initial (plain) BatchNorm1d — must not be per-chunk.
    mean = jnp.mean(x, axis=0, keepdims=True)
    var = jnp.mean((x - mean) ** 2, axis=0, keepdims=True)
    stats = jnp.concatenate([mean, var], axis=0)          # (2, INPUT_DIM)

    out = pl.pallas_call(
        encoder_kernel,
        out_shape=jax.ShapeDtypeStruct((b, OUT_COLS), jnp.float32),
        grid=(n_chunks,),
        in_specs=[
            pl.BlockSpec((chunk, INPUT_DIM), lambda i: (i, 0)),      # x chunk
            pl.BlockSpec((SLAB_ROWS, SLAB_COLS), lambda i: (0, 0)),  # param slab
            pl.BlockSpec((2, INPUT_DIM), lambda i: (0, 0)),          # BN stats
        ],
        out_specs=pl.BlockSpec((chunk, OUT_COLS), lambda i: (i, 0)),
        compiler_params=pltpu.CompilerParams(
            dimension_semantics=("parallel",)),
    )(x, slab, stats)

    steps_output = [out[:, s * PRED_DIM:(s + 1) * PRED_DIM] for s in range(N_STEPS)]
    m_loss = jnp.sum(out[:, ENT_COL]) / jnp.float32(b * N_STEPS)
    return steps_output, m_loss


# ----- parameter init (packed slab) ----------------------------------------------
def init_params(key):
    """Deterministic init (Linear weights ~N(0, 0.1); BN w=1, b=0), packed into
    a single (SLAB_ROWS, SLAB_COLS) f32 slab.  Linear weights are stored
    pre-transposed as (in_dim, out_dim)."""
    ks = jax.random.split(key, 8)
    f32 = jnp.float32

    def rn(k, shape):
        return (0.1 * jax.random.normal(k, shape)).astype(f32)

    slab = jnp.zeros((SLAB_ROWS, SLAB_COLS), f32)
    # BN scales = 1 (biases stay 0)
    slab = slab.at[ROW_IBN_W, :INPUT_DIM].set(1.0)
    slab = slab.at[ROW_SP_BN0, :2 * OUT_DIM].set(1.0)
    slab = slab.at[ROW_SP_BN1, :2 * OUT_DIM].set(1.0)
    for s in range(N_STEPS):
        slab = slab.at[ROW_ATT_BN(s), :GROUP_DIM].set(1.0)
        slab = slab.at[ROW_FT_BN0(s), :2 * OUT_DIM].set(1.0)
        slab = slab.at[ROW_FT_BN1(s), :2 * OUT_DIM].set(1.0)

    # Weights
    slab = slab.at[ROW_SP_W0:ROW_SP_W0 + INPUT_DIM, :2 * OUT_DIM].set(
        rn(ks[0], (INPUT_DIM, 2 * OUT_DIM)))
    slab = slab.at[ROW_SP_W1:ROW_SP_W1 + OUT_DIM, :2 * OUT_DIM].set(
        rn(ks[1], (OUT_DIM, 2 * OUT_DIM)))
    att_w = rn(ks[2], (N_STEPS, ATT_DIM, GROUP_DIM))
    ft_w0 = rn(ks[3], (N_STEPS, INPUT_DIM, 2 * OUT_DIM))
    ft_w1 = rn(ks[4], (N_STEPS, OUT_DIM, 2 * OUT_DIM))
    for s in range(N_STEPS):
        slab = slab.at[ROW_ATT_W(s):ROW_ATT_W(s) + ATT_DIM, :GROUP_DIM].set(att_w[s])
        slab = slab.at[ROW_FT_W0(s):ROW_FT_W0(s) + INPUT_DIM, :2 * OUT_DIM].set(ft_w0[s])
        slab = slab.at[ROW_FT_W1(s):ROW_FT_W1(s) + OUT_DIM, :2 * OUT_DIM].set(ft_w1[s])
    return slab


if __name__ == "__main__":
    key = jax.random.PRNGKey(0)
    kx, kp = jax.random.split(key)
    x = jax.random.normal(kx, (BATCH, INPUT_DIM), dtype=jnp.float32)
    slab = init_params(kp)

    steps_output, m_loss = jax.jit(encoder_forward)(x, slab)
    jax.block_until_ready(steps_output)
    jax.block_until_ready(m_loss)

    assert len(steps_output) == N_STEPS
    assert all(o.shape == (BATCH, PRED_DIM) for o in steps_output)
    assert all(bool(jnp.all(jnp.isfinite(o))) for o in steps_output)
    assert bool(jnp.isfinite(m_loss))
    print("KERNEL_OK")
</pallas_src>

<mosaic_0001>
module attributes {stable_mosaic.version = 11 : i64} {
  func.func @encoder_kernel(%arg0: i32, %arg1: memref<8x16xf32, #tpu.memory_space<vmem>>, %arg2: memref<184x32xf32, #tpu.memory_space<vmem>>, %arg3: memref<2x16xf32, #tpu.memory_space<vmem>>, %arg4: memref<8x128xf32, #tpu.memory_space<vmem>>) attributes {dimension_semantics = [#tpu.dimension_semantics<parallel>], iteration_bounds = array<i64: 1>, scalar_prefetch = 0 : i64, scratch_operands = 0 : i64, tpu.core_type = #tpu.core_type<tc>, window_params = [{transform_indices = @transform_0, window_bounds = array<i64: 8, 16>}, {pipeline_mode = #tpu.pipeline_mode<synchronous>, transform_indices = @transform_1, window_bounds = array<i64: 184, 32>}, {pipeline_mode = #tpu.pipeline_mode<synchronous>, transform_indices = @transform_2, window_bounds = array<i64: 2, 16>}, {transform_indices = @transform_3, window_bounds = array<i64: 8, 128>}]} {
    %c0 = arith.constant 0 : index
    %c0_0 = arith.constant 0 : index
    %0 = vector.load %arg1[%c0, %c0_0] : memref<8x16xf32, #tpu.memory_space<vmem>>, vector<8x16xf32>
    %c0_1 = arith.constant 0 : index
    %c0_2 = arith.constant 0 : index
    %1 = vector.load %arg3[%c0_1, %c0_2] : memref<2x16xf32, #tpu.memory_space<vmem>>, vector<1x16xf32>
    %c1 = arith.constant 1 : index
    %c0_3 = arith.constant 0 : index
    %2 = vector.load %arg3[%c1, %c0_3] : memref<2x16xf32, #tpu.memory_space<vmem>>, vector<1x16xf32>
    %3 = vector.broadcast %1 : vector<1x16xf32> to vector<8x16xf32>
    %4 = arith.subf %0, %3 : vector<8x16xf32>
    %cst = arith.constant 9.99999974E-6 : f32
    %5 = vector.broadcast %cst : f32 to vector<1x16xf32>
    %6 = arith.addf %2, %5 : vector<1x16xf32>
    %7 = math.rsqrt %6 : vector<1x16xf32>
    %8 = vector.broadcast %7 : vector<1x16xf32> to vector<8x16xf32>
    %9 = arith.mulf %4, %8 : vector<8x16xf32>
    %c0_4 = arith.constant 0 : index
    %c0_5 = arith.constant 0 : index
    %10 = vector.load %arg2[%c0_4, %c0_5] : memref<184x32xf32, #tpu.memory_space<vmem>>, vector<1x16xf32>
    %11 = vector.broadcast %10 : vector<1x16xf32> to vector<8x16xf32>
    %12 = arith.mulf %9, %11 : vector<8x16xf32>
    %c1_6 = arith.constant 1 : index
    %c0_7 = arith.constant 0 : index
    %13 = vector.load %arg2[%c1_6, %c0_7] : memref<184x32xf32, #tpu.memory_space<vmem>>, vector<1x16xf32>
    %14 = vector.broadcast %13 : vector<1x16xf32> to vector<8x16xf32>
    %15 = arith.addf %12, %14 : vector<8x16xf32>
    %c32 = arith.constant 32 : index
    %c0_8 = arith.constant 0 : index
    %16 = vector.load %arg2[%c32, %c0_8] : memref<184x32xf32, #tpu.memory_space<vmem>>, vector<16x32xf32>
    %c4 = arith.constant 4 : index
    %c0_9 = arith.constant 0 : index
    %17 = vector.load %arg2[%c4, %c0_9] : memref<184x32xf32, #tpu.memory_space<vmem>>, vector<1x32xf32>
    %c5 = arith.constant 5 : index
    %c0_10 = arith.constant 0 : index
    %18 = vector.load %arg2[%c5, %c0_10] : memref<184x32xf32, #tpu.memory_space<vmem>>, vector<1x32xf32>
    %cst_11 = arith.constant dense<0.000000e+00> : vector<8x32xf32>
    %19 = tpu.matmul %15, %16, %cst_11 {dimension_numbers = #tpu.dot_dimension_numbers<[1], [0], [0], [1], [0, 0, 1, 1], [], []>} : vector<8x16xf32>, vector<16x32xf32>, vector<8x32xf32> -> vector<8x32xf32>
    %cst_12 = arith.constant dense<0.000000e+00> : vector<32xf32>
    %20 = vector.multi_reduction <add>, %19, %cst_12 [0] : vector<8x32xf32> to vector<32xf32>
    %21 = vector.shape_cast %20 : vector<32xf32> to vector<1x32xf32>
    %cst_13 = arith.constant 8.000000e+00 : f32
    %22 = vector.broadcast %cst_13 : f32 to vector<1x32xf32>
    %23 = arith.divf %21, %22 : vector<1x32xf32>
    %24 = vector.broadcast %23 : vector<1x32xf32> to vector<8x32xf32>
    %25 = arith.subf %19, %24 : vector<8x32xf32>
    %26 = arith.mulf %25, %25 : vector<8x32xf32>
    %cst_14 = arith.constant dense<0.000000e+00> : vector<32xf32>
    %27 = vector.multi_reduction <add>, %26, %cst_14 [0] : vector<8x32xf32> to vector<32xf32>
    %28 = vector.shape_cast %27 : vector<32xf32> to vector<1x32xf32>
    %cst_15 = arith.constant 8.000000e+00 : f32
    %29 = vector.broadcast %cst_15 : f32 to vector<1x32xf32>
    %30 = arith.divf %28, %29 : vector<1x32xf32>
    %31 = vector.broadcast %23 : vector<1x32xf32> to vector<8x32xf32>
    %32 = arith.subf %19, %31 : vector<8x32xf32>
    %cst_16 = arith.constant 9.99999974E-6 : f32
    %33 = vector.broadcast %cst_16 : f32 to vector<1x32xf32>
    %34 = arith.addf %30, %33 : vector<1x32xf32>
    %35 = math.rsqrt %34 : vector<1x32xf32>
    %36 = vector.broadcast %35 : vector<1x32xf32> to vector<8x32xf32>
    %37 = arith.mulf %32, %36 : vector<8x32xf32>
    %38 = vector.broadcast %17 : vector<1x32xf32> to vector<8x32xf32>
    %39 = arith.mulf %37, %38 : vector<8x32xf32>
    %40 = vector.broadcast %18 : vector<1x32xf32> to vector<8x32xf32>
    %41 = arith.addf %39, %40 : vector<8x32xf32>
    %42 = vector.extract_strided_slice %41 {offsets = [0, 0], sizes = [8, 16], strides = [1, 1]} : vector<8x32xf32> to vector<8x16xf32>
    %43 = vector.extract_strided_slice %41 {offsets = [0, 16], sizes = [8, 16], strides = [1, 1]} : vector<8x32xf32> to vector<8x16xf32>
    %44 = arith.negf %43 : vector<8x16xf32>
    %45 = math.exp %44 : vector<8x16xf32>
    %cst_17 = arith.constant 1.000000e+00 : f32
    %46 = vector.broadcast %cst_17 : f32 to vector<8x16xf32>
    %47 = arith.addf %46, %45 : vector<8x16xf32>
    %48 = arith.divf %46, %47 : vector<8x16xf32>
    %49 = arith.mulf %42, %48 : vector<8x16xf32>
    %c48 = arith.constant 48 : index
    %c0_18 = arith.constant 0 : index
    %50 = vector.load %arg2[%c48, %c0_18] : memref<184x32xf32, #tpu.memory_space<vmem>>, vector<16x32xf32>
    %c6 = arith.constant 6 : index
    %c0_19 = arith.constant 0 : index
    %51 = vector.load %arg2[%c6, %c0_19] : memref<184x32xf32, #tpu.memory_space<vmem>>, vector<1x32xf32>
    %c7 = arith.constant 7 : index
    %c0_20 = arith.constant 0 : index
    %52 = vector.load %arg2[%c7, %c0_20] : memref<184x32xf32, #tpu.memory_space<vmem>>, vector<1x32xf32>
    %cst_21 = arith.constant dense<0.000000e+00> : vector<8x32xf32>
    %53 = tpu.matmul %49, %50, %cst_21 {dimension_numbers = #tpu.dot_dimension_numbers<[1], [0], [0], [1], [0, 0, 1, 1], [], []>} : vector<8x16xf32>, vector<16x32xf32>, vector<8x32xf32> -> vector<8x32xf32>
    %cst_22 = arith.constant dense<0.000000e+00> : vector<32xf32>
    %54 = vector.multi_reduction <add>, %53, %cst_22 [0] : vector<8x32xf32> to vector<32xf32>
    %55 = vector.shape_cast %54 : vector<32xf32> to vector<1x32xf32>
    %cst_23 = arith.constant 8.000000e+00 : f32
    %56 = vector.broadcast %cst_23 : f32 to vector<1x32xf32>
    %57 = arith.divf %55, %56 : vector<1x32xf32>
    %58 = vector.broadcast %57 : vector<1x32xf32> to vector<8x32xf32>
    %59 = arith.subf %53, %58 : vector<8x32xf32>
    %60 = arith.mulf %59, %59 : vector<8x32xf32>
    %cst_24 = arith.constant dense<0.000000e+00> : vector<32xf32>
    %61 = vector.multi_reduction <add>, %60, %cst_24 [0] : vector<8x32xf32> to vector<32xf32>
    %62 = vector.shape_cast %61 : vector<32xf32> to vector<1x32xf32>
    %cst_25 = arith.constant 8.000000e+00 : f32
    %63 = vector.broadcast %cst_25 : f32 to vector<1x32xf32>
    %64 = arith.divf %62, %63 : vector<1x32xf32>
    %65 = vector.broadcast %57 : vector<1x32xf32> to vector<8x32xf32>
    %66 = arith.subf %53, %65 : vector<8x32xf32>
    %cst_26 = arith.constant 9.99999974E-6 : f32
    %67 = vector.broadcast %cst_26 : f32 to vector<1x32xf32>
    %68 = arith.addf %64, %67 : vector<1x32xf32>
    %69 = math.rsqrt %68 : vector<1x32xf32>
    %70 = vector.broadcast %69 : vector<1x32xf32> to vector<8x32xf32>
    %71 = arith.mulf %66, %70 : vector<8x32xf32>
    %72 = vector.broadcast %51 : vector<1x32xf32> to vector<8x32xf32>
    %73 = arith.mulf %71, %72 : vector<8x32xf32>
    %74 = vector.broadcast %52 : vector<1x32xf32> to vector<8x32xf32>
    %75 = arith.addf %73, %74 : vector<8x32xf32>
    %76 = vector.extract_strided_slice %75 {offsets = [0, 0], sizes = [8, 16], strides = [1, 1]} : vector<8x32xf32> to vector<8x16xf32>
    %77 = vector.extract_strided_slice %75 {offsets = [0, 16], sizes = [8, 16], strides = [1, 1]} : vector<8x32xf32> to vector<8x16xf32>
    %78 = arith.negf %77 : vector<8x16xf32>
    %79 = math.exp %78 : vector<8x16xf32>
    %cst_27 = arith.constant 1.000000e+00 : f32
    %80 = vector.broadcast %cst_27 : f32 to vector<8x16xf32>
    %81 = arith.addf %80, %79 : vector<8x16xf32>
    %82 = arith.divf %80, %81 : vector<8x16xf32>
    %83 = arith.mulf %76, %82 : vector<8x16xf32>
    %84 = arith.addf %49, %83 : vector<8x16xf32>
    %cst_28 = arith.constant 0.707106769 : f32
    %85 = vector.broadcast %cst_28 : f32 to vector<8x16xf32>
    %86 = arith.mulf %84, %85 : vector<8x16xf32>
    %87 = vector.extract_strided_slice %86 {offsets = [0, 8], sizes = [8, 8], strides = [1, 1]} : vector<8x16xf32> to vector<8x8xf32>
    %cst_29 = arith.constant 0.000000e+00 : f32
    %88 = vector.broadcast %cst_29 : f32 to vector<8x1xf32>
    %c96 = arith.constant 96 : index
    %c0_30 = arith.constant 0 : index
    %89 = vector.load %arg2[%c96, %c0_30] : memref<184x32xf32, #tpu.memory_space<vmem>>, vector<8x16xf32>
    %cst_31 = arith.constant dense<0.000000e+00> : vector<8x16xf32>
    %90 = tpu.matmul %87, %89, %cst_31 {dimension_numbers = #tpu.dot_dimension_numbers<[1], [0], [0], [1], [0, 0, 1, 1], [], []>} : vector<8x8xf32>, vector<8x16xf32>, vector<8x16xf32> -> vector<8x16xf32>
    %c8 = arith.constant 8 : index
    %c0_32 = arith.constant 0 : index
    %91 = vector.load %arg2[%c8, %c0_32] : memref<184x32xf32, #tpu.memory_space<vmem>>, vector<1x16xf32>
    %c9 = arith.constant 9 : index
    %c0_33 = arith.constant 0 : index
    %92 = vector.load %arg2[%c9, %c0_33] : memref<184x32xf32, #tpu.memory_space<vmem>>, vector<1x16xf32>
    %cst_34 = arith.constant dense<0.000000e+00> : vector<16xf32>
    %93 = vector.multi_reduction <add>, %90, %cst_34 [0] : vector<8x16xf32> to vector<16xf32>
    %94 = vector.shape_cast %93 : vector<16xf32> to vector<1x16xf32>
    %cst_35 = arith.constant 8.000000e+00 : f32
    %95 = vector.broadcast %cst_35 : f32 to vector<1x16xf32>
    %96 = arith.divf %94, %95 : vector<1x16xf32>
    %97 = vector.broadcast %96 : vector<1x16xf32> to vector<8x16xf32>
    %98 = arith.subf %90, %97 : vector<8x16xf32>
    %99 = arith.mulf %98, %98 : vector<8x16xf32>
    %cst_36 = arith.constant dense<0.000000e+00> : vector<16xf32>
    %100 = vector.multi_reduction <add>, %99, %cst_36 [0] : vector<8x16xf32> to vector<16xf32>
    %101 = vector.shape_cast %100 : vector<16xf32> to vector<1x16xf32>
    %cst_37 = arith.constant 8.000000e+00 : f32
    %102 = vector.broadcast %cst_37 : f32 to vector<1x16xf32>
    %103 = arith.divf %101, %102 : vector<1x16xf32>
    %104 = vector.broadcast %96 : vector<1x16xf32> to vector<8x16xf32>
    %105 = arith.subf %90, %104 : vector<8x16xf32>
    %cst_38 = arith.constant 9.99999974E-6 : f32
    %106 = vector.broadcast %cst_38 : f32 to vector<1x16xf32>
    %107 = arith.addf %103, %106 : vector<1x16xf32>
    %108 = math.rsqrt %107 : vector<1x16xf32>
    %109 = vector.broadcast %108 : vector<1x16xf32> to vector<8x16xf32>
    %110 = arith.mulf %105, %109 : vector<8x16xf32>
    %111 = vector.broadcast %91 : vector<1x16xf32> to vector<8x16xf32>
    %112 = arith.mulf %110, %111 : vector<8x16xf32>
    %113 = vector.broadcast %92 : vector<1x16xf32> to vector<8x16xf32>
    %114 = arith.addf %112, %113 : vector<8x16xf32>
    %cst_39 = arith.constant dense<0xFF800000> : vector<8xf32>
    %115 = vector.multi_reduction <maximumf>, %114, %cst_39 [1] : vector<8x16xf32> to vector<8xf32>
    %116 = vector.shape_cast %115 : vector<8xf32> to vector<8x1xf32>
    %117 = vector.broadcast %116 : vector<8x1xf32> to vector<8x16xf32>
    %118 = arith.subf %114, %117 : vector<8x16xf32>
    %119 = vector.shape_cast %118 : vector<8x16xf32> to vector<8x1x16xf32>
    %120 = vector.shape_cast %118 : vector<8x16xf32> to vector<8x16x1xf32>
    %121 = vector.broadcast %119 : vector<8x1x16xf32> to vector<8x16x16xf32>
    %122 = vector.broadcast %120 : vector<8x16x1xf32> to vector<8x16x16xf32>
    %123 = arith.cmpf oge, %121, %122 : vector<8x16x16xf32>
    %124 = arith.extui %123 : vector<8x16x16xi1> to vector<8x16x16xi32>
    %125 = arith.sitofp %124 : vector<8x16x16xi32> to vector<8x16x16xf32>
    %cst_40 = arith.constant dense<0.000000e+00> : vector<8x16xf32>
    %126 = vector.multi_reduction <add>, %125, %cst_40 [2] : vector<8x16x16xf32> to vector<8x16xf32>
    %127 = vector.shape_cast %118 : vector<8x16xf32> to vector<8x1x16xf32>
    %128 = vector.broadcast %127 : vector<8x1x16xf32> to vector<8x16x16xf32>
    %129 = arith.mulf %125, %128 : vector<8x16x16xf32>
    %cst_41 = arith.constant dense<0.000000e+00> : vector<8x16xf32>
    %130 = vector.multi_reduction <add>, %129, %cst_41 [2] : vector<8x16x16xf32> to vector<8x16xf32>
    %131 = arith.mulf %126, %118 : vector<8x16xf32>
    %cst_42 = arith.constant 1.000000e+00 : f32
    %132 = vector.broadcast %cst_42 : f32 to vector<8x16xf32>
    %133 = arith.addf %132, %131 : vector<8x16xf32>
    %134 = arith.cmpf ogt, %133, %130 : vector<8x16xf32>
    %135 = arith.extui %134 : vector<8x16xi1> to vector<8x16xi32>
    %136 = arith.sitofp %135 : vector<8x16xi32> to vector<8x16xf32>
    %cst_43 = arith.constant dense<0.000000e+00> : vector<8xf32>
    %137 = vector.multi_reduction <add>, %136, %cst_43 [1] : vector<8x16xf32> to vector<8xf32>
    %138 = vector.shape_cast %137 : vector<8xf32> to vector<8x1xf32>
    %139 = arith.mulf %118, %136 : vector<8x16xf32>
    %cst_44 = arith.constant dense<0.000000e+00> : vector<8xf32>
    %140 = vector.multi_reduction <add>, %139, %cst_44 [1] : vector<8x16xf32> to vector<8xf32>
    %141 = vector.shape_cast %140 : vector<8xf32> to vector<8x1xf32>
    %cst_45 = arith.constant 1.000000e+00 : f32
    %142 = vector.broadcast %cst_45 : f32 to vector<8x1xf32>
    %143 = arith.subf %141, %142 : vector<8x1xf32>
    %144 = arith.divf %143, %138 : vector<8x1xf32>
    %145 = vector.broadcast %144 : vector<8x1xf32> to vector<8x16xf32>
    %146 = arith.subf %118, %145 : vector<8x16xf32>
    %cst_46 = arith.constant 0.000000e+00 : f32
    %147 = vector.broadcast %cst_46 : f32 to vector<8x16xf32>
    %148 = arith.maximumf %146, %147 : vector<8x16xf32>
    %cst_47 = arith.constant 1.000000e-15 : f32
    %149 = vector.broadcast %cst_47 : f32 to vector<8x16xf32>
    %150 = arith.addf %148, %149 : vector<8x16xf32>
    %151 = math.log %150 : vector<8x16xf32>
    %152 = arith.mulf %148, %151 : vector<8x16xf32>
    %cst_48 = arith.constant dense<0.000000e+00> : vector<8xf32>
    %153 = vector.multi_reduction <add>, %152, %cst_48 [1] : vector<8x16xf32> to vector<8xf32>
    %154 = vector.shape_cast %153 : vector<8xf32> to vector<8x1xf32>
    %155 = arith.addf %88, %154 : vector<8x1xf32>
    %cst_49 = arith.constant 1.300000e+00 : f32
    %156 = vector.broadcast %cst_49 : f32 to vector<8x16xf32>
    %157 = arith.subf %156, %148 : vector<8x16xf32>
    %158 = arith.mulf %148, %15 : vector<8x16xf32>
    %c64 = arith.constant 64 : index
    %c0_50 = arith.constant 0 : index
    %159 = vector.load %arg2[%c64, %c0_50] : memref<184x32xf32, #tpu.memory_space<vmem>>, vector<16x32xf32>
    %c10 = arith.constant 10 : index
    %c0_51 = arith.constant 0 : index
    %160 = vector.load %arg2[%c10, %c0_51] : memref<184x32xf32, #tpu.memory_space<vmem>>, vector<1x32xf32>
    %c11 = arith.constant 11 : index
    %c0_52 = arith.constant 0 : index
    %161 = vector.load %arg2[%c11, %c0_52] : memref<184x32xf32, #tpu.memory_space<vmem>>, vector<1x32xf32>
    %cst_53 = arith.constant dense<0.000000e+00> : vector<8x32xf32>
    %162 = tpu.matmul %158, %159, %cst_53 {dimension_numbers = #tpu.dot_dimension_numbers<[1], [0], [0], [1], [0, 0, 1, 1], [], []>} : vector<8x16xf32>, vector<16x32xf32>, vector<8x32xf32> -> vector<8x32xf32>
    %cst_54 = arith.constant dense<0.000000e+00> : vector<32xf32>
    %163 = vector.multi_reduction <add>, %162, %cst_54 [0] : vector<8x32xf32> to vector<32xf32>
    %164 = vector.shape_cast %163 : vector<32xf32> to vector<1x32xf32>
    %cst_55 = arith.constant 8.000000e+00 : f32
    %165 = vector.broadcast %cst_55 : f32 to vector<1x32xf32>
    %166 = arith.divf %164, %165 : vector<1x32xf32>
    %167 = vector.broadcast %166 : vector<1x32xf32> to vector<8x32xf32>
    %168 = arith.subf %162, %167 : vector<8x32xf32>
    %169 = arith.mulf %168, %168 : vector<8x32xf32>
    %cst_56 = arith.constant dense<0.000000e+00> : vector<32xf32>
    %170 = vector.multi_reduction <add>, %169, %cst_56 [0] : vector<8x32xf32> to vector<32xf32>
    %171 = vector.shape_cast %170 : vector<32xf32> to vector<1x32xf32>
    %cst_57 = arith.constant 8.000000e+00 : f32
    %172 = vector.broadcast %cst_57 : f32 to vector<1x32xf32>
    %173 = arith.divf %171, %172 : vector<1x32xf32>
    %174 = vector.broadcast %166 : vector<1x32xf32> to vector<8x32xf32>
    %175 = arith.subf %162, %174 : vector<8x32xf32>
    %cst_58 = arith.constant 9.99999974E-6 : f32
    %176 = vector.broadcast %cst_58 : f32 to vector<1x32xf32>
    %177 = arith.addf %173, %176 : vector<1x32xf32>
    %178 = math.rsqrt %177 : vector<1x32xf32>
    %179 = vector.broadcast %178 : vector<1x32xf32> to vector<8x32xf32>
    %180 = arith.mulf %175, %179 : vector<8x32xf32>
    %181 = vector.broadcast %160 : vector<1x32xf32> to vector<8x32xf32>
    %182 = arith.mulf %180, %181 : vector<8x32xf32>
    %183 = vector.broadcast %161 : vector<1x32xf32> to vector<8x32xf32>
    %184 = arith.addf %182, %183 : vector<8x32xf32>
    %185 = vector.extract_strided_slice %184 {offsets = [0, 0], sizes = [8, 16], strides = [1, 1]} : vector<8x32xf32> to vector<8x16xf32>
    %186 = vector.extract_strided_slice %184 {offsets = [0, 16], sizes = [8, 16], strides = [1, 1]} : vector<8x32xf32> to vector<8x16xf32>
    %187 = arith.negf %186 : vector<8x16xf32>
    %188 = math.exp %187 : vector<8x16xf32>
    %cst_59 = arith.constant 1.000000e+00 : f32
    %189 = vector.broadcast %cst_59 : f32 to vector<8x16xf32>
    %190 = arith.addf %189, %188 : vector<8x16xf32>
    %191 = arith.divf %189, %190 : vector<8x16xf32>
    %192 = arith.mulf %185, %191 : vector<8x16xf32>
    %c80 = arith.constant 80 : index
    %c0_60 = arith.constant 0 : index
    %193 = vector.load %arg2[%c80, %c0_60] : memref<184x32xf32, #tpu.memory_space<vmem>>, vector<16x32xf32>
    %c12 = arith.constant 12 : index
    %c0_61 = arith.constant 0 : index
    %194 = vector.load %arg2[%c12, %c0_61] : memref<184x32xf32, #tpu.memory_space<vmem>>, vector<1x32xf32>
    %c13 = arith.constant 13 : index
    %c0_62 = arith.constant 0 : index
    %195 = vector.load %arg2[%c13, %c0_62] : memref<184x32xf32, #tpu.memory_space<vmem>>, vector<1x32xf32>
    %cst_63 = arith.constant dense<0.000000e+00> : vector<8x32xf32>
    %196 = tpu.matmul %192, %193, %cst_63 {dimension_numbers = #tpu.dot_dimension_numbers<[1], [0], [0], [1], [0, 0, 1, 1], [], []>} : vector<8x16xf32>, vector<16x32xf32>, vector<8x32xf32> -> vector<8x32xf32>
    %cst_64 = arith.constant dense<0.000000e+00> : vector<32xf32>
    %197 = vector.multi_reduction <add>, %196, %cst_64 [0] : vector<8x32xf32> to vector<32xf32>
    %198 = vector.shape_cast %197 : vector<32xf32> to vector<1x32xf32>
    %cst_65 = arith.constant 8.000000e+00 : f32
    %199 = vector.broadcast %cst_65 : f32 to vector<1x32xf32>
    %200 = arith.divf %198, %199 : vector<1x32xf32>
    %201 = vector.broadcast %200 : vector<1x32xf32> to vector<8x32xf32>
    %202 = arith.subf %196, %201 : vector<8x32xf32>
    %203 = arith.mulf %202, %202 : vector<8x32xf32>
    %cst_66 = arith.constant dense<0.000000e+00> : vector<32xf32>
    %204 = vector.multi_reduction <add>, %203, %cst_66 [0] : vector<8x32xf32> to vector<32xf32>
    %205 = vector.shape_cast %204 : vector<32xf32> to vector<1x32xf32>
    %cst_67 = arith.constant 8.000000e+00 : f32
    %206 = vector.broadcast %cst_67 : f32 to vector<1x32xf32>
    %207 = arith.divf %205, %206 : vector<1x32xf32>
    %208 = vector.broadcast %200 : vector<1x32xf32> to vector<8x32xf32>
    %209 = arith.subf %196, %208 : vector<8x32xf32>
    %cst_68 = arith.constant 9.99999974E-6 : f32
    %210 = vector.broadcast %cst_68 : f32 to vector<1x32xf32>
    %211 = arith.addf %207, %210 : vector<1x32xf32>
    %212 = math.rsqrt %211 : vector<1x32xf32>
    %213 = vector.broadcast %212 : vector<1x32xf32> to vector<8x32xf32>
    %214 = arith.mulf %209, %213 : vector<8x32xf32>
    %215 = vector.broadcast %194 : vector<1x32xf32> to vector<8x32xf32>
    %216 = arith.mulf %214, %215 : vector<8x32xf32>
    %217 = vector.broadcast %195 : vector<1x32xf32> to vector<8x32xf32>
    %218 = arith.addf %216, %217 : vector<8x32xf32>
    %219 = vector.extract_strided_slice %218 {offsets = [0, 0], sizes = [8, 16], strides = [1, 1]} : vector<8x32xf32> to vector<8x16xf32>
    %220 = vector.extract_strided_slice %218 {offsets = [0, 16], sizes = [8, 16], strides = [1, 1]} : vector<8x32xf32> to vector<8x16xf32>
    %221 = arith.negf %220 : vector<8x16xf32>
    %222 = math.exp %221 : vector<8x16xf32>
    %cst_69 = arith.constant 1.000000e+00 : f32
    %223 = vector.broadcast %cst_69 : f32 to vector<8x16xf32>
    %224 = arith.addf %223, %222 : vector<8x16xf32>
    %225 = arith.divf %223, %224 : vector<8x16xf32>
    %226 = arith.mulf %219, %225 : vector<8x16xf32>
    %227 = arith.addf %192, %226 : vector<8x16xf32>
    %cst_70 = arith.constant 0.707106769 : f32
    %228 = vector.broadcast %cst_70 : f32 to vector<8x16xf32>
    %229 = arith.mulf %227, %228 : vector<8x16xf32>
    %230 = vector.extract_strided_slice %229 {offsets = [0, 0], sizes = [8, 8], strides = [1, 1]} : vector<8x16xf32> to vector<8x8xf32>
    %cst_71 = arith.constant 0.000000e+00 : f32
    %231 = vector.broadcast %cst_71 : f32 to vector<8x8xf32>
    %232 = arith.maximumf %230, %231 : vector<8x8xf32>
    %233 = vector.extract_strided_slice %229 {offsets = [0, 8], sizes = [8, 8], strides = [1, 1]} : vector<8x16xf32> to vector<8x8xf32>
    %c136 = arith.constant 136 : index
    %c0_72 = arith.constant 0 : index
    %234 = vector.load %arg2[%c136, %c0_72] : memref<184x32xf32, #tpu.memory_space<vmem>>, vector<8x16xf32>
    %cst_73 = arith.constant dense<0.000000e+00> : vector<8x16xf32>
    %235 = tpu.matmul %233, %234, %cst_73 {dimension_numbers = #tpu.dot_dimension_numbers<[1], [0], [0], [1], [0, 0, 1, 1], [], []>} : vector<8x8xf32>, vector<8x16xf32>, vector<8x16xf32> -> vector<8x16xf32>
    %c16 = arith.constant 16 : index
    %c0_74 = arith.constant 0 : index
    %236 = vector.load %arg2[%c16, %c0_74] : memref<184x32xf32, #tpu.memory_space<vmem>>, vector<1x16xf32>
    %c17 = arith.constant 17 : index
    %c0_75 = arith.constant 0 : index
    %237 = vector.load %arg2[%c17, %c0_75] : memref<184x32xf32, #tpu.memory_space<vmem>>, vector<1x16xf32>
    %cst_76 = arith.constant dense<0.000000e+00> : vector<16xf32>
    %238 = vector.multi_reduction <add>, %235, %cst_76 [0] : vector<8x16xf32> to vector<16xf32>
    %239 = vector.shape_cast %238 : vector<16xf32> to vector<1x16xf32>
    %cst_77 = arith.constant 8.000000e+00 : f32
    %240 = vector.broadcast %cst_77 : f32 to vector<1x16xf32>
    %241 = arith.divf %239, %240 : vector<1x16xf32>
    %242 = vector.broadcast %241 : vector<1x16xf32> to vector<8x16xf32>
    %243 = arith.subf %235, %242 : vector<8x16xf32>
    %244 = arith.mulf %243, %243 : vector<8x16xf32>
    %cst_78 = arith.constant dense<0.000000e+00> : vector<16xf32>
    %245 = vector.multi_reduction <add>, %244, %cst_78 [0] : vector<8x16xf32> to vector<16xf32>
    %246 = vector.shape_cast %245 : vector<16xf32> to vector<1x16xf32>
    %cst_79 = arith.constant 8.000000e+00 : f32
    %247 = vector.broadcast %cst_79 : f32 to vector<1x16xf32>
    %248 = arith.divf %246, %247 : vector<1x16xf32>
    %249 = vector.broadcast %241 : vector<1x16xf32> to vector<8x16xf32>
    %250 = arith.subf %235, %249 : vector<8x16xf32>
    %cst_80 = arith.constant 9.99999974E-6 : f32
    %251 = vector.broadcast %cst_80 : f32 to vector<1x16xf32>
    %252 = arith.addf %248, %251 : vector<1x16xf32>
    %253 = math.rsqrt %252 : vector<1x16xf32>
    %254 = vector.broadcast %253 : vector<1x16xf32> to vector<8x16xf32>
    %255 = arith.mulf %250, %254 : vector<8x16xf32>
    %256 = vector.broadcast %236 : vector<1x16xf32> to vector<8x16xf32>
    %257 = arith.mulf %255, %256 : vector<8x16xf32>
    %258 = vector.broadcast %237 : vector<1x16xf32> to vector<8x16xf32>
    %259 = arith.addf %257, %258 : vector<8x16xf32>
    %260 = arith.mulf %259, %157 : vector<8x16xf32>
    %cst_81 = arith.constant dense<0xFF800000> : vector<8xf32>
    %261 = vector.multi_reduction <maximumf>, %260, %cst_81 [1] : vector<8x16xf32> to vector<8xf32>
    %262 = vector.shape_cast %261 : vector<8xf32> to vector<8x1xf32>
    %263 = vector.broadcast %262 : vector<8x1xf32> to vector<8x16xf32>
    %264 = arith.subf %260, %263 : vector<8x16xf32>
    %265 = vector.shape_cast %264 : vector<8x16xf32> to vector<8x1x16xf32>
    %266 = vector.shape_cast %264 : vector<8x16xf32> to vector<8x16x1xf32>
    %267 = vector.broadcast %265 : vector<8x1x16xf32> to vector<8x16x16xf32>
    %268 = vector.broadcast %266 : vector<8x16x1xf32> to vector<8x16x16xf32>
    %269 = arith.cmpf oge, %267, %268 : vector<8x16x16xf32>
    %270 = arith.extui %269 : vector<8x16x16xi1> to vector<8x16x16xi32>
    %271 = arith.sitofp %270 : vector<8x16x16xi32> to vector<8x16x16xf32>
    %cst_82 = arith.constant dense<0.000000e+00> : vector<8x16xf32>
    %272 = vector.multi_reduction <add>, %271, %cst_82 [2] : vector<8x16x16xf32> to vector<8x16xf32>
    %273 = vector.shape_cast %264 : vector<8x16xf32> to vector<8x1x16xf32>
    %274 = vector.broadcast %273 : vector<8x1x16xf32> to vector<8x16x16xf32>
    %275 = arith.mulf %271, %274 : vector<8x16x16xf32>
    %cst_83 = arith.constant dense<0.000000e+00> : vector<8x16xf32>
    %276 = vector.multi_reduction <add>, %275, %cst_83 [2] : vector<8x16x16xf32> to vector<8x16xf32>
    %277 = arith.mulf %272, %264 : vector<8x16xf32>
    %cst_84 = arith.constant 1.000000e+00 : f32
    %278 = vector.broadcast %cst_84 : f32 to vector<8x16xf32>
    %279 = arith.addf %278, %277 : vector<8x16xf32>
    %280 = arith.cmpf ogt, %279, %276 : vector<8x16xf32>
    %281 = arith.extui %280 : vector<8x16xi1> to vector<8x16xi32>
    %282 = arith.sitofp %281 : vector<8x16xi32> to vector<8x16xf32>
    %cst_85 = arith.constant dense<0.000000e+00> : vector<8xf32>
    %283 = vector.multi_reduction <add>, %282, %cst_85 [1] : vector<8x16xf32> to vector<8xf32>
    %284 = vector.shape_cast %283 : vector<8xf32> to vector<8x1xf32>
    %285 = arith.mulf %264, %282 : vector<8x16xf32>
    %cst_86 = arith.constant dense<0.000000e+00> : vector<8xf32>
    %286 = vector.multi_reduction <add>, %285, %cst_86 [1] : vector<8x16xf32> to vector<8xf32>
    %287 = vector.shape_cast %286 : vector<8xf32> to vector<8x1xf32>
    %cst_87 = arith.constant 1.000000e+00 : f32
    %288 = vector.broadcast %cst_87 : f32 to vector<8x1xf32>
    %289 = arith.subf %287, %288 : vector<8x1xf32>
    %290 = arith.divf %289, %284 : vector<8x1xf32>
    %291 = vector.broadcast %290 : vector<8x1xf32> to vector<8x16xf32>
    %292 = arith.subf %264, %291 : vector<8x16xf32>
    %cst_88 = arith.constant 0.000000e+00 : f32
    %293 = vector.broadcast %cst_88 : f32 to vector<8x16xf32>
    %294 = arith.maximumf %292, %293 : vector<8x16xf32>
    %cst_89 = arith.constant 1.000000e-15 : f32
    %295 = vector.broadcast %cst_89 : f32 to vector<8x16xf32>
    %296 = arith.addf %294, %295 : vector<8x16xf32>
    %297 = math.log %296 : vector<8x16xf32>
    %298 = arith.mulf %294, %297 : vector<8x16xf32>
    %cst_90 = arith.constant dense<0.000000e+00> : vector<8xf32>
    %299 = vector.multi_reduction <add>, %298, %cst_90 [1] : vector<8x16xf32> to vector<8xf32>
    %300 = vector.shape_cast %299 : vector<8xf32> to vector<8x1xf32>
    %301 = arith.addf %155, %300 : vector<8x1xf32>
    %cst_91 = arith.constant 1.300000e+00 : f32
    %302 = vector.broadcast %cst_91 : f32 to vector<8x16xf32>
    %303 = arith.subf %302, %294 : vector<8x16xf32>
    %304 = arith.mulf %303, %157 : vector<8x16xf32>
    %305 = arith.mulf %294, %15 : vector<8x16xf32>
    %c104 = arith.constant 104 : index
    %c0_92 = arith.constant 0 : index
    %306 = vector.load %arg2[%c104, %c0_92] : memref<184x32xf32, #tpu.memory_space<vmem>>, vector<16x32xf32>
    %c18 = arith.constant 18 : index
    %c0_93 = arith.constant 0 : index
    %307 = vector.load %arg2[%c18, %c0_93] : memref<184x32xf32, #tpu.memory_space<vmem>>, vector<1x32xf32>
    %c19 = arith.constant 19 : index
    %c0_94 = arith.constant 0 : index
    %308 = vector.load %arg2[%c19, %c0_94] : memref<184x32xf32, #tpu.memory_space<vmem>>, vector<1x32xf32>
    %cst_95 = arith.constant dense<0.000000e+00> : vector<8x32xf32>
    %309 = tpu.matmul %305, %306, %cst_95 {dimension_numbers = #tpu.dot_dimension_numbers<[1], [0], [0], [1], [0, 0, 1, 1], [], []>} : vector<8x16xf32>, vector<16x32xf32>, vector<8x32xf32> -> vector<8x32xf32>
    %cst_96 = arith.constant dense<0.000000e+00> : vector<32xf32>
    %310 = vector.multi_reduction <add>, %309, %cst_96 [0] : vector<8x32xf32> to vector<32xf32>
    %311 = vector.shape_cast %310 : vector<32xf32> to vector<1x32xf32>
    %cst_97 = arith.constant 8.000000e+00 : f32
    %312 = vector.broadcast %cst_97 : f32 to vector<1x32xf32>
    %313 = arith.divf %311, %312 : vector<1x32xf32>
    %314 = vector.broadcast %313 : vector<1x32xf32> to vector<8x32xf32>
    %315 = arith.subf %309, %314 : vector<8x32xf32>
    %316 = arith.mulf %315, %315 : vector<8x32xf32>
    %cst_98 = arith.constant dense<0.000000e+00> : vector<32xf32>
    %317 = vector.multi_reduction <add>, %316, %cst_98 [0] : vector<8x32xf32> to vector<32xf32>
    %318 = vector.shape_cast %317 : vector<32xf32> to vector<1x32xf32>
    %cst_99 = arith.constant 8.000000e+00 : f32
    %319 = vector.broadcast %cst_99 : f32 to vector<1x32xf32>
    %320 = arith.divf %318, %319 : vector<1x32xf32>
    %321 = vector.broadcast %313 : vector<1x32xf32> to vector<8x32xf32>
    %322 = arith.subf %309, %321 : vector<8x32xf32>
    %cst_100 = arith.constant 9.99999974E-6 : f32
    %323 = vector.broadcast %cst_100 : f32 to vector<1x32xf32>
    %324 = arith.addf %320, %323 : vector<1x32xf32>
    %325 = math.rsqrt %324 : vector<1x32xf32>
    %326 = vector.broadcast %325 : vector<1x32xf32> to vector<8x32xf32>
    %327 = arith.mulf %322, %326 : vector<8x32xf32>
    %328 = vector.broadcast %307 : vector<1x32xf32> to vector<8x32xf32>
    %329 = arith.mulf %327, %328 : vector<8x32xf32>
    %330 = vector.broadcast %308 : vector<1x32xf32> to vector<8x32xf32>
    %331 = arith.addf %329, %330 : vector<8x32xf32>
    %332 = vector.extract_strided_slice %331 {offsets = [0, 0], sizes = [8, 16], strides = [1, 1]} : vector<8x32xf32> to vector<8x16xf32>
    %333 = vector.extract_strided_slice %331 {offsets = [0, 16], sizes = [8, 16], strides = [1, 1]} : vector<8x32xf32> to vector<8x16xf32>
    %334 = arith.negf %333 : vector<8x16xf32>
    %335 = math.exp %334 : vector<8x16xf32>
    %cst_101 = arith.constant 1.000000e+00 : f32
    %336 = vector.broadcast %cst_101 : f32 to vector<8x16xf32>
    %337 = arith.addf %336, %335 : vector<8x16xf32>
    %338 = arith.divf %336, %337 : vector<8x16xf32>
    %339 = arith.mulf %332, %338 : vector<8x16xf32>
    %c120 = arith.constant 120 : index
    %c0_102 = arith.constant 0 : index
    %340 = vector.load %arg2[%c120, %c0_102] : memref<184x32xf32, #tpu.memory_space<vmem>>, vector<16x32xf32>
    %c20 = arith.constant 20 : index
    %c0_103 = arith.constant 0 : index
    %341 = vector.load %arg2[%c20, %c0_103] : memref<184x32xf32, #tpu.memory_space<vmem>>, vector<1x32xf32>
    %c21 = arith.constant 21 : index
    %c0_104 = arith.constant 0 : index
    %342 = vector.load %arg2[%c21, %c0_104] : memref<184x32xf32, #tpu.memory_space<vmem>>, vector<1x32xf32>
    %cst_105 = arith.constant dense<0.000000e+00> : vector<8x32xf32>
    %343 = tpu.matmul %339, %340, %cst_105 {dimension_numbers = #tpu.dot_dimension_numbers<[1], [0], [0], [1], [0, 0, 1, 1], [], []>} : vector<8x16xf32>, vector<16x32xf32>, vector<8x32xf32> -> vector<8x32xf32>
    %cst_106 = arith.constant dense<0.000000e+00> : vector<32xf32>
    %344 = vector.multi_reduction <add>, %343, %cst_106 [0] : vector<8x32xf32> to vector<32xf32>
    %345 = vector.shape_cast %344 : vector<32xf32> to vector<1x32xf32>
    %cst_107 = arith.constant 8.000000e+00 : f32
    %346 = vector.broadcast %cst_107 : f32 to vector<1x32xf32>
    %347 = arith.divf %345, %346 : vector<1x32xf32>
    %348 = vector.broadcast %347 : vector<1x32xf32> to vector<8x32xf32>
    %349 = arith.subf %343, %348 : vector<8x32xf32>
    %350 = arith.mulf %349, %349 : vector<8x32xf32>
    %cst_108 = arith.constant dense<0.000000e+00> : vector<32xf32>
    %351 = vector.multi_reduction <add>, %350, %cst_108 [0] : vector<8x32xf32> to vector<32xf32>
    %352 = vector.shape_cast %351 : vector<32xf32> to vector<1x32xf32>
    %cst_109 = arith.constant 8.000000e+00 : f32
    %353 = vector.broadcast %cst_109 : f32 to vector<1x32xf32>
    %354 = arith.divf %352, %353 : vector<1x32xf32>
    %355 = vector.broadcast %347 : vector<1x32xf32> to vector<8x32xf32>
    %356 = arith.subf %343, %355 : vector<8x32xf32>
    %cst_110 = arith.constant 9.99999974E-6 : f32
    %357 = vector.broadcast %cst_110 : f32 to vector<1x32xf32>
    %358 = arith.addf %354, %357 : vector<1x32xf32>
    %359 = math.rsqrt %358 : vector<1x32xf32>
    %360 = vector.broadcast %359 : vector<1x32xf32> to vector<8x32xf32>
    %361 = arith.mulf %356, %360 : vector<8x32xf32>
    %362 = vector.broadcast %341 : vector<1x32xf32> to vector<8x32xf32>
    %363 = arith.mulf %361, %362 : vector<8x32xf32>
    %364 = vector.broadcast %342 : vector<1x32xf32> to vector<8x32xf32>
    %365 = arith.addf %363, %364 : vector<8x32xf32>
    %366 = vector.extract_strided_slice %365 {offsets = [0, 0], sizes = [8, 16], strides = [1, 1]} : vector<8x32xf32> to vector<8x16xf32>
    %367 = vector.extract_strided_slice %365 {offsets = [0, 16], sizes = [8, 16], strides = [1, 1]} : vector<8x32xf32> to vector<8x16xf32>
    %368 = arith.negf %367 : vector<8x16xf32>
    %369 = math.exp %368 : vector<8x16xf32>
    %cst_111 = arith.constant 1.000000e+00 : f32
    %370 = vector.broadcast %cst_111 : f32 to vector<8x16xf32>
    %371 = arith.addf %370, %369 : vector<8x16xf32>
    %372 = arith.divf %370, %371 : vector<8x16xf32>
    %373 = arith.mulf %366, %372 : vector<8x16xf32>
    %374 = arith.addf %339, %373 : vector<8x16xf32>
    %cst_112 = arith.constant 0.707106769 : f32
    %375 = vector.broadcast %cst_112 : f32 to vector<8x16xf32>
    %376 = arith.mulf %374, %375 : vector<8x16xf32>
    %377 = vector.extract_strided_slice %376 {offsets = [0, 0], sizes = [8, 8], strides = [1, 1]} : vector<8x16xf32> to vector<8x8xf32>
    %cst_113 = arith.constant 0.000000e+00 : f32
    %378 = vector.broadcast %cst_113 : f32 to vector<8x8xf32>
    %379 = arith.maximumf %377, %378 : vector<8x8xf32>
    %380 = vector.extract_strided_slice %376 {offsets = [0, 8], sizes = [8, 8], strides = [1, 1]} : vector<8x16xf32> to vector<8x8xf32>
    %c176 = arith.constant 176 : index
    %c0_114 = arith.constant 0 : index
    %381 = vector.load %arg2[%c176, %c0_114] : memref<184x32xf32, #tpu.memory_space<vmem>>, vector<8x16xf32>
    %cst_115 = arith.constant dense<0.000000e+00> : vector<8x16xf32>
    %382 = tpu.matmul %380, %381, %cst_115 {dimension_numbers = #tpu.dot_dimension_numbers<[1], [0], [0], [1], [0, 0, 1, 1], [], []>} : vector<8x8xf32>, vector<8x16xf32>, vector<8x16xf32> -> vector<8x16xf32>
    %c24 = arith.constant 24 : index
    %c0_116 = arith.constant 0 : index
    %383 = vector.load %arg2[%c24, %c0_116] : memref<184x32xf32, #tpu.memory_space<vmem>>, vector<1x16xf32>
    %c25 = arith.constant 25 : index
    %c0_117 = arith.constant 0 : index
    %384 = vector.load %arg2[%c25, %c0_117] : memref<184x32xf32, #tpu.memory_space<vmem>>, vector<1x16xf32>
    %cst_118 = arith.constant dense<0.000000e+00> : vector<16xf32>
    %385 = vector.multi_reduction <add>, %382, %cst_118 [0] : vector<8x16xf32> to vector<16xf32>
    %386 = vector.shape_cast %385 : vector<16xf32> to vector<1x16xf32>
    %cst_119 = arith.constant 8.000000e+00 : f32
    %387 = vector.broadcast %cst_119 : f32 to vector<1x16xf32>
    %388 = arith.divf %386, %387 : vector<1x16xf32>
    %389 = vector.broadcast %388 : vector<1x16xf32> to vector<8x16xf32>
    %390 = arith.subf %382, %389 : vector<8x16xf32>
    %391 = arith.mulf %390, %390 : vector<8x16xf32>
    %cst_120 = arith.constant dense<0.000000e+00> : vector<16xf32>
    %392 = vector.multi_reduction <add>, %391, %cst_120 [0] : vector<8x16xf32> to vector<16xf32>
    %393 = vector.shape_cast %392 : vector<16xf32> to vector<1x16xf32>
    %cst_121 = arith.constant 8.000000e+00 : f32
    %394 = vector.broadcast %cst_121 : f32 to vector<1x16xf32>
    %395 = arith.divf %393, %394 : vector<1x16xf32>
    %396 = vector.broadcast %388 : vector<1x16xf32> to vector<8x16xf32>
    %397 = arith.subf %382, %396 : vector<8x16xf32>
    %cst_122 = arith.constant 9.99999974E-6 : f32
    %398 = vector.broadcast %cst_122 : f32 to vector<1x16xf32>
    %399 = arith.addf %395, %398 : vector<1x16xf32>
    %400 = math.rsqrt %399 : vector<1x16xf32>
    %401 = vector.broadcast %400 : vector<1x16xf32> to vector<8x16xf32>
    %402 = arith.mulf %397, %401 : vector<8x16xf32>
    %403 = vector.broadcast %383 : vector<1x16xf32> to vector<8x16xf32>
    %404 = arith.mulf %402, %403 : vector<8x16xf32>
    %405 = vector.broadcast %384 : vector<1x16xf32> to vector<8x16xf32>
    %406 = arith.addf %404, %405 : vector<8x16xf32>
    %407 = arith.mulf %406, %304 : vector<8x16xf32>
    %cst_123 = arith.constant dense<0xFF800000> : vector<8xf32>
    %408 = vector.multi_reduction <maximumf>, %407, %cst_123 [1] : vector<8x16xf32> to vector<8xf32>
    %409 = vector.shape_cast %408 : vector<8xf32> to vector<8x1xf32>
    %410 = vector.broadcast %409 : vector<8x1xf32> to vector<8x16xf32>
    %411 = arith.subf %407, %410 : vector<8x16xf32>
    %412 = vector.shape_cast %411 : vector<8x16xf32> to vector<8x1x16xf32>
    %413 = vector.shape_cast %411 : vector<8x16xf32> to vector<8x16x1xf32>
    %414 = vector.broadcast %412 : vector<8x1x16xf32> to vector<8x16x16xf32>
    %415 = vector.broadcast %413 : vector<8x16x1xf32> to vector<8x16x16xf32>
    %416 = arith.cmpf oge, %414, %415 : vector<8x16x16xf32>
    %417 = arith.extui %416 : vector<8x16x16xi1> to vector<8x16x16xi32>
    %418 = arith.sitofp %417 : vector<8x16x16xi32> to vector<8x16x16xf32>
    %cst_124 = arith.constant dense<0.000000e+00> : vector<8x16xf32>
    %419 = vector.multi_reduction <add>, %418, %cst_124 [2] : vector<8x16x16xf32> to vector<8x16xf32>
    %420 = vector.shape_cast %411 : vector<8x16xf32> to vector<8x1x16xf32>
    %421 = vector.broadcast %420 : vector<8x1x16xf32> to vector<8x16x16xf32>
    %422 = arith.mulf %418, %421 : vector<8x16x16xf32>
    %cst_125 = arith.constant dense<0.000000e+00> : vector<8x16xf32>
    %423 = vector.multi_reduction <add>, %422, %cst_125 [2] : vector<8x16x16xf32> to vector<8x16xf32>
    %424 = arith.mulf %419, %411 : vector<8x16xf32>
    %cst_126 = arith.constant 1.000000e+00 : f32
    %425 = vector.broadcast %cst_126 : f32 to vector<8x16xf32>
    %426 = arith.addf %425, %424 : vector<8x16xf32>
    %427 = arith.cmpf ogt, %426, %423 : vector<8x16xf32>
    %428 = arith.extui %427 : vector<8x16xi1> to vector<8x16xi32>
    %429 = arith.sitofp %428 : vector<8x16xi32> to vector<8x16xf32>
    %cst_127 = arith.constant dense<0.000000e+00> : vector<8xf32>
    %430 = vector.multi_reduction <add>, %429, %cst_127 [1] : vector<8x16xf32> to vector<8xf32>
    %431 = vector.shape_cast %430 : vector<8xf32> to vector<8x1xf32>
    %432 = arith.mulf %411, %429 : vector<8x16xf32>
    %cst_128 = arith.constant dense<0.000000e+00> : vector<8xf32>
    %433 = vector.multi_reduction <add>, %432, %cst_128 [1] : vector<8x16xf32> to vector<8xf32>
    %434 = vector.shape_cast %433 : vector<8xf32> to vector<8x1xf32>
    %cst_129 = arith.constant 1.000000e+00 : f32
    %435 = vector.broadcast %cst_129 : f32 to vector<8x1xf32>
    %436 = arith.subf %434, %435 : vector<8x1xf32>
    %437 = arith.divf %436, %431 : vector<8x1xf32>
    %438 = vector.broadcast %437 : vector<8x1xf32> to vector<8x16xf32>
    %439 = arith.subf %411, %438 : vector<8x16xf32>
    %cst_130 = arith.constant 0.000000e+00 : f32
    %440 = vector.broadcast %cst_130 : f32 to vector<8x16xf32>
    %441 = arith.maximumf %439, %440 : vector<8x16xf32>
    %cst_131 = arith.constant 1.000000e-15 : f32
    %442 = vector.broadcast %cst_131 : f32 to vector<8x16xf32>
    %443 = arith.addf %441, %442 : vector<8x16xf32>
    %444 = math.log %443 : vector<8x16xf32>
    %445 = arith.mulf %441, %444 : vector<8x16xf32>
    %cst_132 = arith.constant dense<0.000000e+00> : vector<8xf32>
    %446 = vector.multi_reduction <add>, %445, %cst_132 [1] : vector<8x16xf32> to vector<8xf32>
    %447 = vector.shape_cast %446 : vector<8xf32> to vector<8x1xf32>
    %448 = arith.addf %301, %447 : vector<8x1xf32>
    %449 = arith.mulf %441, %15 : vector<8x16xf32>
    %c144 = arith.constant 144 : index
    %c0_133 = arith.constant 0 : index
    %450 = vector.load %arg2[%c144, %c0_133] : memref<184x32xf32, #tpu.memory_space<vmem>>, vector<16x32xf32>
    %c26 = arith.constant 26 : index
    %c0_134 = arith.constant 0 : index
    %451 = vector.load %arg2[%c26, %c0_134] : memref<184x32xf32, #tpu.memory_space<vmem>>, vector<1x32xf32>
    %c27 = arith.constant 27 : index
    %c0_135 = arith.constant 0 : index
    %452 = vector.load %arg2[%c27, %c0_135] : memref<184x32xf32, #tpu.memory_space<vmem>>, vector<1x32xf32>
    %cst_136 = arith.constant dense<0.000000e+00> : vector<8x32xf32>
    %453 = tpu.matmul %449, %450, %cst_136 {dimension_numbers = #tpu.dot_dimension_numbers<[1], [0], [0], [1], [0, 0, 1, 1], [], []>} : vector<8x16xf32>, vector<16x32xf32>, vector<8x32xf32> -> vector<8x32xf32>
    %cst_137 = arith.constant dense<0.000000e+00> : vector<32xf32>
    %454 = vector.multi_reduction <add>, %453, %cst_137 [0] : vector<8x32xf32> to vector<32xf32>
    %455 = vector.shape_cast %454 : vector<32xf32> to vector<1x32xf32>
    %cst_138 = arith.constant 8.000000e+00 : f32
    %456 = vector.broadcast %cst_138 : f32 to vector<1x32xf32>
    %457 = arith.divf %455, %456 : vector<1x32xf32>
    %458 = vector.broadcast %457 : vector<1x32xf32> to vector<8x32xf32>
    %459 = arith.subf %453, %458 : vector<8x32xf32>
    %460 = arith.mulf %459, %459 : vector<8x32xf32>
    %cst_139 = arith.constant dense<0.000000e+00> : vector<32xf32>
    %461 = vector.multi_reduction <add>, %460, %cst_139 [0] : vector<8x32xf32> to vector<32xf32>
    %462 = vector.shape_cast %461 : vector<32xf32> to vector<1x32xf32>
    %cst_140 = arith.constant 8.000000e+00 : f32
    %463 = vector.broadcast %cst_140 : f32 to vector<1x32xf32>
    %464 = arith.divf %462, %463 : vector<1x32xf32>
    %465 = vector.broadcast %457 : vector<1x32xf32> to vector<8x32xf32>
    %466 = arith.subf %453, %465 : vector<8x32xf32>
    %cst_141 = arith.constant 9.99999974E-6 : f32
    %467 = vector.broadcast %cst_141 : f32 to vector<1x32xf32>
    %468 = arith.addf %464, %467 : vector<1x32xf32>
    %469 = math.rsqrt %468 : vector<1x32xf32>
    %470 = vector.broadcast %469 : vector<1x32xf32> to vector<8x32xf32>
    %471 = arith.mulf %466, %470 : vector<8x32xf32>
    %472 = vector.broadcast %451 : vector<1x32xf32> to vector<8x32xf32>
    %473 = arith.mulf %471, %472 : vector<8x32xf32>
    %474 = vector.broadcast %452 : vector<1x32xf32> to vector<8x32xf32>
    %475 = arith.addf %473, %474 : vector<8x32xf32>
    %476 = vector.extract_strided_slice %475 {offsets = [0, 0], sizes = [8, 16], strides = [1, 1]} : vector<8x32xf32> to vector<8x16xf32>
    %477 = vector.extract_strided_slice %475 {offsets = [0, 16], sizes = [8, 16], strides = [1, 1]} : vector<8x32xf32> to vector<8x16xf32>
    %478 = arith.negf %477 : vector<8x16xf32>
    %479 = math.exp %478 : vector<8x16xf32>
    %cst_142 = arith.constant 1.000000e+00 : f32
    %480 = vector.broadcast %cst_142 : f32 to vector<8x16xf32>
    %481 = arith.addf %480, %479 : vector<8x16xf32>
    %482 = arith.divf %480, %481 : vector<8x16xf32>
    %483 = arith.mulf %476, %482 : vector<8x16xf32>
    %c160 = arith.constant 160 : index
    %c0_143 = arith.constant 0 : index
    %484 = vector.load %arg2[%c160, %c0_143] : memref<184x32xf32, #tpu.memory_space<vmem>>, vector<16x32xf32>
    %c28 = arith.constant 28 : index
    %c0_144 = arith.constant 0 : index
    %485 = vector.load %arg2[%c28, %c0_144] : memref<184x32xf32, #tpu.memory_space<vmem>>, vector<1x32xf32>
    %c29 = arith.constant 29 : index
    %c0_145 = arith.constant 0 : index
    %486 = vector.load %arg2[%c29, %c0_145] : memref<184x32xf32, #tpu.memory_space<vmem>>, vector<1x32xf32>
    %cst_146 = arith.constant dense<0.000000e+00> : vector<8x32xf32>
    %487 = tpu.matmul %483, %484, %cst_146 {dimension_numbers = #tpu.dot_dimension_numbers<[1], [0], [0], [1], [0, 0, 1, 1], [], []>} : vector<8x16xf32>, vector<16x32xf32>, vector<8x32xf32> -> vector<8x32xf32>
    %cst_147 = arith.constant dense<0.000000e+00> : vector<32xf32>
    %488 = vector.multi_reduction <add>, %487, %cst_147 [0] : vector<8x32xf32> to vector<32xf32>
    %489 = vector.shape_cast %488 : vector<32xf32> to vector<1x32xf32>
    %cst_148 = arith.constant 8.000000e+00 : f32
    %490 = vector.broadcast %cst_148 : f32 to vector<1x32xf32>
    %491 = arith.divf %489, %490 : vector<1x32xf32>
    %492 = vector.broadcast %491 : vector<1x32xf32> to vector<8x32xf32>
    %493 = arith.subf %487, %492 : vector<8x32xf32>
    %494 = arith.mulf %493, %493 : vector<8x32xf32>
    %cst_149 = arith.constant dense<0.000000e+00> : vector<32xf32>
    %495 = vector.multi_reduction <add>, %494, %cst_149 [0] : vector<8x32xf32> to vector<32xf32>
    %496 = vector.shape_cast %495 : vector<32xf32> to vector<1x32xf32>
    %cst_150 = arith.constant 8.000000e+00 : f32
    %497 = vector.broadcast %cst_150 : f32 to vector<1x32xf32>
    %498 = arith.divf %496, %497 : vector<1x32xf32>
    %499 = vector.broadcast %491 : vector<1x32xf32> to vector<8x32xf32>
    %500 = arith.subf %487, %499 : vector<8x32xf32>
    %cst_151 = arith.constant 9.99999974E-6 : f32
    %501 = vector.broadcast %cst_151 : f32 to vector<1x32xf32>
    %502 = arith.addf %498, %501 : vector<1x32xf32>
    %503 = math.rsqrt %502 : vector<1x32xf32>
    %504 = vector.broadcast %503 : vector<1x32xf32> to vector<8x32xf32>
    %505 = arith.mulf %500, %504 : vector<8x32xf32>
    %506 = vector.broadcast %485 : vector<1x32xf32> to vector<8x32xf32>
    %507 = arith.mulf %505, %506 : vector<8x32xf32>
    %508 = vector.broadcast %486 : vector<1x32xf32> to vector<8x32xf32>
    %509 = arith.addf %507, %508 : vector<8x32xf32>
    %510 = vector.extract_strided_slice %509 {offsets = [0, 0], sizes = [8, 16], strides = [1, 1]} : vector<8x32xf32> to vector<8x16xf32>
    %511 = vector.extract_strided_slice %509 {offsets = [0, 16], sizes = [8, 16], strides = [1, 1]} : vector<8x32xf32> to vector<8x16xf32>
    %512 = arith.negf %511 : vector<8x16xf32>
    %513 = math.exp %512 : vector<8x16xf32>
    %cst_152 = arith.constant 1.000000e+00 : f32
    %514 = vector.broadcast %cst_152 : f32 to vector<8x16xf32>
    %515 = arith.addf %514, %513 : vector<8x16xf32>
    %516 = arith.divf %514, %515 : vector<8x16xf32>
    %517 = arith.mulf %510, %516 : vector<8x16xf32>
    %518 = arith.addf %483, %517 : vector<8x16xf32>
    %cst_153 = arith.constant 0.707106769 : f32
    %519 = vector.broadcast %cst_153 : f32 to vector<8x16xf32>
    %520 = arith.mulf %518, %519 : vector<8x16xf32>
    %521 = vector.extract_strided_slice %520 {offsets = [0, 0], sizes = [8, 8], strides = [1, 1]} : vector<8x16xf32> to vector<8x8xf32>
    %cst_154 = arith.constant 0.000000e+00 : f32
    %522 = vector.broadcast %cst_154 : f32 to vector<8x8xf32>
    %523 = arith.maximumf %521, %522 : vector<8x8xf32>
    %524 = tpu.concatenate %232, %379, %523, %448 in 1 : vector<8x8xf32>, vector<8x8xf32>, vector<8x8xf32>, vector<8x1xf32> -> vector<8x25xf32>
    %cst_155 = arith.constant 0.000000e+00 : f32
    %525 = vector.broadcast %cst_155 : f32 to vector<8x103xf32>
    %526 = tpu.concatenate %524, %525 in 1 : vector<8x25xf32>, vector<8x103xf32> -> vector<8x128xf32>
    %c0_156 = arith.constant 0 : index
    %c0_157 = arith.constant 0 : index
    %527 = vector.load %arg4[%c0_156, %c0_157] : memref<8x128xf32, #tpu.memory_space<vmem>>, vector<8x128xf32>
    tpu.vector_store %arg4[%c0_156, %c0_157], %526 {strides = array<i32>} : memref<8x128xf32, #tpu.memory_space<vmem>>, vector<8x128xf32>,
    return
  }
  func.func @transform_0(%arg0: i32) -> (i32, i32) {
    %c0_i32 = arith.constant 0 : i32
    %c0_i32_0 = arith.constant 0 : i32
    return %arg0, %c0_i32 : i32, i32
  }
  func.func @transform_1(%arg0: i32) -> (i32, i32) {
    %c0_i32 = arith.constant 0 : i32
    %c0_i32_0 = arith.constant 0 : i32
    %c0_i32_1 = arith.constant 0 : i32
    return %c0_i32, %c0_i32_0 : i32, i32
  }
  func.func @transform_2(%arg0: i32) -> (i32, i32) {
    %c0_i32 = arith.constant 0 : i32
    %c0_i32_0 = arith.constant 0 : i32
    %c0_i32_1 = arith.constant 0 : i32
    return %c0_i32, %c0_i32_0 : i32, i32
  }
  func.func @transform_3(%arg0: i32) -> (i32, i32) {
    %c0_i32 = arith.constant 0 : i32
    %c0_i32_0 = arith.constant 0 : i32
    return %arg0, %c0_i32 : i32, i32
  }
}

</mosaic_0001>

<bundles_post_ra>
// kernel: encoder_forward.1
= control target key start
LH: loop header
LB: loop body
LE: loop exit
PB: predicated region body
PF: predicated region fallthrough
CT: control target
= control target key end

     0   :  { %vm42_vm3 = vcmask 130048   ;;  %v3223_v20 = vmov 8.0   ;;  %vm66_vm4 = vcmask 261120   ;;  %s3224_s30 = smov 112   ;;  %s3225_s12 = smov 120   ;;  %s4265_s1 = inlined_call_operand.vmem [shape: f32[184,32], index: 1, kind: input, shape index: {}]   ;;  %s4266_s2 = inlined_call_operand.vmem [shape: f32[2,16], index: 2, kind: input, shape index: {}]   ;;  %s4267_s0 = inlined_call_operand.vmem [shape: f32[8,16], index: 0, kind: input, shape index: {}]   ;;  %s4268_s3 = inlined_call_operand.vmem [shape: f32[8,128], index: 3, kind: output, shape index: {}]  }
   0x1   :  { %v39_v0 = vld [vmem:[%s4265_s1 + $0x28] sm:$0xff]  ;;  %v38_v1 = vld [vmem:[%s4265_s1 + $0x20] sm:$0xff]  ;;  %v133_v58 = vld [vmem:[%s4265_s1 + $0x38] sm:$0xff]  ;;  %s3228_s5 = smov 8  }
   0x2   :  { %60 = vmatpush.msra.mxu0 %v39_v0  ;;  %v16_v2 = vld [vmem:[%s4266_s2 + $0x1] sm:$0x1]  ;;  %v3128_v8 = vld [vmem:[%s4266_s2] ss:$0 sm:$0xff]  ;;  %v3131_v53 = vld [vmem:[%s4265_s1 + $0x4] ss:$0 sm:$0xff]  ;;  %153 = vmatpush.msra.mxu1 %v133_v58 }
   0x3   :  { %v19_v3 = vadd.f32 1e-05, %v16_v2  ;;  %v14_v9 = vld [vmem:[%s4267_s0] sm:$0xff] }
   0x4   :  { %61 = vmatpush.msra.mxu0 %v38_v1  ;;  %v18_v12 = vsub.f32 %v14_v9, %v3128_v8  ;;  %v3129_v15 = vld [vmem:[%s4265_s1] ss:$0 sm:$0xff]  ;;  %v3130_v17 = vld [vmem:[%s4265_s1 + $0x1] ss:$0 sm:$0xff]  ;;  %v3132_v56 = vld [vmem:[%s4265_s1 + $0x5] ss:$0 sm:$0xff] }
   0x5   :  { %3153 = vrsqrt.f32 %v19_v3  ;;  %vm26_vm0 = vweird.f32 %v19_v3  ;;  %v132_v9 = vld [vmem:[%s4265_s1 + $0x30] sm:$0xff] }
   0x6   :  { %3155 = vrcp.f32 %v3223_v20  ;;  %154 = vmatpush.msra.mxu1 %v132_v9 }
   0xb   :  { %v3154_v4 = vpop.eup %3153 }
   0xc   :  { %v21_v5 = vmul.f32 %v3154_v4, %v19_v3  ;;  %vm27_vm1 = vweird.f32 %v3154_v4  ;;  %v3156_v21 = vpop.eup %3155 }
   0xd   :  { %vm28_vm2 = vmor %vm26_vm0, %vm27_vm1  ;;  %v75_v22 = vmul.f32 8.0, %v3156_v21  ;;  %vm79_vm5 = vweird.f32 %v3156_v21 }
   0xe   :  { %v22_v6 = vmul.f32 %v3154_v4, %v21_v5 }
   0xf   :  { %v76_v23 = vsub.f32 1.0, %v75_v22 }
  0x10   :  { %v23_v7 = vmul.f32 0.5, %v22_v6 }
  0x11   :  { %v77_v27 = vmul.f32 %v3156_v21, %v76_v23 }
  0x12   :  { %v24_v10 = vsub.f32 1.5, %v23_v7 }
  0x13   :  { %v78_v30 = vadd.f32 %v3156_v21, %v77_v27 }
  0x14   :  { %v25_v11 = vmul.f32 %v3154_v4, %v24_v10 }
  0x15   :  { %v3276_v33 = vsel %vm79_vm5, %v3156_v21, %v78_v30 }
  0x16   :  { %v29_v13 = vsel %vm28_vm2, %v3154_v4, %v25_v11 }
  0x17   :  { %v30_v14 = vperm.slane %v29_v13, 0 }
  0x19   :  { %v31_v16 = vmul.f32 %v30_v14, %v18_v12 }
  0x1b   :  { %v34_v18 = vmul.f32 %v3129_v15, %v31_v16 }
  0x1d   :  { %v3271_v19 = vadd.f32 %v3130_v17, %v34_v18 }
  0x1f   :  { %2823 = vmatmul.msk.f32.vlgmr.msra.gmra.mxu0 %vm42_vm3, %v3271_v19 }
  0x9c   :  { %v63_v24 = vpop.f32.mrf.mxu0 }
  0x9d   :  { %v67_v25 = vsel %vm66_vm4, %v63_v24, 0.0 }
  0x9e   :  { %v68_v26 = vrot.slane %v67_v25, 4 }
  0xa0   :  { %v69_v28 = vadd.f32 %v68_v26, %v67_v25 }
  0xa2   :  { %v70_v29 = vrot.slane %v69_v28, 2 }
  0xa4   :  { %v71_v31 = vadd.f32 %v70_v29, %v69_v28 }
  0xa6   :  { %v72_v32 = vrot.slane %v71_v31, 1 }
  0xa8   :  { %v73_v34 = vadd.f32 %v72_v32, %v71_v31 }
  0xaa   :  { %v81_v35 = vmul.f32 %v3276_v33, %v73_v34 }
  0xac   :  { %v82_v36 = vsub.f32 %v63_v24, %v81_v35 }
  0xae   :  { %v83_v37 = vmul.f32 %v82_v36, %v82_v36 }
  0xb0   :  { %v84_v38 = vsel %vm66_vm4, %v83_v37, 0.0 }
  0xb1   :  { %v85_v39 = vrot.slane %v84_v38, 4 }
  0xb3   :  { %v86_v40 = vadd.f32 %v85_v39, %v84_v38 }
  0xb5   :  { %v87_v41 = vrot.slane %v86_v40, 2 }
  0xb7   :  { %v88_v42 = vadd.f32 %v87_v41, %v86_v40  ;;  %v3133_v40 = vld [vmem:[%s4265_s1 + $0x6] ss:$0 sm:$0xff] }
  0xb9   :  { %v89_v43 = vrot.slane %v88_v42, 1 }
  0xbb   :  { %v90_v44 = vadd.f32 %v89_v43, %v88_v42  ;;  %v3134_v43 = vld [vmem:[%s4265_s1 + $0x7] ss:$0 sm:$0xff] }
  0xbd   :  { %v91_v45 = vmul.f32 %v90_v44, %v3276_v33 }
  0xbf   :  { %v92_v46 = vadd.f32 1e-05, %v91_v45 }
  0xc1   :  { %3157 = vrsqrt.f32 %v92_v46  ;;  %vm99_vm7 = vweird.f32 %v92_v46 }
  0xc7   :  { %v3158_v47 = vpop.eup %3157 }
  0xc8   :  { %v94_v48 = vmul.f32 %v3158_v47, %v92_v46  ;;  %vm100_vm6 = vweird.f32 %v3158_v47 }
  0xc9   :  { %vm101_vm8 = vmor %vm99_vm7, %vm100_vm6  ;;  %vm223_vm6 = vcmask 64512  }
  0xca   :  { %v95_v49 = vmul.f32 %v3158_v47, %v94_v48 }
  0xcc   :  { %v96_v50 = vmul.f32 0.5, %v95_v49 }
  0xce   :  { %v97_v51 = vsub.f32 1.5, %v96_v50 }
  0xd0   :  { %v98_v52 = vmul.f32 %v3158_v47, %v97_v51 }
  0xd2   :  { %v102_v54 = vsel %vm101_vm8, %v3158_v47, %v98_v52 }
  0xd3   :  { %v103_v55 = vmul.f32 %v102_v54, %v82_v36 }
  0xd5   :  { %v105_v57 = vmul.f32 %v3131_v53, %v103_v55 }
  0xd7   :  { %v107_v59 = vadd.f32 %v3132_v56, %v105_v57 }
  0xd9   :  { %v2824_v60 = vmul.f32 -1.442695, %v107_v59 }
  0xdb   :  { %3159 = vpow2.f32 %v2824_v60 }
  0xe1   :  { %v3160_v61 = vpop.eup %3159 }
  0xe2   :  { %v111_v62 = vadd.f32 1.0, %v3160_v61 }
  0xe4   :  { %3161 = vrcp.f32 %v111_v62  ;;  %v123_v2 = vand.u32 2147483648, %v111_v62  ;;  %v121_v4 = vand.u32 2147483647, %v111_v62  ;;  %vm117_vm10 = vweird.f32 %v111_v62 }
  0xe6   :  { %v124_v6 = vor.u32 1.1754944e-38, %v123_v2  ;;  %vm122_vm12 = vcmp.eq.f32.partialorder %v121_v4, 8.507059e+37 }
  0xea   :  { %v3162_v63 = vpop.eup %3161 }
  0xeb   :  { %v113_v0 = vmul.f32 %v3162_v63, %v111_v62  ;;  %vm118_vm9 = vweird.f32 %v3162_v63 }
  0xec   :  { %vm119_vm11 = vmor %vm117_vm10, %vm118_vm9 }
  0xed   :  { %v114_v1 = vsub.f32 1.0, %v113_v0 }
  0xef   :  { %v115_v3 = vmul.f32 %v3162_v63, %v114_v1 }
  0xf1   :  { %v116_v5 = vadd.f32 %v3162_v63, %v115_v3 }
  0xf3   :  { %v120_v7 = vsel %vm119_vm11, %v3162_v63, %v116_v5 }
  0xf4   :  { %v125_v8 = vsel %vm122_vm12, %v124_v6, %v120_v7 }
  0xf5   :  { %128 = vrot.lane.b32.xlu0 %v125_v8, %s3224_s30 }
 0x167   :  { %v129_v10 = vpop.permute.xlu0 %128 }
 0x168   :  { %v131_v11 = vmul.f32 %v129_v10, %v107_v59  ;;  %v219_v59 = vld [vmem:[%s4265_s1 + $0x60] sm:$0xff] }
 0x169   :  { %241 = vmatpush.msra.mxu2 %v219_v59 }
 0x16a   :  { %2825 = vmatmul.msk.f32.vlgmr.msra.gmra.mxu1 %vm42_vm3, %v131_v11 }
 0x1e7   :  { %v156_v12 = vpop.f32.mrf.mxu1 }
 0x1e8   :  { %v159_v13 = vsel %vm66_vm4, %v156_v12, 0.0 }
 0x1e9   :  { %v160_v14 = vrot.slane %v159_v13, 4 }
 0x1eb   :  { %v161_v15 = vadd.f32 %v160_v14, %v159_v13 }
 0x1ed   :  { %v162_v16 = vrot.slane %v161_v15, 2 }
 0x1ef   :  { %v163_v17 = vadd.f32 %v162_v16, %v161_v15 }
 0x1f1   :  { %v164_v18 = vrot.slane %v163_v17, 1 }
 0x1f3   :  { %v165_v20 = vadd.f32 %v164_v18, %v163_v17  ;;  %v295_v18 = vlaneseq }
 0x1f5   :  { %v166_v21 = vmul.f32 %v165_v20, %v3276_v33 }
 0x1f7   :  { %v167_v22 = vsub.f32 %v156_v12, %v166_v21  ;;  %v3315_v21 = vshrl.u32 %v295_v18, 7 }
 0x1f9   :  { %v168_v23 = vmul.f32 %v167_v22, %v167_v22  ;;  %2955 = vset.pattern.permute.xlu1 %v3315_v21  ;;  %2950 = vset.pattern.permute.xlu0 %v3315_v21 }
 0x1fa   :  { %2948 = vset.pattern.permute.xlu2 %v3315_v21 }
 0x1fb   :  { %v169_v24 = vsel %vm66_vm4, %v168_v23, 0.0 }
 0x1fc   :  { %v170_v25 = vrot.slane %v169_v24, 4 }
 0x1fe   :  { %v171_v26 = vadd.f32 %v170_v25, %v169_v24 }
 0x200   :  { %v172_v27 = vrot.slane %v171_v26, 2 }
 0x202   :  { %v173_v28 = vadd.f32 %v172_v27, %v171_v26 }
 0x204   :  { %v174_v29 = vrot.slane %v173_v28, 1 }
 0x206   :  { %v175_v30 = vadd.f32 %v174_v29, %v173_v28 }
 0x208   :  { %v176_v31 = vmul.f32 %v175_v30, %v3276_v33  ;;  %v3135_v30 = vld [vmem:[%s4265_s1 + $0x8] ss:$0 sm:$0xff] }
 0x20a   :  { %v177_v32 = vadd.f32 1e-05, %v176_v31 }
 0x20c   :  { %3163 = vrsqrt.f32 %v177_v32  ;;  %vm184_vm14 = vweird.f32 %v177_v32 }
 0x212   :  { %v3164_v34 = vpop.eup %3163 }
 0x213   :  { %v179_v35 = vmul.f32 %v3164_v34, %v177_v32  ;;  %vm185_vm13 = vweird.f32 %v3164_v34 }
 0x214   :  { %vm186_vm15 = vmor %vm184_vm14, %vm185_vm13 }
 0x215   :  { %v180_v36 = vmul.f32 %v3164_v34, %v179_v35 }
 0x217   :  { %v181_v37 = vmul.f32 0.5, %v180_v36 }
 0x219   :  { %v182_v38 = vsub.f32 1.5, %v181_v37 }
 0x21b   :  { %v183_v39 = vmul.f32 %v3164_v34, %v182_v38 }
 0x21d   :  { %v187_v41 = vsel %vm186_vm15, %v3164_v34, %v183_v39  ;;  %v3136_v34 = vld [vmem:[%s4265_s1 + $0x9] ss:$0 sm:$0xff] }
 0x21e   :  { %v188_v42 = vmul.f32 %v187_v41, %v167_v22 }
 0x220   :  { %v190_v44 = vmul.f32 %v3133_v40, %v188_v42 }
 0x222   :  { %v192_v45 = vadd.f32 %v3134_v43, %v190_v44  ;;  %v3340_v43 = vadd.s32 8, %v3315_v21 }
 0x224   :  { %v2826_v46 = vmul.f32 -1.442695, %v192_v45 }
 0x226   :  { %3165 = vpow2.f32 %v2826_v46 }
 0x22c   :  { %v3166_v47 = vpop.eup %3165 }
 0x22d   :  { %v196_v48 = vadd.f32 1.0, %v3166_v47 }
 0x22f   :  { %3167 = vrcp.f32 %v196_v48  ;;  %v208_v52 = vand.u32 2147483648, %v196_v48  ;;  %v206_v54 = vand.u32 2147483647, %v196_v48  ;;  %vm202_vm1 = vweird.f32 %v196_v48 }
 0x231   :  { %v209_v56 = vor.u32 1.1754944e-38, %v208_v52  ;;  %vm207_vm5 = vcmp.eq.f32.partialorder %v206_v54, 8.507059e+37 }
 0x235   :  { %v3168_v49 = vpop.eup %3167 }
 0x236   :  { %v198_v50 = vmul.f32 %v3168_v49, %v196_v48  ;;  %vm203_vm0 = vweird.f32 %v3168_v49 }
 0x237   :  { %vm204_vm2 = vmor %vm202_vm1, %vm203_vm0 }
 0x238   :  { %v199_v51 = vsub.f32 1.0, %v198_v50  ;;  %v3226_v50 = vmov 0.0  }
 0x23a   :  { %v200_v53 = vmul.f32 %v3168_v49, %v199_v51 }
 0x23c   :  { %v201_v55 = vadd.f32 %v3168_v49, %v200_v53 }
 0x23e   :  { %v205_v57 = vsel %vm204_vm2, %v3168_v49, %v201_v55 }
 0x23f   :  { %v210_v58 = vsel %vm207_vm5, %v209_v56, %v205_v57 }
 0x240   :  { %213 = vrot.lane.b32.xlu0 %v210_v58, %s3224_s30 }
 0x2b2   :  { %v214_v60 = vpop.permute.xlu0 %213 }
 0x2b3   :  { %v216_v61 = vmul.f32 %v214_v60, %v192_v45 }
 0x2b5   :  { %v217_v62 = vadd.f32 %v216_v61, %v131_v11 }
 0x2b7   :  { %v218_v63 = vmul.f32 0.70710677, %v217_v62 }
 0x2b9   :  { %221 = vrot.lane.b32.xlu1 %v218_v63, %s3225_s12 }
 0x32b   :  { %v222_v0 = vpop.permute.xlu1 %221 }
 0x32c   :  { %2827 = vmatmul.msk.f32.vlgmr.msra.gmra.mxu2 %vm223_vm6, %v222_v0 }
 0x3af   :  { %v243_v1 = vpop.f32.mrf.mxu2 }
 0x3b0   :  { %v248_v2 = vsel %vm42_vm3, %v243_v1, 0.0 }
 0x3b1   :  { %v249_v3 = vrot.slane %v248_v2, 4 }
 0x3b3   :  { %v250_v4 = vadd.f32 %v249_v3, %v248_v2 }
 0x3b5   :  { %v251_v5 = vrot.slane %v250_v4, 2 }
 0x3b7   :  { %v252_v6 = vadd.f32 %v251_v5, %v250_v4 }
 0x3b9   :  { %v253_v7 = vrot.slane %v252_v6, 1 }
 0x3bb   :  { %v254_v8 = vadd.f32 %v253_v7, %v252_v6 }
 0x3bd   :  { %v255_v9 = vmul.f32 %v254_v8, %v3276_v33 }
 0x3bf   :  { %v256_v10 = vsub.f32 %v243_v1, %v255_v9 }
 0x3c1   :  { %v257_v11 = vmul.f32 %v256_v10, %v256_v10 }
 0x3c3   :  { %v258_v12 = vsel %vm42_vm3, %v257_v11, 0.0 }
 0x3c4   :  { %v259_v13 = vrot.slane %v258_v12, 4 }
 0x3c6   :  { %v260_v14 = vadd.f32 %v259_v13, %v258_v12 }
 0x3c8   :  { %v261_v15 = vrot.slane %v260_v14, 2 }
 0x3ca   :  { %v262_v16 = vadd.f32 %v261_v15, %v260_v14 }
 0x3cc   :  { %v263_v17 = vrot.slane %v262_v16, 1 }
 0x3ce   :  { %v264_v20 = vadd.f32 %v263_v17, %v262_v16 }
 0x3d0   :  { %v265_v22 = vmul.f32 %v264_v20, %v3276_v33 }
 0x3d2   :  { %v266_v23 = vadd.f32 1e-05, %v265_v22 }
 0x3d4   :  { %3169 = vrsqrt.f32 %v266_v23  ;;  %vm273_vm8 = vweird.f32 %v266_v23 }
 0x3da   :  { %v3170_v24 = vpop.eup %3169 }
 0x3db   :  { %v268_v25 = vmul.f32 %v3170_v24, %v266_v23  ;;  %vm274_vm7 = vweird.f32 %v3170_v24 }
 0x3dc   :  { %vm275_vm9 = vmor %vm273_vm8, %vm274_vm7 }
 0x3dd   :  { %v269_v26 = vmul.f32 %v3170_v24, %v268_v25 }
 0x3df   :  { %v270_v27 = vmul.f32 0.5, %v269_v26 }
 0x3e1   :  { %v271_v28 = vsub.f32 1.5, %v270_v27 }
 0x3e3   :  { %v272_v29 = vmul.f32 %v3170_v24, %v271_v28 }
 0x3e5   :  { %v276_v31 = vsel %vm275_vm9, %v3170_v24, %v272_v29 }
 0x3e6   :  { %v277_v32 = vmul.f32 %v276_v31, %v256_v10 }
 0x3e8   :  { %v279_v35 = vmul.f32 %v3135_v30, %v277_v32 }
 0x3ea   :  { %v281_v36 = vadd.f32 %v3136_v34, %v279_v35 }
 0x3ec   :  { %v282_v37 = vsel %vm42_vm3, %v281_v36, -inf }
 0x3ed   :  { %283 = vmax.xlane.f32.xlu1 %v282_v37 }
 0x460   :  { %v284_v38 = vpop.xlane.xlu1 %283 }
 0x461   :  { %v3328_v39 = vsub.f32 %v281_v36, %v284_v38 }
 0x463   :  { %v3331_v40 = vperm.slane %v3328_v39, 5  ;;  %v307_v41 = vperm.slane %v3328_v39, 1  ;;  %v3335_v42 = vperm.slane %v3328_v39, 0  ;;  %v320_v44 = vperm.slane %v3328_v39, 2 }
 0x464   :  { %v333_v45 = vperm.slane %v3328_v39, 3  ;;  %v346_v46 = vperm.slane %v3328_v39, 4  ;;  %v372_v47 = vperm.slane %v3328_v39, 6  ;;  %v385_v48 = vperm.slane %v3328_v39, 7 }
 0x465   :  { %364 = vperm.xlu1 %2955, %v3331_v40   ;;  %312 = vperm.xlu0 %2950, %v307_v41   ;;  %v287_v54 = vrot.slane %v3328_v39, 1  ;;  %v289_v62 = vrot.slane %v3328_v39, 3  ;;  %v290_v3 = vrot.slane %v3328_v39, 4  ;;  %v292_v15 = vrot.slane %v3328_v39, 6 }
 0x466   :  { %299 = vperm.xlu2 %2948, %v3335_v42   ;;  %v288_v22 = vrot.slane %v3328_v39, 2  ;;  %v293_v34 = vrot.slane %v3328_v39, 7 }
 0x467   :  { %v399_v55 = vperm.slane %v287_v54, 0  ;;  %v401_v0 = vperm.slane %v289_v62, 0  ;;  %v3385_v6 = vperm.slane %v290_v3, 0  ;;  %v3394_v16 = vperm.slane %v292_v15, 0 }
 0x468   :  { %v400_v25 = vperm.slane %v288_v22, 0  ;;  %v405_v38 = vperm.slane %v293_v34, 0 }
 0x46d   :  { %2952 = vset.pattern.permute.xlu0 %v3340_v43  ;;  %578 = vperm.xlu1 %2955, %v3335_v42  }
 0x46e   :  { %2949 = vset.pattern.permute.xlu2 %v3340_v43 }
 0x475   :  { %331 = vperm.xlu0 %2952, %v320_v44   ;;  %2960 = vset.pattern.permute.xlu1 %v3340_v43 }
 0x476   :  { %305 = vperm.xlu2 %2949, %v3335_v42  }
 0x47d   :  { %2954 = vset.pattern.permute.xlu0 %v3315_v21  ;;  %623 = vperm.xlu1 %2960, %v333_v45  }
 0x47e   :  { %318 = vperm.xlu2 %2949, %v307_v41  }
 0x485   :  { %351 = vperm.xlu0 %2954, %v346_v46   ;;  %2963 = vset.pattern.permute.xlu1 %v3315_v21 }
 0x486   :  { %2951 = vset.pattern.permute.xlu2 %v3315_v21 }
 0x48d   :  { %377 = vperm.xlu0 %2954, %v372_v47   ;;  %643 = vperm.xlu1 %2963, %v3331_v40  }
 0x48e   :  { %325 = vperm.xlu2 %2951, %v320_v44  }
 0x495   :  { %390 = vperm.xlu0 %2954, %v385_v48   ;;  %656 = vperm.xlu1 %2963, %v372_v47  }
 0x496   :  { %338 = vperm.xlu2 %2951, %v333_v45  }
 0x49d   :  { %591 = vperm.xlu0 %2954, %v307_v41  }
 0x49e   :  { %2953 = vset.pattern.permute.xlu2 %v3340_v43 }
 0x4a5   :  { %2956 = vset.pattern.permute.xlu0 %v3340_v43 }
 0x4a6   :  { %344 = vperm.xlu2 %2953, %v333_v45  }
 0x4ad   :  { %597 = vperm.xlu0 %2956, %v307_v41  }
 0x4ae   :  { %357 = vperm.xlu2 %2953, %v346_v46  }
 0x4b5   :  { %2957 = vset.pattern.permute.xlu0 %v3315_v21 }
 0x4b6   :  { %370 = vperm.xlu2 %2953, %v3331_v40  }
 0x4bd   :  { %604 = vperm.xlu0 %2957, %v320_v44  }
 0x4be   :  { %383 = vperm.xlu2 %2953, %v372_v47  }
 0x4c0   :  { %v300_v49 = vpop.permute.xlu2 %299 }
 0x4c1   :  { %vm414_vm10 = vcmp.ge.f32.partialorder %v3335_v42, %v300_v49 }
 0x4c2   :  { %v3362_v51 = vsel %vm414_vm10, 1.0, %v3226_v50 }
 0x4c3   :  { %v462_v52 = vsel %vm42_vm3, %v3362_v51, 0.0  ;;  %v510_v54 = vmul.f32 %v3362_v51, %v3335_v42 }
 0x4c4   :  { %463 = vadd.xlane.f32.xlu1 %v462_v52 }
 0x4c5   :  { %2958 = vset.pattern.permute.xlu0 %v3340_v43  ;;  %v526_v62 = vsel %vm42_vm3, %v510_v54, 0.0 }
 0x4c6   :  { %396 = vperm.xlu2 %2953, %v385_v48  }
 0x4cd   :  { %610 = vperm.xlu0 %2958, %v320_v44  }
 0x4ce   :  { %584 = vperm.xlu2 %2953, %v3335_v42  }
 0x4d0   :  { %v306_v53 = vpop.permute.xlu2 %305 }
 0x4d1   :  { %vm415_vm1 = vcmp.ge.f32.partialorder %v3335_v42, %v306_v53 }
 0x4d2   :  { %v3407_v28 = vsel %vm415_vm1, 1.0, %v3226_v50 }
 0x4d3   :  { %v465_v31 = vsel %vm42_vm3, %v3407_v28, 0.0 }
 0x4d5   :  { %2959 = vset.pattern.permute.xlu0 %v3315_v21 }
 0x4d6   :  { %2961 = vset.pattern.permute.xlu2 %v3315_v21 }
 0x4d7   :  { %v313_v60 = vpop.permute.xlu0 %312 }
 0x4d8   :  { %v319_v56 = vpop.permute.xlu2 %318  ;;  %vm416_vm15 = vcmp.ge.f32.partialorder %v399_v55, %v313_v60  ;;  %v365_v60 = vpop.permute.xlu1 %364 }
 0x4d9   :  { %vm417_vm11 = vcmp.ge.f32.partialorder %v399_v55, %v319_v56  ;;  %v2830_v24 = vsel %vm416_vm15, 1.0, %v3226_v50 }
 0x4da   :  { %v2831_v57 = vsel %vm417_vm11, 1.0, %v3226_v50  ;;  %v512_v26 = vmul.f32 %v2830_v24, %v399_v55  ;;  %v468_v30 = vsel %vm42_vm3, %v2830_v24, 0.0 }
 0x4db   :  { %v471_v58 = vsel %vm42_vm3, %v2831_v57, 0.0  ;;  %v3373_v59 = vmul.f32 %v2831_v57, %v399_v55 }
 0x4dc   :  { %472 = vadd.xlane.f32.xlu1 %v471_v58  ;;  %v532_v27 = vsel %vm42_vm3, %v512_v26, 0.0 }
 0x4dd   :  { %617 = vperm.xlu0 %2959, %v333_v45   ;;  %v291_v45 = vrot.slane %v3328_v39, 5 }
 0x4de   :  { %630 = vperm.xlu2 %2961, %v346_v46  }
 0x4df   :  { %v3423_v52 = vperm.slane %v291_v45, 0 }
 0x4e1   :  { %vm424_vm10 = vcmp.ge.f32.partialorder %v3423_v52, %v365_v60 }
 0x4e5   :  { %2962 = vset.pattern.permute.xlu0 %v3340_v43 }
 0x4e6   :  { %2964 = vset.pattern.permute.xlu2 %v3340_v43 }
 0x4e7   :  { %v332_v63 = vpop.permute.xlu0 %331 }
 0x4e8   :  { %v326_v61 = vpop.permute.xlu2 %325  ;;  %vm419_vm5 = vcmp.ge.f32.partialorder %v400_v25, %v332_v63 }
 0x4e9   :  { %vm418_vm2 = vcmp.ge.f32.partialorder %v400_v25, %v326_v61  ;;  %v2833_v36 = vsel %vm419_vm5, 1.0, %v3226_v50 }
 0x4ea   :  { %v2832_v29 = vsel %vm418_vm2, 1.0, %v3226_v50  ;;  %v477_v41 = vsel %vm42_vm3, %v2833_v36, 0.0  ;;  %v515_v44 = vmul.f32 %v2833_v36, %v400_v25  ;;  %v535_v36 = vsel %vm42_vm3, %v3373_v59, 0.0 }
 0x4eb   :  { %v514_v32 = vmul.f32 %v2832_v29, %v400_v25 }
 0x4ed   :  { %636 = vperm.xlu0 %2962, %v346_v46   ;;  %v538_v35 = vsel %vm42_vm3, %v514_v32, 0.0  ;;  %v541_v46 = vsel %vm42_vm3, %v515_v44, 0.0 }
 0x4ee   :  { %662 = vperm.xlu2 %2964, %v372_v47  }
 0x4f0   :  { %v339_v1 = vpop.permute.xlu2 %338 }
 0x4f1   :  { %vm420_vm12 = vcmp.ge.f32.partialorder %v401_v0, %v339_v1  ;;  %v2838_v1 = vsel %vm424_vm10, 1.0, %v3226_v50 }
 0x4f2   :  { %v2834_v2 = vsel %vm420_vm12, 1.0, %v3226_v50  ;;  %v492_v3 = vsel %vm42_vm3, %v2838_v1, 0.0 }
 0x4f3   :  { %v480_v4 = vsel %vm42_vm3, %v2834_v2, 0.0  ;;  %v3381_v5 = vmul.f32 %v2834_v2, %v401_v0 }
 0x4f4   :  { %481 = vadd.xlane.f32.xlu1 %v480_v4 }
 0x4f5   :  { %649 = vperm.xlu0 %2962, %v3331_v40   ;;  %v474_v40 = vsel %vm42_vm3, %v2832_v29, 0.0  ;;  %v511_v29 = vmul.f32 %v3407_v28, %v3335_v42 }
 0x4f6   :  { %2965 = vset.pattern.permute.xlu2 %v3315_v21 }
 0x4f7   :  { %v352_v7 = vpop.permute.xlu0 %351  ;;  %v529_v32 = vsel %vm42_vm3, %v511_v29, 0.0 }
 0x4f8   :  { %vm422_vm13 = vcmp.ge.f32.partialorder %v3385_v6, %v352_v7 }
 0x4f9   :  { %v2836_v8 = vsel %vm422_vm13, 1.0, %v3226_v50 }
 0x4fa   :  { %v486_v9 = vsel %vm42_vm3, %v2836_v8, 0.0  ;;  %v518_v53 = vmul.f32 %v2836_v8, %v3385_v6 }
 0x4fc   :  { %487 = vadd.xlane.f32.xlu1 %v486_v9  ;;  %v550_v55 = vsel %vm42_vm3, %v518_v53, 0.0  ;;  %v3447_v9 = vpop.permute.xlu1 %578 }
 0x4fd   :  { %675 = vperm.xlu0 %2962, %v385_v48  }
 0x4fe   :  { %669 = vperm.xlu2 %2965, %v385_v48  }
 0x4ff   :  { %v378_v57 = vpop.permute.xlu0 %377 }
 0x500   :  { %v345_v10 = vpop.permute.xlu2 %344  ;;  %vm426_vm11 = vcmp.ge.f32.partialorder %v3394_v16, %v378_v57 }
 0x501   :  { %vm421_vm14 = vcmp.ge.f32.partialorder %v401_v0, %v345_v10  ;;  %v2840_v7 = vsel %vm426_vm11, 1.0, %v3226_v50 }
 0x502   :  { %v2835_v11 = vsel %vm421_vm14, 1.0, %v3226_v50  ;;  %v498_v22 = vsel %vm42_vm3, %v2840_v7, 0.0 }
 0x503   :  { %v3391_v12 = vmul.f32 %v2835_v11, %v401_v0  ;;  %v483_v48 = vsel %vm42_vm3, %v2835_v11, 0.0 }
 0x505   :  { %v547_v44 = vsel %vm42_vm3, %v3391_v12, 0.0 }
 0x507   :  { %v391_v2 = vpop.permute.xlu0 %390 }
 0x508   :  { %v358_v13 = vpop.permute.xlu2 %357  ;;  %vm428_vm12 = vcmp.ge.f32.partialorder %v405_v38, %v391_v2 }
 0x509   :  { %vm423_vm8 = vcmp.ge.f32.partialorder %v3385_v6, %v358_v13  ;;  %v2842_v11 = vsel %vm428_vm12, 1.0, %v3226_v50 }
 0x50a   :  { %v2837_v56 = vsel %vm423_vm8, 1.0, %v3226_v50  ;;  %v524_v15 = vmul.f32 %v2842_v11, %v405_v38 }
 0x50b   :  { %v489_v61 = vsel %vm42_vm3, %v2837_v56, 0.0  ;;  %v519_v51 = vmul.f32 %v2837_v56, %v3385_v6  ;;  %v522_v6 = vmul.f32 %v2840_v7, %v3394_v16 }
 0x50d   :  { %v553_v4 = vsel %vm42_vm3, %v519_v51, 0.0 }
 0x510   :  { %v371_v14 = vpop.permute.xlu2 %370 }
 0x511   :  { %vm425_vm9 = vcmp.ge.f32.partialorder %v3423_v52, %v371_v14  ;;  %v562_v14 = vsel %vm42_vm3, %v522_v6, 0.0 }
 0x512   :  { %v2839_v58 = vsel %vm425_vm9, 1.0, %v3226_v50 }
 0x513   :  { %v521_v63 = vmul.f32 %v2839_v58, %v3423_v52  ;;  %v495_v13 = vsel %vm42_vm3, %v2839_v58, 0.0 }
 0x515   :  { %v559_v0 = vsel %vm42_vm3, %v521_v63, 0.0 }
 0x518   :  { %v384_v17 = vpop.permute.xlu2 %383 }
 0x519   :  { %vm427_vm0 = vcmp.ge.f32.partialorder %v3394_v16, %v384_v17  ;;  %v3453_v17 = vpop.permute.xlu1 %623 }
 0x51a   :  { %v3398_v20 = vsel %vm427_vm0, 1.0, %v3226_v50 }
 0x51b   :  { %v501_v23 = vsel %vm42_vm3, %v3398_v20, 0.0  ;;  %v523_v8 = vmul.f32 %v3398_v20, %v3394_v16  ;;  %v568_v20 = vsel %vm42_vm3, %v524_v15, 0.0  ;;  %v3456_v16 = vpop.permute.xlu0 %591 }
 0x51c   :  { %502 = vadd.xlane.f32.xlu1 %v501_v23 }
 0x51d   :  { %v565_v10 = vsel %vm42_vm3, %v523_v8, 0.0 }
 0x520   :  { %v397_v37 = vpop.permute.xlu2 %396 }
 0x521   :  { %vm429_vm7 = vcmp.ge.f32.partialorder %v405_v38, %v397_v37  ;;  %v3459_v24 = vpop.permute.xlu1 %643 }
 0x522   :  { %v2843_v47 = vsel %vm429_vm7, 1.0, %v3226_v50 }
 0x523   :  { %v507_v49 = vsel %vm42_vm3, %v2843_v47, 0.0  ;;  %v525_v23 = vmul.f32 %v2843_v47, %v405_v38  ;;  %v3462_v26 = vpop.permute.xlu0 %597 }
 0x524   :  { %533 = vadd.xlane.f32.xlu1 %v532_v27  ;;  %v504_v27 = vsel %vm42_vm3, %v2842_v11, 0.0 }
 0x525   :  { %v571_v25 = vsel %vm42_vm3, %v525_v23, 0.0 }
 0x527   :  { %469 = vadd.xlane.f32.xlu2 %v468_v30  ;;  %466 = vadd.xlane.f32.xlu0 %v465_v31 }
 0x528   :  { %v585_v42 = vpop.permute.xlu2 %584 }
 0x529   :  { %v3467_v30 = vpop.permute.xlu1 %656 }
 0x52c   :  { %539 = vadd.xlane.f32.xlu1 %v538_v35 }
 0x52f   :  { %475 = vadd.xlane.f32.xlu2 %v474_v40  ;;  %478 = vadd.xlane.f32.xlu0 %v477_v41  ;;  %v605_v31 = vpop.permute.xlu0 %604  ;;  %v544_v40 = vsel %vm42_vm3, %v3381_v5, 0.0  ;;  %v3227_v5 = vmov 0  }
 0x530   :  { %2978 = vset.pattern.permute.xlu0 %v3227_v5  ;;  %2966 = vset.pattern.permute.xlu2 %v3227_v5 }
 0x531   :  { %2972 = vset.pattern.permute.xlu1 %v3227_v5 }
 0x534   :  { %542 = vadd.xlane.f32.xlu1 %v541_v46  ;;  %v520_v46 = vmul.f32 %v2838_v1, %v3423_v52 }
 0x536   :  { %v556_v59 = vsel %vm42_vm3, %v520_v46, 0.0 }
 0x537   :  { %484 = vadd.xlane.f32.xlu2 %v483_v48  ;;  %508 = vadd.xlane.f32.xlu0 %v507_v49  ;;  %v464_v34 = vpop.xlane.xlu1 %463 }
 0x538   :  { %v631_v45 = vpop.permute.xlu2 %630 }
 0x53c   :  { %551 = vadd.xlane.f32.xlu1 %v550_v55 }
 0x53f   :  { %490 = vadd.xlane.f32.xlu2 %v489_v61  ;;  %527 = vadd.xlane.f32.xlu0 %v526_v62  ;;  %v611_v35 = vpop.permute.xlu0 %610 }
 0x544   :  { %560 = vadd.xlane.f32.xlu1 %v559_v0 }
 0x547   :  { %493 = vadd.xlane.f32.xlu2 %v492_v3  ;;  %554 = vadd.xlane.f32.xlu0 %v553_v4 }
 0x548   :  { %v3484_v49 = vpop.permute.xlu2 %662 }
 0x54c   :  { %566 = vadd.xlane.f32.xlu1 %v565_v10 }
 0x54f   :  { %496 = vadd.xlane.f32.xlu2 %v495_v13  ;;  %563 = vadd.xlane.f32.xlu0 %v562_v14  ;;  %v473_v37 = vpop.xlane.xlu1 %472  ;;  %v3472_v38 = vpop.permute.xlu0 %617  ;;  %v693_v14 = vmul.f32 %v3447_v9, %v464_v34 }
 0x551   :  { %v709_v23 = vadd.f32 1.0, %v693_v14 }
 0x554   :  { %569 = vadd.xlane.f32.xlu1 %v568_v20 }
 0x557   :  { %499 = vadd.xlane.f32.xlu2 %v498_v22 }
 0x558   :  { %v3491_v53 = vpop.permute.xlu2 %669 }
 0x55c   :  { %572 = vadd.xlane.f32.xlu1 %v571_v25 }
 0x55f   :  { %505 = vadd.xlane.f32.xlu2 %v504_v27  ;;  %v637_v41 = vpop.permute.xlu0 %636 }
 0x567   :  { %530 = vadd.xlane.f32.xlu2 %v529_v32  ;;  %v3476_v28 = vpop.xlane.xlu1 %481  ;;  %v3482_v48 = vpop.permute.xlu0 %649 }
 0x56f   :  { %536 = vadd.xlane.f32.xlu2 %v535_v36  ;;  %v488_v47 = vpop.xlane.xlu1 %487  ;;  %v3493_v52 = vpop.permute.xlu0 %675 }
 0x570   :  { %v701_v46 = vmul.f32 %v631_v45, %v488_v47  ;;  %v699_v45 = vmul.f32 %v3472_v38, %v3476_v28 }
 0x577   :  { %545 = vadd.xlane.f32.xlu2 %v544_v40 }
 0x57f   :  { %548 = vadd.xlane.f32.xlu2 %v547_v44 }
 0x587   :  { %557 = vadd.xlane.f32.xlu2 %v556_v59 }
 0x58f   :  { %v3489_v12 = vpop.xlane.xlu1 %502 }
 0x590   :  { %v706_v47 = vmul.f32 %v3484_v49, %v3489_v12 }
 0x597   :  { %v534_v54 = vpop.xlane.xlu1 %533 }
 0x59a   :  { %v470_v55 = vpop.xlane.xlu2 %469  ;;  %v467_v56 = vpop.xlane.xlu0 %466 }
 0x59b   :  { %v694_v15 = vmul.f32 %v585_v42, %v467_v56  ;;  %v695_v25 = vmul.f32 %v3456_v16, %v470_v55 }
 0x59d   :  { %v710_v27 = vadd.f32 1.0, %v694_v15  ;;  %v711_v36 = vadd.f32 1.0, %v695_v25 }
 0x59f   :  { %v540_v57 = vpop.xlane.xlu1 %539  ;;  %vm727_vm1 = vcmp.gt.f32.partialorder %v711_v36, %v534_v54 }
 0x5a0   :  { %v2846_v59 = vsel %vm727_vm1, 1.0, %v3226_v50  ;;  %vm865_vm1 = vcmask 1041409  }
 0x5a2   :  { %v476_v58 = vpop.xlane.xlu2 %475  ;;  %v479_v60 = vpop.xlane.xlu0 %478 }
 0x5a3   :  { %v697_v61 = vmul.f32 %v605_v31, %v476_v58  ;;  %v698_v62 = vmul.f32 %v611_v35, %v479_v60  ;;  %v696_v35 = vmul.f32 %v3462_v26, %v473_v37  ;;  %v717_v58 = vadd.f32 1.0, %v701_v46 }
 0x5a5   :  { %v713_v63 = vadd.f32 1.0, %v697_v61  ;;  %v714_v51 = vadd.f32 1.0, %v698_v62  ;;  %v712_v34 = vadd.f32 1.0, %v696_v35 }
 0x5a7   :  { %vm729_vm13 = vcmp.gt.f32.partialorder %v713_v63, %v540_v57  ;;  %v543_v0 = vpop.xlane.xlu1 %542 }
 0x5a8   :  { %vm730_vm14 = vcmp.gt.f32.partialorder %v714_v51, %v543_v0  ;;  %v2848_v1 = vsel %vm729_vm13, 1.0, %v3226_v50  ;;  %v722_v0 = vadd.f32 1.0, %v706_v47 }
 0x5a9   :  { %v2849_v2 = vsel %vm730_vm14, 1.0, %v3226_v50 }
 0x5aa   :  { %v2979_v3 = vpack.i.bf16 %v2849_v2, %v2848_v1  ;;  %v485_v4 = vpop.xlane.xlu2 %484  ;;  %v3500_v11 = vpop.xlane.xlu0 %508 }
 0x5ab   :  { %v700_v62 = vmul.f32 %v3453_v17, %v485_v4 }
 0x5ac   :  { %2980 = vperm.xlu0 %2978, %v2979_v3  }
 0x5ad   :  { %v716_v1 = vadd.f32 1.0, %v700_v62 }
 0x5af   :  { %v552_v20 = vpop.xlane.xlu1 %551 }
 0x5b0   :  { %vm733_vm7 = vcmp.gt.f32.partialorder %v717_v58, %v552_v20  ;;  %v708_v20 = vmul.f32 %v3493_v52, %v3500_v11 }
 0x5b1   :  { %v2852_v61 = vsel %vm733_vm7, 1.0, %v3226_v50  ;;  %vm871_vm7 = vcmask 1044484  }
 0x5b2   :  { %v491_v7 = vpop.xlane.xlu2 %490  ;;  %v528_v22 = vpop.xlane.xlu0 %527 }
 0x5b3   :  { %vm725_vm15 = vcmp.gt.f32.partialorder %v709_v23, %v528_v22  ;;  %v702_v42 = vmul.f32 %v637_v41, %v491_v7 }
 0x5b4   :  { %3011 = vset.pattern.permute.xlu0 %v3315_v21  ;;  %v2844_v31 = vsel %vm725_vm15, 1.0, %v3226_v50 }
 0x5b5   :  { %v718_v56 = vadd.f32 1.0, %v702_v42 }
 0x5b7   :  { %v561_v9 = vpop.xlane.xlu1 %560 }
 0x5ba   :  { %v3498_v8 = vpop.xlane.xlu2 %493  ;;  %v555_v16 = vpop.xlane.xlu0 %554 }
 0x5bb   :  { %vm734_vm5 = vcmp.gt.f32.partialorder %v718_v56, %v555_v16  ;;  %v703_v4 = vmul.f32 %v3459_v24, %v3498_v8 }
 0x5bc   :  { %v2853_v37 = vsel %vm734_vm5, 1.0, %v3226_v50  ;;  %vm869_vm5 = vcmask 1043459  }
 0x5bd   :  { %v2989_v63 = vpack.i.bf16 %v2853_v37, %v2852_v61 }
 0x5bf   :  { %v567_v54 = vpop.xlane.xlu1 %566 }
 0x5c0   :  { %vm738_vm9 = vcmp.gt.f32.partialorder %v722_v0, %v567_v54 }
 0x5c1   :  { %v2857_v49 = vsel %vm738_vm9, 1.0, %v3226_v50  ;;  %vm875_vm9 = vcmask 1046534  }
 0x5c2   :  { %v497_v6 = vpop.xlane.xlu2 %496  ;;  %v564_v51 = vpop.xlane.xlu0 %563 }
 0x5c3   :  { %v704_v2 = vmul.f32 %v3482_v48, %v497_v6  ;;  %v719_v6 = vadd.f32 1.0, %v703_v4 }
 0x5c5   :  { %v720_v7 = vadd.f32 1.0, %v704_v2 }
 0x5c7   :  { %v570_v12 = vpop.xlane.xlu1 %569  ;;  %vm736_vm12 = vcmp.gt.f32.partialorder %v720_v7, %v561_v9 }
 0x5c8   :  { %v2855_v23 = vsel %vm736_vm12, 1.0, %v3226_v50 }
 0x5ca   :  { %v500_v10 = vpop.xlane.xlu2 %499 }
 0x5cb   :  { %v705_v26 = vmul.f32 %v3467_v30, %v500_v10  ;;  %v715_v30 = vadd.f32 1.0, %v699_v45 }
 0x5cd   :  { %v721_v60 = vadd.f32 1.0, %v705_v26 }
 0x5cf   :  { %vm737_vm8 = vcmp.gt.f32.partialorder %v721_v60, %v564_v51  ;;  %v573_v25 = vpop.xlane.xlu1 %572 }
 0x5d0   :  { %v2856_v28 = vsel %vm737_vm8, 1.0, %v3226_v50  ;;  %vm873_vm8 = vcmask 1045509  }
 0x5d1   :  { %v2999_v14 = vpack.i.bf16 %v2857_v49, %v2856_v28 }
 0x5d2   :  { %v3502_v13 = vpop.xlane.xlu2 %505 }
 0x5d3   :  { %v707_v48 = vmul.f32 %v3491_v53, %v3502_v13 }
 0x5d5   :  { %v723_v22 = vadd.f32 1.0, %v707_v48 }
 0x5d7   :  { %vm739_vm14 = vcmp.gt.f32.partialorder %v723_v22, %v570_v12 }
 0x5d8   :  { %v2858_v53 = vsel %vm739_vm14, 1.0, %v3226_v50 }
 0x5da   :  { %v531_v29 = vpop.xlane.xlu2 %530 }
 0x5db   :  { %vm726_vm0 = vcmp.gt.f32.partialorder %v710_v27, %v531_v29  ;;  %v724_v27 = vadd.f32 1.0, %v708_v20 }
 0x5dc   :  { %v2845_v32 = vsel %vm726_vm0, 1.0, %v3226_v50  ;;  %vm842_vm0 = vcmask 130112  }
 0x5dd   :  { %v2967_v40 = vpack.i.bf16 %v2845_v32, %v2844_v31  ;;  %vm740_vm15 = vcmp.gt.f32.partialorder %v724_v27, %v573_v25  ;;  %v3537_v31 = vand.u32 127, %v295_v18 }
 0x5de   :  { %v2859_v13 = vsel %vm740_vm15, 1.0, %v3226_v50 }
 0x5df   :  { %2968 = vperm.xlu2 %2966, %v2967_v40   ;;  %v3004_v29 = vpack.i.bf16 %v2859_v13, %v2858_v53  ;;  %v3540_v9 = vadd.s32 4294967288, %v3537_v31 }
 0x5e2   :  { %v537_v44 = vpop.xlane.xlu2 %536 }
 0x5e3   :  { %vm728_vm2 = vcmp.gt.f32.partialorder %v712_v34, %v537_v44 }
 0x5e4   :  { %v2847_v55 = vsel %vm728_vm2, 1.0, %v3226_v50  ;;  %vm867_vm2 = vcmask 1042434  }
 0x5e5   :  { %v2973_v57 = vpack.i.bf16 %v2847_v55, %v2846_v59 }
 0x5e7   :  { %2974 = vperm.xlu1 %2972, %v2973_v57  }
 0x5ea   :  { %v546_v41 = vpop.xlane.xlu2 %545 }
 0x5eb   :  { %vm731_vm10 = vcmp.gt.f32.partialorder %v715_v30, %v546_v41 }
 0x5ec   :  { %v2850_v17 = vsel %vm731_vm10, 1.0, %v3226_v50  ;;  %vm877_vm10 = vcmask 1047559  }
 0x5ef   :  { %2990 = vperm.xlu1 %2972, %v2989_v63  }
 0x5f2   :  { %v549_v38 = vpop.xlane.xlu2 %548 }
 0x5f3   :  { %vm732_vm11 = vcmp.gt.f32.partialorder %v716_v1, %v549_v38 }
 0x5f4   :  { %v2851_v3 = vsel %vm732_vm11, 1.0, %v3226_v50 }
 0x5f5   :  { %v2984_v10 = vpack.i.bf16 %v2851_v3, %v2850_v17 }
 0x5f7   :  { %3000 = vperm.xlu1 %2972, %v2999_v14   ;;  %2985 = vperm.xlu2 %2966, %v2984_v10  }
 0x5fa   :  { %v558_v15 = vpop.xlane.xlu2 %557 }
 0x5fb   :  { %vm735_vm13 = vcmp.gt.f32.partialorder %v719_v6, %v558_v15 }
 0x5fc   :  { %v2854_v24 = vsel %vm735_vm13, 1.0, %v3226_v50 }
 0x5fd   :  { %v2994_v8 = vpack.i.bf16 %v2855_v23, %v2854_v24 }
 0x5ff   :  { %2995 = vperm.xlu2 %2966, %v2994_v8   ;;  %3009 = vset.pattern.permute.xlu1 %v3315_v21 }
 0x607   :  { %3005 = vperm.xlu2 %2966, %v3004_v29  }
 0x60f   :  { %3010 = vset.pattern.permute.xlu2 %v3340_v43 }
 0x61e   :  { %v2981_v34 = vpop.permute.xlu0 %2980 }
 0x61f   :  { %v2983_v59 = vunpack.i.h.bf16 %v2981_v34  ;;  %v2982_v55 = vunpack.i.l.bf16 %v2981_v34 }
 0x621   :  { %v848_v54 = vperm.slane %v2983_v59, %v3540_v9  ;;  %v847_v41 = vperm.slane %v2982_v55, %v3537_v31 }
 0x623   :  { %v849_v38 = vsel %vm842_vm0, %v848_v54, %v847_v41 }
 0x639   :  { %v2969_v52 = vpop.permute.xlu2 %2968 }
 0x63a   :  { %v2971_v42 = vunpack.i.h.bf16 %v2969_v52  ;;  %v2970_v44 = vunpack.i.l.bf16 %v2969_v52 }
 0x63c   :  { %v841_v56 = vperm.slane %v2971_v42, %v3540_v9  ;;  %v839_v18 = vperm.slane %v2970_v44, %v3537_v31 }
 0x63e   :  { %v843_v60 = vsel %vm842_vm0, %v841_v56, %v839_v18 }
 0x651   :  { %v2986_v11 = vpop.permute.xlu2 %2985 }
 0x652   :  { %v2988_v57 = vunpack.i.h.bf16 %v2986_v11  ;;  %v2987_v58 = vunpack.i.l.bf16 %v2986_v11 }
 0x654   :  { %v851_v30 = vperm.slane %v2988_v57, %v3540_v9  ;;  %v850_v0 = vperm.slane %v2987_v58, %v3537_v31 }
 0x656   :  { %v852_v3 = vsel %vm842_vm0, %v851_v30, %v850_v0 }
 0x659   :  { %v2975_v32 = vpop.permute.xlu1 %2974  ;;  %v2996_v40 = vpop.permute.xlu2 %2995 }
 0x65a   :  { %v2977_v35 = vunpack.i.h.bf16 %v2975_v32  ;;  %v2976_v36 = vunpack.i.l.bf16 %v2975_v32  ;;  %v2998_v1 = vunpack.i.h.bf16 %v2996_v40  ;;  %v2997_v2 = vunpack.i.l.bf16 %v2996_v40 }
 0x65c   :  { %v845_v46 = vperm.slane %v2977_v35, %v3540_v9  ;;  %v844_v16 = vperm.slane %v2976_v36, %v3537_v31  ;;  %v857_v4 = vperm.slane %v2998_v1, %v3540_v9  ;;  %v856_v7 = vperm.slane %v2997_v2, %v3537_v31  ;;  %v916_v35 = vld [vmem:[%s4265_s1 + $0x48] sm:$0xff]  ;;  %v915_v36 = vld [vmem:[%s4265_s1 + $0x40] sm:$0xff] }
 0x65d   :  { %936 = vmatpush.msra.mxu3 %v916_v35 }
 0x65e   :  { %v846_v26 = vsel %vm842_vm0, %v845_v46, %v844_v16  ;;  %v858_v8 = vsel %vm842_vm0, %v857_v4, %v856_v7 }
 0x65f   :  { %v866_v61 = vsel %vm865_vm1, %v846_v26, %v843_v60  ;;  %937 = vmatpush.msra.mxu3 %v915_v36 }
 0x660   :  { %v868_v12 = vsel %vm867_vm2, %v849_v38, %v866_v61 }
 0x661   :  { %v2991_v37 = vpop.permute.xlu1 %2990  ;;  %v3006_v51 = vpop.permute.xlu2 %3005  ;;  %v870_v6 = vsel %vm869_vm5, %v852_v3, %v868_v12 }
 0x662   :  { %v2993_v45 = vunpack.i.h.bf16 %v2991_v37  ;;  %v2992_v47 = vunpack.i.l.bf16 %v2991_v37  ;;  %v3008_v28 = vunpack.i.h.bf16 %v3006_v51  ;;  %v3007_v49 = vunpack.i.l.bf16 %v3006_v51 }
 0x664   :  { %v854_v62 = vperm.slane %v2993_v45, %v3540_v9  ;;  %v853_v63 = vperm.slane %v2992_v47, %v3537_v31  ;;  %v863_v15 = vperm.slane %v3008_v28, %v3540_v9  ;;  %v862_v20 = vperm.slane %v3007_v49, %v3537_v31 }
 0x666   :  { %v855_v17 = vsel %vm842_vm0, %v854_v62, %v853_v63  ;;  %v864_v53 = vsel %vm842_vm0, %v863_v15, %v862_v20 }
 0x667   :  { %v872_v22 = vsel %vm871_vm7, %v855_v17, %v870_v6 }
 0x668   :  { %v874_v27 = vsel %vm873_vm8, %v858_v8, %v872_v22 }
 0x669   :  { %v3001_v10 = vpop.permute.xlu1 %3000 }
 0x66a   :  { %v3003_v14 = vunpack.i.h.bf16 %v3001_v10  ;;  %v3002_v48 = vunpack.i.l.bf16 %v3001_v10 }
 0x66c   :  { %v860_v23 = vperm.slane %v3003_v14, %v3540_v9  ;;  %v859_v24 = vperm.slane %v3002_v48, %v3537_v31 }
 0x66e   :  { %v861_v25 = vsel %vm842_vm0, %v860_v23, %v859_v24  ;;  %v3137_v23 = vld [vmem:[%s4265_s1 + $0xa] ss:$0 sm:$0xff] }
 0x66f   :  { %v876_v13 = vsel %vm875_vm9, %v861_v25, %v874_v27  ;;  %v3138_v25 = vld [vmem:[%s4265_s1 + $0xb] ss:$0 sm:$0xff] }
 0x670   :  { %v878_v29 = vsel %vm877_vm10, %v864_v53, %v876_v13  ;;  %v1001_v53 = vld [vmem:[%s4265_s1 + $0x58] sm:$0xff]  ;;  %v1000_v13 = vld [vmem:[%s4265_s1 + $0x50] sm:$0xff] }
 0x671   :  { %v880_v52 = vsel %vm42_vm3, %v878_v29, 0.0  ;;  %v883_v11 = vmul.f32 %v878_v29, %v3328_v39  ;;  %1021 = vmatpush.msrb.mxu2 %v1001_v53 }
 0x672   :  { %881 = vadd.xlane.f32.xlu1 %v880_v52 }
 0x673   :  { %v884_v32 = vsel %vm42_vm3, %v883_v11, 0.0  ;;  %1022 = vmatpush.msrb.mxu2 %v1000_v13 }
 0x674   :  { %885 = vadd.xlane.f32.xlu2 %v884_v32 }
 0x6e5   :  { %v882_v40 = vpop.xlane.xlu1 %881 }
 0x6e6   :  { %3171 = vrcp.f32 %v882_v40  ;;  %v899_v46 = vand.u32 2147483648, %v882_v40  ;;  %v897_v59 = vand.u32 2147483647, %v882_v40  ;;  %vm893_vm12 = vweird.f32 %v882_v40 }
 0x6e7   :  { %v886_v55 = vpop.xlane.xlu2 %885 }
 0x6e8   :  { %v900_v18 = vor.u32 1.1754944e-38, %v899_v46  ;;  %v2860_v57 = vadd.f32 -1.0, %v886_v55  ;;  %vm898_vm14 = vcmp.eq.f32.partialorder %v897_v59, 8.507059e+37 }
 0x6ec   :  { %v3172_v34 = vpop.eup %3171 }
 0x6ed   :  { %v889_v42 = vmul.f32 %v3172_v34, %v882_v40  ;;  %vm894_vm11 = vweird.f32 %v3172_v34 }
 0x6ee   :  { %vm895_vm13 = vmor %vm893_vm12, %vm894_vm11 }
 0x6ef   :  { %v890_v44 = vsub.f32 1.0, %v889_v42 }
 0x6f1   :  { %v891_v16 = vmul.f32 %v3172_v34, %v890_v44 }
 0x6f3   :  { %v892_v56 = vadd.f32 %v3172_v34, %v891_v16 }
 0x6f5   :  { %v896_v58 = vsel %vm895_vm13, %v3172_v34, %v892_v56 }
 0x6f6   :  { %v901_v26 = vsel %vm898_vm14, %v900_v18, %v896_v58 }
 0x6f7   :  { %v902_v37 = vmul.f32 %v2860_v57, %v901_v26 }
 0x6f9   :  { %v903_v54 = vsub.f32 %v3328_v39, %v902_v37 }
 0x6fb   :  { %v3583_v41 = vmax.f32 %v903_v54, 0.0 }
 0x6fd   :  { %v914_v45 = vmul.f32 %v3583_v41, %v3271_v19 }
 0x6ff   :  { %2861 = vmatmul.msk.f32.vlgmr.msra.gmra.mxu3 %vm42_vm3, %v914_v45 }
 0x782   :  { %v939_v47 = vpop.f32.mrf.mxu3 }
 0x783   :  { %v942_v60 = vsel %vm66_vm4, %v939_v47, 0.0 }
 0x784   :  { %v943_v61 = vrot.slane %v942_v60, 4 }
 0x786   :  { %v944_v62 = vadd.f32 %v943_v61, %v942_v60 }
 0x788   :  { %v945_v63 = vrot.slane %v944_v62, 2 }
 0x78a   :  { %v946_v51 = vadd.f32 %v945_v63, %v944_v62 }
 0x78c   :  { %v947_v30 = vrot.slane %v946_v51, 1 }
 0x78e   :  { %v948_v0 = vadd.f32 %v947_v30, %v946_v51 }
 0x790   :  { %v949_v1 = vmul.f32 %v948_v0, %v3276_v33 }
 0x792   :  { %v950_v2 = vsub.f32 %v939_v47, %v949_v1 }
 0x794   :  { %v951_v39 = vmul.f32 %v950_v2, %v950_v2 }
 0x796   :  { %v952_v38 = vsel %vm66_vm4, %v951_v39, 0.0 }
 0x797   :  { %v953_v28 = vrot.slane %v952_v38, 4 }
 0x799   :  { %v954_v49 = vadd.f32 %v953_v28, %v952_v38 }
 0x79b   :  { %v955_v12 = vrot.slane %v954_v49, 2 }
 0x79d   :  { %v956_v17 = vadd.f32 %v955_v12, %v954_v49 }
 0x79f   :  { %v957_v3 = vrot.slane %v956_v17, 1 }
 0x7a1   :  { %v958_v4 = vadd.f32 %v957_v3, %v956_v17 }
 0x7a3   :  { %v959_v7 = vmul.f32 %v958_v4, %v3276_v33 }
 0x7a5   :  { %v960_v10 = vadd.f32 1e-05, %v959_v7 }
 0x7a7   :  { %3173 = vrsqrt.f32 %v960_v10  ;;  %vm967_vm11 = vweird.f32 %v960_v10 }
 0x7ad   :  { %v3174_v14 = vpop.eup %3173 }
 0x7ae   :  { %v962_v48 = vmul.f32 %v3174_v14, %v960_v10  ;;  %vm968_vm15 = vweird.f32 %v3174_v14 }
 0x7af   :  { %vm969_vm12 = vmor %vm967_vm11, %vm968_vm15 }
 0x7b0   :  { %v963_v6 = vmul.f32 %v3174_v14, %v962_v48 }
 0x7b2   :  { %v964_v15 = vmul.f32 0.5, %v963_v6 }
 0x7b4   :  { %v965_v20 = vsub.f32 1.5, %v964_v15  ;;  %v3140_v15 = vld [vmem:[%s4265_s1 + $0xd] ss:$0 sm:$0xff] }
 0x7b6   :  { %v966_v22 = vmul.f32 %v3174_v14, %v965_v20 }
 0x7b8   :  { %v970_v24 = vsel %vm969_vm12, %v3174_v14, %v966_v22  ;;  %v3139_v14 = vld [vmem:[%s4265_s1 + $0xc] ss:$0 sm:$0xff] }
 0x7b9   :  { %v971_v8 = vmul.f32 %v970_v24, %v950_v2 }
 0x7bb   :  { %v973_v27 = vmul.f32 %v3137_v23, %v971_v8 }
 0x7bd   :  { %v975_v29 = vadd.f32 %v3138_v25, %v973_v27 }
 0x7bf   :  { %v2862_v52 = vmul.f32 -1.442695, %v975_v29 }
 0x7c1   :  { %3175 = vpow2.f32 %v2862_v52 }
 0x7c7   :  { %v3176_v11 = vpop.eup %3175 }
 0x7c8   :  { %v979_v32 = vadd.f32 1.0, %v3176_v11 }
 0x7ca   :  { %3177 = vrcp.f32 %v979_v32  ;;  %v991_v34 = vand.u32 2147483648, %v979_v32  ;;  %v989_v44 = vand.u32 2147483647, %v979_v32  ;;  %vm985_vm14 = vweird.f32 %v979_v32 }
 0x7cc   :  { %v992_v16 = vor.u32 1.1754944e-38, %v991_v34  ;;  %vm990_vm11 = vcmp.eq.f32.partialorder %v989_v44, 8.507059e+37 }
 0x7d0   :  { %v3178_v35 = vpop.eup %3177 }
 0x7d1   :  { %v981_v36 = vmul.f32 %v3178_v35, %v979_v32  ;;  %vm986_vm13 = vweird.f32 %v3178_v35 }
 0x7d2   :  { %vm987_vm15 = vmor %vm985_vm14, %vm986_vm13 }
 0x7d3   :  { %v982_v40 = vsub.f32 1.0, %v981_v36 }
 0x7d5   :  { %v983_v42 = vmul.f32 %v3178_v35, %v982_v40  ;;  %v1088_v40 = vld [vmem:[%s4265_s1 + $0x88] sm:$0xff] }
 0x7d6   :  { %1109 = vmatpush.msrb.mxu0 %v1088_v40 }
 0x7d7   :  { %v984_v46 = vadd.f32 %v3178_v35, %v983_v42 }
 0x7d9   :  { %v988_v59 = vsel %vm987_vm15, %v3178_v35, %v984_v46 }
 0x7da   :  { %v993_v55 = vsel %vm990_vm11, %v992_v16, %v988_v59 }
 0x7db   :  { %996 = vrot.lane.b32.xlu0 %v993_v55, %s3224_s30 }
 0x84d   :  { %v997_v56 = vpop.permute.xlu0 %996 }
 0x84e   :  { %v999_v18 = vmul.f32 %v997_v56, %v975_v29 }
 0x850   :  { %2863 = vmatmul.msk.f32.vlgmr.msrb.gmra.mxu2 %vm42_vm3, %v999_v18 }
 0x8d3   :  { %v1024_v57 = vpop.f32.mrf.mxu2 }
 0x8d4   :  { %v1027_v58 = vsel %vm66_vm4, %v1024_v57, 0.0 }
 0x8d5   :  { %v1028_v26 = vrot.slane %v1027_v58, 4 }
 0x8d7   :  { %v1029_v37 = vadd.f32 %v1028_v26, %v1027_v58 }
 0x8d9   :  { %v1030_v54 = vrot.slane %v1029_v37, 2 }
 0x8db   :  { %v1031_v45 = vadd.f32 %v1030_v54, %v1029_v37 }
 0x8dd   :  { %v1032_v47 = vrot.slane %v1031_v45, 1 }
 0x8df   :  { %v1033_v60 = vadd.f32 %v1032_v47, %v1031_v45 }
 0x8e1   :  { %v1034_v61 = vmul.f32 %v1033_v60, %v3276_v33 }
 0x8e3   :  { %v1035_v62 = vsub.f32 %v1024_v57, %v1034_v61 }
 0x8e5   :  { %v1036_v63 = vmul.f32 %v1035_v62, %v1035_v62 }
 0x8e7   :  { %v1037_v51 = vsel %vm66_vm4, %v1036_v63, 0.0 }
 0x8e8   :  { %v1038_v30 = vrot.slane %v1037_v51, 4 }
 0x8ea   :  { %v1039_v0 = vadd.f32 %v1038_v30, %v1037_v51 }
 0x8ec   :  { %v1040_v1 = vrot.slane %v1039_v0, 2 }
 0x8ee   :  { %v1041_v2 = vadd.f32 %v1040_v1, %v1039_v0 }
 0x8f0   :  { %v1042_v39 = vrot.slane %v1041_v2, 1 }
 0x8f2   :  { %v1043_v38 = vadd.f32 %v1042_v39, %v1041_v2 }
 0x8f4   :  { %v1044_v28 = vmul.f32 %v1043_v38, %v3276_v33 }
 0x8f6   :  { %v1045_v49 = vadd.f32 1e-05, %v1044_v28 }
 0x8f8   :  { %3179 = vrsqrt.f32 %v1045_v49  ;;  %vm1052_vm13 = vweird.f32 %v1045_v49 }
 0x8fe   :  { %v3180_v12 = vpop.eup %3179 }
 0x8ff   :  { %v1047_v17 = vmul.f32 %v3180_v12, %v1045_v49  ;;  %vm1053_vm12 = vweird.f32 %v3180_v12 }
 0x900   :  { %vm1054_vm14 = vmor %vm1052_vm13, %vm1053_vm12 }
 0x901   :  { %v1048_v3 = vmul.f32 %v3180_v12, %v1047_v17 }
 0x903   :  { %v1049_v4 = vmul.f32 0.5, %v1048_v3  ;;  %v3141_v3 = vld [vmem:[%s4265_s1 + $0x10] ss:$0 sm:$0xff] }
 0x905   :  { %v1050_v7 = vsub.f32 1.5, %v1049_v4 }
 0x907   :  { %v1051_v10 = vmul.f32 %v3180_v12, %v1050_v7 }
 0x909   :  { %v1055_v48 = vsel %vm1054_vm14, %v3180_v12, %v1051_v10  ;;  %v3142_v10 = vld [vmem:[%s4265_s1 + $0x11] ss:$0 sm:$0xff] }
 0x90a   :  { %v1056_v6 = vmul.f32 %v1055_v48, %v1035_v62  ;;  %v913_v48 = vsub.f32 1.3, %v3583_v41 }
 0x90c   :  { %v1058_v20 = vmul.f32 %v3139_v14, %v1056_v6 }
 0x90e   :  { %v1060_v22 = vadd.f32 %v3140_v15, %v1058_v20 }
 0x910   :  { %v2864_v23 = vmul.f32 -1.442695, %v1060_v22 }
 0x912   :  { %3181 = vpow2.f32 %v2864_v23 }
 0x918   :  { %v3182_v24 = vpop.eup %3181 }
 0x919   :  { %v1064_v8 = vadd.f32 1.0, %v3182_v24 }
 0x91b   :  { %3183 = vrcp.f32 %v1064_v8  ;;  %v1076_v13 = vand.u32 2147483648, %v1064_v8  ;;  %v1074_v52 = vand.u32 2147483647, %v1064_v8  ;;  %vm1070_vm11 = vweird.f32 %v1064_v8 }
 0x91d   :  { %v1077_v32 = vor.u32 1.1754944e-38, %v1076_v13  ;;  %vm1075_vm13 = vcmp.eq.f32.partialorder %v1074_v52, 8.507059e+37 }
 0x921   :  { %v3184_v25 = vpop.eup %3183 }
 0x922   :  { %v1066_v27 = vmul.f32 %v3184_v25, %v1064_v8  ;;  %vm1071_vm15 = vweird.f32 %v3184_v25 }
 0x923   :  { %vm1072_vm12 = vmor %vm1070_vm11, %vm1071_vm15 }
 0x924   :  { %v1067_v53 = vsub.f32 1.0, %v1066_v27 }
 0x926   :  { %v1068_v29 = vmul.f32 %v3184_v25, %v1067_v53 }
 0x928   :  { %v1069_v11 = vadd.f32 %v3184_v25, %v1068_v29 }
 0x92a   :  { %v1073_v35 = vsel %vm1072_vm12, %v3184_v25, %v1069_v11 }
 0x92b   :  { %v1078_v36 = vsel %vm1075_vm13, %v1077_v32, %v1073_v35 }
 0x92c   :  { %1081 = vrot.lane.b32.xlu0 %v1078_v36, %s3224_s30 }
 0x99e   :  { %v1082_v34 = vpop.permute.xlu0 %1081 }
 0x99f   :  { %v1084_v42 = vmul.f32 %v1082_v34, %v1060_v22 }
 0x9a1   :  { %v1085_v44 = vadd.f32 %v1084_v42, %v999_v18 }
 0x9a3   :  { %v3620_v46 = vmul.f32 0.70710677, %v1085_v44 }
 0x9a5   :  { %1090 = vrot.lane.b32.xlu0 %v3620_v46, %s3225_s12 }
 0xa17   :  { %v1091_v16 = vpop.permute.xlu0 %1090 }
 0xa18   :  { %2865 = vmatmul.msk.f32.vlgmr.msrb.gmra.mxu0 %vm223_vm6, %v1091_v16 }
 0xa95   :  { %v1111_v59 = vpop.f32.mrf.mxu0 }
 0xa96   :  { %v1116_v55 = vsel %vm42_vm3, %v1111_v59, 0.0 }
 0xa97   :  { %v1117_v56 = vrot.slane %v1116_v55, 4 }
 0xa99   :  { %v1118_v57 = vadd.f32 %v1117_v56, %v1116_v55 }
 0xa9b   :  { %v1119_v58 = vrot.slane %v1118_v57, 2 }
 0xa9d   :  { %v1120_v26 = vadd.f32 %v1119_v58, %v1118_v57 }
 0xa9f   :  { %v1121_v37 = vrot.slane %v1120_v26, 1 }
 0xaa1   :  { %v1122_v54 = vadd.f32 %v1121_v37, %v1120_v26 }
 0xaa3   :  { %v1123_v45 = vmul.f32 %v1122_v54, %v3276_v33 }
 0xaa5   :  { %v1124_v18 = vsub.f32 %v1111_v59, %v1123_v45 }
 0xaa7   :  { %v1125_v47 = vmul.f32 %v1124_v18, %v1124_v18 }
 0xaa9   :  { %v1126_v60 = vsel %vm42_vm3, %v1125_v47, 0.0 }
 0xaaa   :  { %v1127_v61 = vrot.slane %v1126_v60, 4 }
 0xaac   :  { %v1128_v62 = vadd.f32 %v1127_v61, %v1126_v60 }
 0xaae   :  { %v1129_v63 = vrot.slane %v1128_v62, 2 }
 0xab0   :  { %v1130_v51 = vadd.f32 %v1129_v63, %v1128_v62 }
 0xab2   :  { %v1131_v30 = vrot.slane %v1130_v51, 1 }
 0xab4   :  { %v1132_v0 = vadd.f32 %v1131_v30, %v1130_v51 }
 0xab6   :  { %v1133_v1 = vmul.f32 %v1132_v0, %v3276_v33 }
 0xab8   :  { %v1134_v2 = vadd.f32 1e-05, %v1133_v1 }
 0xaba   :  { %3185 = vrsqrt.f32 %v1134_v2  ;;  %vm1141_vm15 = vweird.f32 %v1134_v2 }
 0xac0   :  { %v3186_v39 = vpop.eup %3185 }
 0xac1   :  { %v1136_v38 = vmul.f32 %v3186_v39, %v1134_v2  ;;  %vm1142_vm14 = vweird.f32 %v3186_v39 }
 0xac2   :  { %vm1143_vm11 = vmor %vm1141_vm15, %vm1142_vm14 }
 0xac3   :  { %v1137_v28 = vmul.f32 %v3186_v39, %v1136_v38 }
 0xac5   :  { %v1138_v49 = vmul.f32 0.5, %v1137_v28 }
 0xac7   :  { %v1139_v12 = vsub.f32 1.5, %v1138_v49 }
 0xac9   :  { %v1140_v17 = vmul.f32 %v3186_v39, %v1139_v12 }
 0xacb   :  { %v1144_v4 = vsel %vm1143_vm11, %v3186_v39, %v1140_v17 }
 0xacc   :  { %v1145_v7 = vmul.f32 %v1144_v4, %v1124_v18 }
 0xace   :  { %v1147_v14 = vmul.f32 %v3141_v3, %v1145_v7 }
 0xad0   :  { %v1149_v6 = vadd.f32 %v3142_v10, %v1147_v14 }
 0xad2   :  { %v1150_v15 = vmul.f32 %v1149_v6, %v913_v48 }
 0xad4   :  { %v1151_v20 = vsel %vm42_vm3, %v1150_v15, -inf }
 0xad5   :  { %1152 = vmax.xlane.f32.xlu0 %v1151_v20 }
 0xb48   :  { %v1153_v22 = vpop.xlane.xlu0 %1152 }
 0xb49   :  { %v3639_v23 = vsub.f32 %v1150_v15, %v1153_v22 }
 0xb4b   :  { %v1202_v24 = vperm.slane %v3639_v23, 3  ;;  %v3643_v8 = vperm.slane %v3639_v23, 0  ;;  %v1176_v25 = vperm.slane %v3639_v23, 1  ;;  %v1189_v27 = vperm.slane %v3639_v23, 2 }
 0xb4c   :  { %v1215_v53 = vperm.slane %v3639_v23, 4  ;;  %v1228_v13 = vperm.slane %v3639_v23, 5  ;;  %v1241_v29 = vperm.slane %v3639_v23, 6  ;;  %v1254_v52 = vperm.slane %v3639_v23, 7 }
 0xb4d   :  { %1207 = vperm.xlu0 %3011, %v1202_v24   ;;  %1174 = vperm.xlu2 %3010, %v3643_v8   ;;  %v1158_v11 = vrot.slane %v3639_v23, 3  ;;  %v1156_v42 = vrot.slane %v3639_v23, 1  ;;  %v1157_v57 = vrot.slane %v3639_v23, 2  ;;  %v1159_v17 = vrot.slane %v3639_v23, 4 }
 0xb4e   :  { %1168 = vperm.xlu1 %3009, %v3643_v8   ;;  %v1162_v3 = vrot.slane %v3639_v23, 7  ;;  %v1161_v20 = vrot.slane %v3639_v23, 6 }
 0xb4f   :  { %v1270_v32 = vperm.slane %v1158_v11, 0  ;;  %v3675_v44 = vperm.slane %v1156_v42, 0  ;;  %v3689_v37 = vperm.slane %v1157_v57, 0  ;;  %v3719_v7 = vperm.slane %v1159_v17, 0 }
 0xb50   :  { %v3721_v10 = vperm.slane %v1162_v3, 0  ;;  %v1160_v11 = vrot.slane %v3639_v23, 5 }
 0xb55   :  { %3014 = vset.pattern.permute.xlu0 %v3340_v43  ;;  %1187 = vperm.xlu2 %3010, %v1176_v25  }
 0xb56   :  { %1181 = vperm.xlu1 %3009, %v1176_v25  }
 0xb5d   :  { %1453 = vperm.xlu0 %3014, %v3643_v8   ;;  %1200 = vperm.xlu2 %3010, %v1189_v27  }
 0xb5e   :  { %1194 = vperm.xlu1 %3009, %v1189_v27  }
 0xb65   :  { %3017 = vset.pattern.permute.xlu0 %v3315_v21  ;;  %3013 = vset.pattern.permute.xlu2 %v3315_v21 }
 0xb66   :  { %3012 = vset.pattern.permute.xlu1 %v3340_v43 }
 0xb6d   :  { %1473 = vperm.xlu0 %3017, %v1189_v27   ;;  %1220 = vperm.xlu2 %3013, %v1215_v53  }
 0xb6e   :  { %1213 = vperm.xlu1 %3012, %v1202_v24  }
 0xb75   :  { %3018 = vset.pattern.permute.xlu0 %v3340_v43  ;;  %1233 = vperm.xlu2 %3013, %v1228_v13  }
 0xb76   :  { %1226 = vperm.xlu1 %3012, %v1215_v53  }
 0xb7d   :  { %1479 = vperm.xlu0 %3018, %v1189_v27   ;;  %1246 = vperm.xlu2 %3013, %v1241_v29  }
 0xb7e   :  { %1239 = vperm.xlu1 %3012, %v1228_v13  }
 0xb85   :  { %3019 = vset.pattern.permute.xlu0 %v3315_v21  ;;  %1259 = vperm.xlu2 %3013, %v1254_v52  }
 0xb86   :  { %1252 = vperm.xlu1 %3012, %v1241_v29  }
 0xb8d   :  { %1486 = vperm.xlu0 %3019, %v1202_v24   ;;  %1447 = vperm.xlu2 %3013, %v3643_v8  }
 0xb8e   :  { %1265 = vperm.xlu1 %3012, %v1254_v52  }
 0xb95   :  { %3022 = vset.pattern.permute.xlu0 %v3340_v43  ;;  %3016 = vset.pattern.permute.xlu2 %v3340_v43 }
 0xb96   :  { %3015 = vset.pattern.permute.xlu1 %v3315_v21 }
 0xb9d   :  { %1505 = vperm.xlu0 %3022, %v1215_v53   ;;  %1466 = vperm.xlu2 %3016, %v1176_v25  }
 0xb9e   :  { %1460 = vperm.xlu1 %3015, %v1176_v25  }
 0xba5   :  { %1518 = vperm.xlu0 %3022, %v1228_v13   ;;  %3021 = vset.pattern.permute.xlu2 %v3315_v21 }
 0xba6   :  { %3020 = vset.pattern.permute.xlu1 %v3340_v43 }
 0xba7   :  { %v1175_v56 = vpop.permute.xlu2 %1174 }
 0xba8   :  { %vm1284_vm14 = vcmp.ge.f32.partialorder %v3643_v8, %v1175_v56 }
 0xba9   :  { %v3686_v58 = vsel %vm1284_vm14, 1.0, %v3226_v50 }
 0xbaa   :  { %v1334_v54 = vsel %vm42_vm3, %v3686_v58, 0.0 }
 0xbad   :  { %1544 = vperm.xlu0 %3022, %v1254_v52   ;;  %1499 = vperm.xlu2 %3021, %v1215_v53  }
 0xbae   :  { %1492 = vperm.xlu1 %3020, %v1202_v24  }
 0xbaf   :  { %v1188_v62 = vpop.permute.xlu2 %1187 }
 0xbb0   :  { %vm1286_vm14 = vcmp.ge.f32.partialorder %v3675_v44, %v1188_v62 }
 0xbb1   :  { %v2869_v12 = vsel %vm1286_vm14, 1.0, %v3226_v50 }
 0xbb2   :  { %v1340_v4 = vsel %vm42_vm3, %v2869_v12, 0.0 }
 0xbb5   :  { %3024 = vset.pattern.permute.xlu2 %v3340_v43  ;;  %3038 = vset.pattern.permute.xlu0 %v3227_v5 }
 0xbb6   :  { %3023 = vset.pattern.permute.xlu1 %v3315_v21 }
 0xbb7   :  { %v1201_v51 = vpop.permute.xlu2 %1200 }
 0xbbd   :  { %1531 = vperm.xlu2 %3024, %v1241_v29  }
 0xbbe   :  { %1512 = vperm.xlu1 %3023, %v1228_v13   ;;  %v1273_v13 = vperm.slane %v1161_v20, 0 }
 0xbbf   :  { %v1208_v35 = vpop.permute.xlu0 %1207 }
 0xbc0   :  { %vm1289_vm12 = vcmp.ge.f32.partialorder %v1270_v32, %v1208_v35  ;;  %v1169_v36 = vpop.permute.xlu1 %1168 }
 0xbc1   :  { %v2872_v40 = vsel %vm1289_vm12, 1.0, %v3226_v50  ;;  %vm1283_vm12 = vcmp.ge.f32.partialorder %v3643_v8, %v1169_v36 }
 0xbc2   :  { %v3671_v34 = vmul.f32 %v2872_v40, %v1270_v32  ;;  %v2866_v1 = vsel %vm1283_vm12, 1.0, %v3226_v50  ;;  %v1349_v14 = vsel %vm42_vm3, %v2872_v40, 0.0  ;;  %v3741_v40 = vperm.slane %v1160_v11, 0 }
 0xbc3   :  { %v1331_v39 = vsel %vm42_vm3, %v2866_v1, 0.0 }
 0xbc5   :  { %3025 = vset.pattern.permute.xlu2 %v3315_v21 }
 0xbc6   :  { %1525 = vperm.xlu1 %3023, %v1241_v29  }
 0xbc7   :  { %v1221_v49 = vpop.permute.xlu2 %1220 }
 0xbc8   :  { %v1182_v16 = vpop.permute.xlu1 %1181 }
 0xbc9   :  { %vm1285_vm13 = vcmp.ge.f32.partialorder %v3675_v44, %v1182_v16 }
 0xbca   :  { %v2868_v59 = vsel %vm1285_vm13, 1.0, %v3226_v50  ;;  %vm1288_vm13 = vcmp.ge.f32.partialorder %v3689_v37, %v1201_v51 }
 0xbcb   :  { %v3680_v55 = vmul.f32 %v2868_v59, %v3675_v44  ;;  %v1337_v30 = vsel %vm42_vm3, %v2868_v59, 0.0  ;;  %v3709_v2 = vsel %vm1288_vm13, 1.0, %v3226_v50 }
 0xbcc   :  { %v1346_v38 = vsel %vm42_vm3, %v3709_v2, 0.0 }
 0xbcd   :  { %1538 = vperm.xlu2 %3025, %v1254_v52   ;;  %v1379_v52 = vmul.f32 %v2866_v1, %v3643_v8 }
 0xbce   :  { %3032 = vset.pattern.permute.xlu1 %v3227_v5 }
 0xbcf   :  { %v1234_v25 = vpop.permute.xlu2 %1233  ;;  %v1395_v35 = vsel %vm42_vm3, %v1379_v52, 0.0 }
 0xbd0   :  { %v1195_v26 = vpop.permute.xlu1 %1194  ;;  %vm1293_vm14 = vcmp.ge.f32.partialorder %v3741_v40, %v1234_v25 }
 0xbd1   :  { %vm1287_vm15 = vcmp.ge.f32.partialorder %v3689_v37, %v1195_v26  ;;  %v2876_v57 = vsel %vm1293_vm14, 1.0, %v3226_v50 }
 0xbd2   :  { %v3695_v45 = vsel %vm1287_vm15, 1.0, %v3226_v50  ;;  %vm1291_vm15 = vcmp.ge.f32.partialorder %v3719_v7, %v1221_v49 }
 0xbd3   :  { %v1343_v18 = vsel %vm42_vm3, %v3695_v45, 0.0  ;;  %v2874_v27 = vsel %vm1291_vm15, 1.0, %v3226_v50 }
 0xbd4   :  { %v1355_v29 = vsel %vm42_vm3, %v2874_v27, 0.0  ;;  %v1387_v49 = vmul.f32 %v2874_v27, %v3719_v7 }
 0xbd5   :  { %3026 = vset.pattern.permute.xlu2 %v3227_v5 }
 0xbd6   :  { %v1419_v17 = vsel %vm42_vm3, %v1387_v49, 0.0 }
 0xbd7   :  { %1335 = vadd.xlane.f32.xlu0 %v1334_v54  ;;  %v1247_v16 = vpop.permute.xlu2 %1246  ;;  %v1382_v54 = vmul.f32 %v2869_v12, %v3675_v44  ;;  %v1383_v44 = vmul.f32 %v3695_v45, %v3689_v37 }
 0xbd8   :  { %vm1295_vm15 = vcmp.ge.f32.partialorder %v1273_v13, %v1247_v16 }
 0xbd9   :  { %v1407_v1 = vsel %vm42_vm3, %v1383_v44, 0.0 }
 0xbdf   :  { %1344 = vadd.xlane.f32.xlu0 %v1343_v18  ;;  %v2878_v18 = vsel %vm1295_vm15, 1.0, %v3226_v50 }
 0xbe0   :  { %v1214_v47 = vpop.permute.xlu1 %1213  ;;  %v1391_v62 = vmul.f32 %v2878_v18, %v1273_v13 }
 0xbe1   :  { %vm1290_vm11 = vcmp.ge.f32.partialorder %v1270_v32, %v1214_v47  ;;  %v1361_v47 = vsel %vm42_vm3, %v2876_v57, 0.0 }
 0xbe2   :  { %v2873_v60 = vsel %vm1290_vm11, 1.0, %v3226_v50  ;;  %v1431_v51 = vsel %vm42_vm3, %v1391_v62, 0.0 }
 0xbe3   :  { %v3700_v61 = vmul.f32 %v2873_v60, %v1270_v32  ;;  %v1352_v53 = vsel %vm42_vm3, %v2873_v60, 0.0  ;;  %v1404_v60 = vsel %vm42_vm3, %v1382_v54, 0.0 }
 0xbe8   :  { %v1227_v63 = vpop.permute.xlu1 %1226 }
 0xbe9   :  { %vm1292_vm12 = vcmp.ge.f32.partialorder %v3719_v7, %v1227_v63 }
 0xbea   :  { %v2875_v32 = vsel %vm1292_vm12, 1.0, %v3226_v50 }
 0xbeb   :  { %v1358_v42 = vsel %vm42_vm3, %v2875_v32, 0.0  ;;  %v1388_v56 = vmul.f32 %v2875_v32, %v3719_v7  ;;  %v1401_v7 = vsel %vm42_vm3, %v3680_v55, 0.0  ;;  %v1454_v55 = vpop.permute.xlu0 %1453 }
 0xbed   :  { %v1422_v26 = vsel %vm42_vm3, %v1388_v56, 0.0 }
 0xbf0   :  { %v3704_v0 = vpop.permute.xlu1 %1239  ;;  %1338 = vadd.xlane.f32.xlu1 %v1337_v30 }
 0xbf3   :  { %v1474_v52 = vpop.permute.xlu0 %1473 }
 0xbf6   :  { %1332 = vadd.xlane.f32.xlu2 %v1331_v39  ;;  %v1260_v39 = vpop.permute.xlu2 %1259 }
 0xbf7   :  { %vm1297_vm12 = vcmp.ge.f32.partialorder %v3721_v10, %v1260_v39 }
 0xbf8   :  { %v1253_v28 = vpop.permute.xlu1 %1252  ;;  %1347 = vadd.xlane.f32.xlu1 %v1346_v38  ;;  %v1367_v38 = vsel %vm42_vm3, %v2878_v18, 0.0  ;;  %v2880_v45 = vsel %vm1297_vm12, 1.0, %v3226_v50 }
 0xbf9   :  { %vm1296_vm13 = vcmp.ge.f32.partialorder %v1273_v13, %v1253_v28  ;;  %v1373_v12 = vsel %vm42_vm3, %v2880_v45, 0.0 }
 0xbfa   :  { %v2879_v36 = vsel %vm1296_vm13, 1.0, %v3226_v50 }
 0xbfb   :  { %v1370_v59 = vsel %vm42_vm3, %v2879_v36, 0.0 }
 0xbfe   :  { %1341 = vadd.xlane.f32.xlu2 %v1340_v4 }
 0xc00   :  { %v1266_v6 = vpop.permute.xlu1 %1265  ;;  %1350 = vadd.xlane.f32.xlu1 %v1349_v14  ;;  %v1392_v14 = vmul.f32 %v2879_v36, %v1273_v13 }
 0xc01   :  { %vm1298_vm11 = vcmp.ge.f32.partialorder %v3721_v10, %v1266_v6 }
 0xc02   :  { %v2881_v15 = vsel %vm1298_vm11, 1.0, %v3226_v50  ;;  %vm1294_vm11 = vcmp.ge.f32.partialorder %v3741_v40, %v3704_v0  ;;  %v1384_v0 = vmul.f32 %v3709_v2, %v3689_v37  ;;  %v1380_v37 = vmul.f32 %v3686_v58, %v3643_v8 }
 0xc03   :  { %v1376_v22 = vsel %vm42_vm3, %v2881_v15, 0.0  ;;  %v3730_v24 = vmul.f32 %v2881_v15, %v3721_v10  ;;  %v2877_v63 = vsel %vm1294_vm11, 1.0, %v3226_v50  ;;  %v1434_v6 = vsel %vm42_vm3, %v1392_v14, 0.0  ;;  %v1448_v15 = vpop.permute.xlu2 %1447 }
 0xc04   :  { %1377 = vadd.xlane.f32.xlu0 %v1376_v22  ;;  %v1364_v30 = vsel %vm42_vm3, %v2877_v63, 0.0  ;;  %v1410_v28 = vsel %vm42_vm3, %v1384_v0, 0.0  ;;  %v1390_v2 = vmul.f32 %v2877_v63, %v3741_v40  ;;  %v1398_v3 = vsel %vm42_vm3, %v1380_v37, 0.0 }
 0xc05   :  { %v1393_v8 = vmul.f32 %v2880_v45, %v3721_v10  ;;  %v1413_v58 = vsel %vm42_vm3, %v3671_v34, 0.0  ;;  %v1440_v13 = vsel %vm42_vm3, %v3730_v24, 0.0 }
 0xc06   :  { %1353 = vadd.xlane.f32.xlu2 %v1352_v53  ;;  %v1428_v4 = vsel %vm42_vm3, %v1390_v2, 0.0  ;;  %v1416_v53 = vsel %vm42_vm3, %v3700_v61, 0.0 }
 0xc07   :  { %v1437_v22 = vsel %vm42_vm3, %v1393_v8, 0.0 }
 0xc08   :  { %1356 = vadd.xlane.f32.xlu1 %v1355_v29  ;;  %v1389_v29 = vmul.f32 %v2876_v57, %v3741_v40 }
 0xc0a   :  { %v1425_v11 = vsel %vm42_vm3, %v1389_v29, 0.0 }
 0xc0b   :  { %v1467_v25 = vpop.permute.xlu2 %1466 }
 0xc0c   :  { %1396 = vadd.xlane.f32.xlu0 %v1395_v35  ;;  %v1480_v35 = vpop.permute.xlu0 %1479 }
 0xc0e   :  { %1359 = vadd.xlane.f32.xlu2 %v1358_v42 }
 0xc10   :  { %1371 = vadd.xlane.f32.xlu1 %v1370_v59  ;;  %v3778_v20 = vpop.permute.xlu1 %1460 }
 0xc13   :  { %v1500_v10 = vpop.permute.xlu2 %1499 }
 0xc14   :  { %1423 = vadd.xlane.f32.xlu0 %v1422_v26  ;;  %v3800_v42 = vpop.permute.xlu0 %1486 }
 0xc16   :  { %1362 = vadd.xlane.f32.xlu2 %v1361_v47 }
 0xc18   :  { %1405 = vadd.xlane.f32.xlu1 %v1404_v60 }
 0xc1b   :  { %v3794_v32 = vpop.permute.xlu2 %1531 }
 0xc1c   :  { %1432 = vadd.xlane.f32.xlu0 %v1431_v51  ;;  %v1506_v59 = vpop.permute.xlu0 %1505 }
 0xc1e   :  { %1365 = vadd.xlane.f32.xlu2 %v1364_v30 }
 0xc20   :  { %1408 = vadd.xlane.f32.xlu1 %v1407_v1  ;;  %v3784_v27 = vpop.permute.xlu1 %1492 }
 0xc24   :  { %v3804_v26 = vpop.permute.xlu0 %1518 }
 0xc26   :  { %1368 = vadd.xlane.f32.xlu2 %v1367_v38 }
 0xc27   :  { %v3798_v61 = vpop.permute.xlu2 %1538 }
 0xc28   :  { %1411 = vadd.xlane.f32.xlu1 %v1410_v28 }
 0xc2c   :  { %v3808_v47 = vpop.permute.xlu0 %1544 }
 0xc2e   :  { %1374 = vadd.xlane.f32.xlu2 %v1373_v12 }
 0xc30   :  { %1420 = vadd.xlane.f32.xlu1 %v1419_v17  ;;  %v3791_v34 = vpop.permute.xlu1 %1512 }
 0xc36   :  { %1399 = vadd.xlane.f32.xlu2 %v1398_v3 }
 0xc38   :  { %1429 = vadd.xlane.f32.xlu1 %v1428_v4  ;;  %v3796_v36 = vpop.permute.xlu1 %1525 }
 0xc3e   :  { %1402 = vadd.xlane.f32.xlu2 %v1401_v7 }
 0xc40   :  { %1435 = vadd.xlane.f32.xlu1 %v1434_v6 }
 0xc46   :  { %1414 = vadd.xlane.f32.xlu2 %v1413_v58 }
 0xc48   :  { %1438 = vadd.xlane.f32.xlu1 %v1437_v22 }
 0xc4a   :  { %v1336_v63 = vpop.xlane.xlu0 %1335 }
 0xc4b   :  { %v1563_v6 = vmul.f32 %v1454_v55, %v1336_v63 }
 0xc4d   :  { %v1579_v22 = vadd.f32 1.0, %v1563_v6 }
 0xc4e   :  { %1417 = vadd.xlane.f32.xlu2 %v1416_v53 }
 0xc50   :  { %1441 = vadd.xlane.f32.xlu1 %v1440_v13 }
 0xc52   :  { %v1345_v30 = vpop.xlane.xlu0 %1344 }
 0xc53   :  { %v1566_v39 = vmul.f32 %v1474_v52, %v1345_v30 }
 0xc55   :  { %v1582_v28 = vadd.f32 1.0, %v1566_v39 }
 0xc56   :  { %1426 = vadd.xlane.f32.xlu2 %v1425_v11 }
 0xc63   :  { %v1339_v24 = vpop.xlane.xlu1 %1338 }
 0xc69   :  { %v1333_v16 = vpop.xlane.xlu2 %1332 }
 0xc6a   :  { %v1562_v14 = vmul.f32 %v1448_v15, %v1333_v16 }
 0xc6b   :  { %v1348_v56 = vpop.xlane.xlu1 %1347 }
 0xc6c   :  { %v1567_v38 = vmul.f32 %v1480_v35, %v1348_v56  ;;  %v1578_v58 = vadd.f32 1.0, %v1562_v14  ;;  %v1564_v35 = vmul.f32 %v3778_v20, %v1339_v24 }
 0xc6e   :  { %v1583_v49 = vadd.f32 1.0, %v1567_v38  ;;  %v1580_v55 = vadd.f32 1.0, %v1564_v35 }
 0xc71   :  { %v1342_v40 = vpop.xlane.xlu2 %1341 }
 0xc72   :  { %v1565_v13 = vmul.f32 %v1467_v25, %v1342_v40 }
 0xc73   :  { %v3802_v57 = vpop.xlane.xlu1 %1350 }
 0xc74   :  { %v1581_v16 = vadd.f32 1.0, %v1565_v13 }
 0xc77   :  { %v1378_v12 = vpop.xlane.xlu0 %1377 }
 0xc79   :  { %v3806_v54 = vpop.xlane.xlu2 %1353 }
 0xc7b   :  { %v1357_v18 = vpop.xlane.xlu1 %1356 }
 0xc7c   :  { %v1570_v56 = vmul.f32 %v1500_v10, %v1357_v18  ;;  %v1568_v18 = vmul.f32 %v3800_v42, %v3802_v57 }
 0xc7e   :  { %v1586_v39 = vadd.f32 1.0, %v1570_v56 }
 0xc7f   :  { %v1397_v8 = vpop.xlane.xlu0 %1396 }
 0xc80   :  { %vm1594_vm15 = vcmp.gt.f32.partialorder %v1578_v58, %v1397_v8 }
 0xc81   :  { %v1360_v60 = vpop.xlane.xlu2 %1359  ;;  %v2882_v29 = vsel %vm1594_vm15, 1.0, %v3226_v50 }
 0xc82   :  { %v1571_v63 = vmul.f32 %v1506_v59, %v1360_v60  ;;  %v1569_v60 = vmul.f32 %v3784_v27, %v3806_v54 }
 0xc83   :  { %v1372_v62 = vpop.xlane.xlu1 %1371 }
 0xc84   :  { %v1587_v38 = vadd.f32 1.0, %v1571_v63  ;;  %v1575_v20 = vmul.f32 %v3794_v32, %v1372_v62  ;;  %v1584_v62 = vadd.f32 1.0, %v1568_v18  ;;  %v1585_v14 = vadd.f32 1.0, %v1569_v60 }
 0xc89   :  { %v3810_v51 = vpop.xlane.xlu2 %1362 }
 0xc8a   :  { %v1572_v6 = vmul.f32 %v3791_v34, %v3810_v51 }
 0xc8b   :  { %v1406_v44 = vpop.xlane.xlu1 %1405 }
 0xc8c   :  { %vm1597_vm12 = vcmp.gt.f32.partialorder %v1581_v16, %v1406_v44  ;;  %v1588_v13 = vadd.f32 1.0, %v1572_v6 }
 0xc8d   :  { %v2885_v25 = vsel %vm1597_vm12, 1.0, %v3226_v50 }
 0xc91   :  { %v3812_v1 = vpop.xlane.xlu2 %1365 }
 0xc93   :  { %v1409_v0 = vpop.xlane.xlu1 %1408 }
 0xc94   :  { %vm1598_vm13 = vcmp.gt.f32.partialorder %v1582_v28, %v1409_v0 }
 0xc95   :  { %v2886_v37 = vsel %vm1598_vm13, 1.0, %v3226_v50 }
 0xc99   :  { %v1369_v45 = vpop.xlane.xlu2 %1368 }
 0xc9a   :  { %v1574_v10 = vmul.f32 %v3796_v36, %v1369_v45  ;;  %v1577_v36 = vmul.f32 %v3808_v47, %v1378_v12 }
 0xc9b   :  { %v1412_v17 = vpop.xlane.xlu1 %1411 }
 0xc9c   :  { %vm1599_vm14 = vcmp.gt.f32.partialorder %v1583_v49, %v1412_v17  ;;  %v1424_v49 = vpop.xlane.xlu0 %1423  ;;  %v1593_v54 = vadd.f32 1.0, %v1577_v36 }
 0xc9d   :  { %v2887_v2 = vsel %vm1599_vm14, 1.0, %v3226_v50  ;;  %vm1603_vm15 = vcmp.gt.f32.partialorder %v1587_v38, %v1424_v49 }
 0xc9e   :  { %v3039_v3 = vpack.i.bf16 %v2887_v2, %v2886_v37  ;;  %v2891_v44 = vsel %vm1603_vm15, 1.0, %v3226_v50  ;;  %v1591_v37 = vadd.f32 1.0, %v1575_v20  ;;  %v1590_v2 = vadd.f32 1.0, %v1574_v10 }
 0xca0   :  { %3040 = vperm.xlu0 %3038, %v3039_v3  }
 0xca1   :  { %v1375_v4 = vpop.xlane.xlu2 %1374 }
 0xca2   :  { %v1576_v3 = vmul.f32 %v3798_v61, %v1375_v4 }
 0xca3   :  { %v1421_v7 = vpop.xlane.xlu1 %1420 }
 0xca4   :  { %vm1602_vm14 = vcmp.gt.f32.partialorder %v1586_v39, %v1421_v7  ;;  %v1433_v45 = vpop.xlane.xlu0 %1432  ;;  %v1592_v42 = vadd.f32 1.0, %v1576_v3  ;;  %v1573_v7 = vmul.f32 %v3804_v26, %v3812_v1 }
 0xca5   :  { %v2890_v24 = vsel %vm1602_vm14, 1.0, %v3226_v50  ;;  %vm1606_vm12 = vcmp.gt.f32.partialorder %v1590_v2, %v1433_v45 }
 0xca6   :  { %v3049_v32 = vpack.i.bf16 %v2891_v44, %v2890_v24  ;;  %v2894_v61 = vsel %vm1606_vm12, 1.0, %v3226_v50  ;;  %v1589_v26 = vadd.f32 1.0, %v1573_v7 }
 0xca8   :  { %3071 = vset.pattern.permute.xlu0 %v3315_v21 }
 0xca9   :  { %v1400_v53 = vpop.xlane.xlu2 %1399 }
 0xcaa   :  { %vm1595_vm11 = vcmp.gt.f32.partialorder %v1579_v22, %v1400_v53 }
 0xcab   :  { %v2883_v52 = vsel %vm1595_vm11, 1.0, %v3226_v50  ;;  %v3819_v11 = vpop.xlane.xlu1 %1429 }
 0xcac   :  { %v3027_v15 = vpack.i.bf16 %v2883_v52, %v2882_v29  ;;  %vm1605_vm12 = vcmp.gt.f32.partialorder %v1589_v26, %v3819_v11 }
 0xcad   :  { %v2893_v52 = vsel %vm1605_vm12, 1.0, %v3226_v50 }
 0xcae   :  { %3028 = vperm.xlu2 %3026, %v3027_v15  }
 0xcb1   :  { %v1403_v30 = vpop.xlane.xlu2 %1402 }
 0xcb2   :  { %vm1596_vm13 = vcmp.gt.f32.partialorder %v1580_v55, %v1403_v30 }
 0xcb3   :  { %v2884_v40 = vsel %vm1596_vm13, 1.0, %v3226_v50  ;;  %v1436_v0 = vpop.xlane.xlu1 %1435 }
 0xcb4   :  { %v3033_v28 = vpack.i.bf16 %v2885_v25, %v2884_v40  ;;  %vm1607_vm11 = vcmp.gt.f32.partialorder %v1591_v37, %v1436_v0 }
 0xcb5   :  { %v2895_v27 = vsel %vm1607_vm11, 1.0, %v3226_v50 }
 0xcb6   :  { %3034 = vperm.xlu1 %3032, %v3033_v28   ;;  %v3059_v8 = vpack.i.bf16 %v2895_v27, %v2894_v61 }
 0xcb9   :  { %v1415_v59 = vpop.xlane.xlu2 %1414 }
 0xcba   :  { %vm1600_vm13 = vcmp.gt.f32.partialorder %v1584_v62, %v1415_v59 }
 0xcbb   :  { %v1439_v17 = vpop.xlane.xlu1 %1438  ;;  %v2888_v47 = vsel %vm1600_vm13, 1.0, %v3226_v50 }
 0xcbc   :  { %vm1608_vm14 = vcmp.gt.f32.partialorder %v1592_v42, %v1439_v17 }
 0xcbd   :  { %v2896_v22 = vsel %vm1608_vm14, 1.0, %v3226_v50 }
 0xcbe   :  { %3050 = vperm.xlu1 %3032, %v3049_v32  }
 0xcc1   :  { %v1418_v57 = vpop.xlane.xlu2 %1417 }
 0xcc2   :  { %vm1601_vm15 = vcmp.gt.f32.partialorder %v1585_v14, %v1418_v57 }
 0xcc3   :  { %v2889_v12 = vsel %vm1601_vm15, 1.0, %v3226_v50  ;;  %v1442_v4 = vpop.xlane.xlu1 %1441 }
 0xcc4   :  { %v3044_v58 = vpack.i.bf16 %v2889_v12, %v2888_v47  ;;  %vm1609_vm11 = vcmp.gt.f32.partialorder %v1593_v54, %v1442_v4 }
 0xcc5   :  { %v2897_v53 = vsel %vm1609_vm11, 1.0, %v3226_v50 }
 0xcc6   :  { %v3064_v1 = vpack.i.bf16 %v2897_v53, %v2896_v22  ;;  %3045 = vperm.xlu2 %3026, %v3044_v58   ;;  %3060 = vperm.xlu1 %3032, %v3059_v8  }
 0xcc9   :  { %v1427_v29 = vpop.xlane.xlu2 %1426 }
 0xcca   :  { %vm1604_vm13 = vcmp.gt.f32.partialorder %v1588_v13, %v1427_v29 }
 0xccb   :  { %v2892_v34 = vsel %vm1604_vm13, 1.0, %v3226_v50 }
 0xccc   :  { %v3054_v51 = vpack.i.bf16 %v2893_v52, %v2892_v34 }
 0xcce   :  { %3055 = vperm.xlu2 %3026, %v3054_v51   ;;  %3069 = vset.pattern.permute.xlu1 %v3315_v21 }
 0xcd6   :  { %3065 = vperm.xlu2 %3026, %v3064_v1  }
 0xcde   :  { %3070 = vset.pattern.permute.xlu2 %v3340_v43 }
 0xd08   :  { %v3029_v35 = vpop.permute.xlu2 %3028 }
 0xd09   :  { %v3031_v11 = vunpack.i.h.bf16 %v3029_v35  ;;  %v3030_v30 = vunpack.i.l.bf16 %v3029_v35 }
 0xd0b   :  { %v1707_v28 = vperm.slane %v3031_v11, %v3540_v9  ;;  %v1706_v49 = vperm.slane %v3030_v30, %v3537_v31  ;;  %v1775_v11 = vld [vmem:[%s4265_s1 + $0x70] sm:$0xff]  ;;  %v1774_v30 = vld [vmem:[%s4265_s1 + $0x68] sm:$0xff] }
 0xd0c   :  { %1795 = vmatpush.msrb.mxu1 %v1775_v11 }
 0xd0d   :  { %v1708_v37 = vsel %vm842_vm0, %v1707_v28, %v1706_v49 }
 0xd0e   :  { %1796 = vmatpush.msrb.mxu1 %v1774_v30 }
 0xd12   :  { %v3041_v25 = vpop.permute.xlu0 %3040 }
 0xd13   :  { %v3043_v39 = vunpack.i.h.bf16 %v3041_v25  ;;  %v3042_v38 = vunpack.i.l.bf16 %v3041_v25 }
 0xd15   :  { %v1713_v18 = vperm.slane %v3043_v39, %v3540_v9  ;;  %v1712_v60 = vperm.slane %v3042_v38, %v3537_v31 }
 0xd17   :  { %v1714_v27 = vsel %vm842_vm0, %v1713_v18, %v1712_v60 }
 0xd20   :  { %v3046_v15 = vpop.permute.xlu2 %3045 }
 0xd21   :  { %v3048_v20 = vunpack.i.h.bf16 %v3046_v15  ;;  %v3047_v10 = vunpack.i.l.bf16 %v3046_v15 }
 0xd23   :  { %v1716_v36 = vperm.slane %v3048_v20, %v3540_v9  ;;  %v1715_v45 = vperm.slane %v3047_v10, %v3537_v31 }
 0xd25   :  { %v1717_v47 = vsel %vm842_vm0, %v1716_v36, %v1715_v45 }
 0xd28   :  { %v3035_v16 = vpop.permute.xlu1 %3034  ;;  %v3056_v55 = vpop.permute.xlu2 %3055 }
 0xd29   :  { %v3037_v56 = vunpack.i.h.bf16 %v3035_v16  ;;  %v3036_v63 = vunpack.i.l.bf16 %v3035_v16  ;;  %v3058_v14 = vunpack.i.h.bf16 %v3056_v55  ;;  %v3057_v42 = vunpack.i.l.bf16 %v3056_v55 }
 0xd2b   :  { %v1710_v40 = vperm.slane %v3037_v56, %v3540_v9  ;;  %v1709_v0 = vperm.slane %v3036_v63, %v3537_v31  ;;  %v1722_v12 = vperm.slane %v3058_v14, %v3540_v9  ;;  %v1721_v4 = vperm.slane %v3057_v42, %v3537_v31 }
 0xd2d   :  { %v1711_v24 = vsel %vm842_vm0, %v1710_v40, %v1709_v0  ;;  %v1723_v52 = vsel %vm842_vm0, %v1722_v12, %v1721_v4 }
 0xd2e   :  { %v1730_v2 = vsel %vm865_vm1, %v1711_v24, %v1708_v37 }
 0xd2f   :  { %v1731_v57 = vsel %vm867_vm2, %v1714_v27, %v1730_v2 }
 0xd30   :  { %v3051_v59 = vpop.permute.xlu1 %3050  ;;  %v3066_v3 = vpop.permute.xlu2 %3065  ;;  %v1732_v22 = vsel %vm869_vm5, %v1717_v47, %v1731_v57 }
 0xd31   :  { %v3053_v44 = vunpack.i.h.bf16 %v3051_v59  ;;  %v3052_v17 = vunpack.i.l.bf16 %v3051_v59  ;;  %v3068_v54 = vunpack.i.h.bf16 %v3066_v3  ;;  %v3067_v7 = vunpack.i.l.bf16 %v3066_v3 }
 0xd33   :  { %v1719_v32 = vperm.slane %v3053_v44, %v3540_v9  ;;  %v1718_v62 = vperm.slane %v3052_v17, %v3537_v31  ;;  %v1728_v53 = vperm.slane %v3068_v54, %v3540_v9  ;;  %v1727_v26 = vperm.slane %v3067_v7, %v3537_v31 }
 0xd35   :  { %v1720_v61 = vsel %vm842_vm0, %v1719_v32, %v1718_v62  ;;  %v1729_v35 = vsel %vm842_vm0, %v1728_v53, %v1727_v26 }
 0xd36   :  { %v1733_v1 = vsel %vm871_vm7, %v1720_v61, %v1732_v22 }
 0xd37   :  { %v1734_v51 = vsel %vm873_vm8, %v1723_v52, %v1733_v1 }
 0xd38   :  { %v3061_v6 = vpop.permute.xlu1 %3060 }
 0xd39   :  { %v3063_v8 = vunpack.i.h.bf16 %v3061_v6  ;;  %v3062_v58 = vunpack.i.l.bf16 %v3061_v6 }
 0xd3b   :  { %v1725_v13 = vperm.slane %v3063_v8, %v3540_v9  ;;  %v1724_v29 = vperm.slane %v3062_v58, %v3537_v31 }
 0xd3d   :  { %v1726_v34 = vsel %vm842_vm0, %v1725_v13, %v1724_v29 }
 0xd3e   :  { %v1735_v15 = vsel %vm875_vm9, %v1726_v34, %v1734_v51  ;;  %v3143_v34 = vld [vmem:[%s4265_s1 + $0x12] ss:$0 sm:$0xff] }
 0xd3f   :  { %v1736_v16 = vsel %vm877_vm10, %v1729_v35, %v1735_v15  ;;  %v3144_v15 = vld [vmem:[%s4265_s1 + $0x13] ss:$0 sm:$0xff] }
 0xd40   :  { %v1738_v55 = vsel %vm42_vm3, %v1736_v16, 0.0  ;;  %v1741_v56 = vmul.f32 %v1736_v16, %v3639_v23 }
 0xd41   :  { %1739 = vadd.xlane.f32.xlu1 %v1738_v55  ;;  %v1860_v55 = vld [vmem:[%s4265_s1 + $0x80] sm:$0xff] }
 0xd42   :  { %v1742_v63 = vsel %vm42_vm3, %v1741_v56, 0.0  ;;  %v1859_v56 = vld [vmem:[%s4265_s1 + $0x78] sm:$0xff]  ;;  %1880 = vmatpush.msrb.mxu3 %v1860_v55 }
 0xd43   :  { %1743 = vadd.xlane.f32.xlu2 %v1742_v63 }
 0xd44   :  { %1881 = vmatpush.msrb.mxu3 %v1859_v56 }
 0xdb4   :  { %v1740_v25 = vpop.xlane.xlu1 %1739 }
 0xdb5   :  { %3187 = vrcp.f32 %v1740_v25  ;;  %v1757_v38 = vand.u32 2147483648, %v1740_v25  ;;  %v1755_v49 = vand.u32 2147483647, %v1740_v25  ;;  %vm1751_vm15 = vweird.f32 %v1740_v25 }
 0xdb6   :  { %v1744_v20 = vpop.xlane.xlu2 %1743 }
 0xdb7   :  { %v1758_v24 = vor.u32 1.1754944e-38, %v1757_v38  ;;  %v2898_v59 = vadd.f32 -1.0, %v1744_v20  ;;  %vm1756_vm12 = vcmp.eq.f32.partialorder %v1755_v49, 8.507059e+37 }
 0xdbb   :  { %v3188_v40 = vpop.eup %3187 }
 0xdbc   :  { %v1747_v0 = vmul.f32 %v3188_v40, %v1740_v25  ;;  %vm1752_vm14 = vweird.f32 %v3188_v40 }
 0xdbd   :  { %vm1753_vm11 = vmor %vm1751_vm15, %vm1752_vm14 }
 0xdbe   :  { %v1748_v39 = vsub.f32 1.0, %v1747_v0 }
 0xdc0   :  { %v1749_v28 = vmul.f32 %v3188_v40, %v1748_v39 }
 0xdc2   :  { %v1750_v10 = vadd.f32 %v3188_v40, %v1749_v28 }
 0xdc4   :  { %v1754_v18 = vsel %vm1753_vm11, %v3188_v40, %v1750_v10 }
 0xdc5   :  { %v1759_v60 = vsel %vm1756_vm12, %v1758_v24, %v1754_v18 }
 0xdc6   :  { %v1760_v44 = vmul.f32 %v2898_v59, %v1759_v60 }
 0xdc8   :  { %v1761_v17 = vsub.f32 %v3639_v23, %v1760_v44 }
 0xdca   :  { %v3890_v37 = vmax.f32 %v1761_v17, 0.0 }
 0xdcc   :  { %v1773_v2 = vmul.f32 %v3890_v37, %v3271_v19 }
 0xdce   :  { %2899 = vmatmul.msk.f32.vlgmr.msrb.gmra.mxu1 %vm42_vm3, %v1773_v2 }
 0xe4b   :  { %v1798_v3 = vpop.f32.mrf.mxu1 }
 0xe4c   :  { %v1801_v32 = vsel %vm66_vm4, %v1798_v3, 0.0 }
 0xe4d   :  { %v1802_v62 = vrot.slane %v1801_v32, 4 }
 0xe4f   :  { %v1803_v36 = vadd.f32 %v1802_v62, %v1801_v32 }
 0xe51   :  { %v1804_v45 = vrot.slane %v1803_v36, 2 }
 0xe53   :  { %v1805_v14 = vadd.f32 %v1804_v45, %v1803_v36 }
 0xe55   :  { %v1806_v42 = vrot.slane %v1805_v14, 1 }
 0xe57   :  { %v1807_v27 = vadd.f32 %v1806_v42, %v1805_v14 }
 0xe59   :  { %v1808_v57 = vmul.f32 %v1807_v27, %v3276_v33 }
 0xe5b   :  { %v1809_v54 = vsub.f32 %v1798_v3, %v1808_v57 }
 0xe5d   :  { %v1810_v23 = vmul.f32 %v1809_v54, %v1809_v54 }
 0xe5f   :  { %v1811_v7 = vsel %vm66_vm4, %v1810_v23, 0.0 }
 0xe60   :  { %v1812_v61 = vrot.slane %v1811_v7, 4 }
 0xe62   :  { %v1813_v47 = vadd.f32 %v1812_v61, %v1811_v7 }
 0xe64   :  { %v1814_v12 = vrot.slane %v1813_v47, 2 }
 0xe66   :  { %v1815_v4 = vadd.f32 %v1814_v12, %v1813_v47 }
 0xe68   :  { %v1816_v6 = vrot.slane %v1815_v4, 1 }
 0xe6a   :  { %v1817_v8 = vadd.f32 %v1816_v6, %v1815_v4 }
 0xe6c   :  { %v1818_v58 = vmul.f32 %v1817_v8, %v3276_v33 }
 0xe6e   :  { %v1819_v22 = vadd.f32 1e-05, %v1818_v58 }
 0xe70   :  { %3189 = vrsqrt.f32 %v1819_v22  ;;  %vm1826_vm14 = vweird.f32 %v1819_v22 }
 0xe76   :  { %v3190_v53 = vpop.eup %3189 }
 0xe77   :  { %v1821_v26 = vmul.f32 %v3190_v53, %v1819_v22  ;;  %vm1827_vm13 = vweird.f32 %v3190_v53 }
 0xe78   :  { %vm1828_vm15 = vmor %vm1826_vm14, %vm1827_vm13 }
 0xe79   :  { %v1822_v1 = vmul.f32 %v3190_v53, %v1821_v26 }
 0xe7b   :  { %v1823_v13 = vmul.f32 0.5, %v1822_v1 }
 0xe7d   :  { %v1824_v29 = vsub.f32 1.5, %v1823_v13  ;;  %v3145_v13 = vld [vmem:[%s4265_s1 + $0x14] ss:$0 sm:$0xff] }
 0xe7f   :  { %v1825_v52 = vmul.f32 %v3190_v53, %v1824_v29 }
 0xe81   :  { %v1829_v51 = vsel %vm1828_vm15, %v3190_v53, %v1825_v52 }
 0xe82   :  { %v1830_v35 = vmul.f32 %v1829_v51, %v1809_v54 }
 0xe84   :  { %v1832_v16 = vmul.f32 %v3143_v34, %v1830_v35  ;;  %v3146_v34 = vld [vmem:[%s4265_s1 + $0x15] ss:$0 sm:$0xff] }
 0xe86   :  { %v1834_v63 = vadd.f32 %v3144_v15, %v1832_v16 }
 0xe88   :  { %v2900_v11 = vmul.f32 -1.442695, %v1834_v63 }
 0xe8a   :  { %3191 = vpow2.f32 %v2900_v11 }
 0xe90   :  { %v3192_v30 = vpop.eup %3191 }
 0xe91   :  { %v1838_v25 = vadd.f32 1.0, %v3192_v30 }
 0xe93   :  { %3193 = vrcp.f32 %v1838_v25  ;;  %v1850_v38 = vand.u32 2147483648, %v1838_v25  ;;  %v1848_v49 = vand.u32 2147483647, %v1838_v25  ;;  %vm1844_vm12 = vweird.f32 %v1838_v25 }
 0xe95   :  { %v1851_v10 = vor.u32 1.1754944e-38, %v1850_v38  ;;  %vm1849_vm14 = vcmp.eq.f32.partialorder %v1848_v49, 8.507059e+37  ;;  %v1947_v49 = vld [vmem:[%s4265_s1 + $0xb0] sm:$0xff] }
 0xe96   :  { %1968 = vmatpush.msra.mxu2 %v1947_v49 }
 0xe99   :  { %v3194_v40 = vpop.eup %3193 }
 0xe9a   :  { %v1840_v0 = vmul.f32 %v3194_v40, %v1838_v25  ;;  %vm1845_vm11 = vweird.f32 %v3194_v40 }
 0xe9b   :  { %vm1846_vm13 = vmor %vm1844_vm12, %vm1845_vm11 }
 0xe9c   :  { %v1841_v39 = vsub.f32 1.0, %v1840_v0 }
 0xe9e   :  { %v1842_v28 = vmul.f32 %v3194_v40, %v1841_v39 }
 0xea0   :  { %v1843_v20 = vadd.f32 %v3194_v40, %v1842_v28 }
 0xea2   :  { %v1847_v24 = vsel %vm1846_vm13, %v3194_v40, %v1843_v20 }
 0xea3   :  { %v1852_v59 = vsel %vm1849_vm14, %v1851_v10, %v1847_v24 }
 0xea4   :  { %1855 = vrot.lane.b32.xlu0 %v1852_v59, %s3224_s30 }
 0xf16   :  { %v1856_v18 = vpop.permute.xlu0 %1855 }
 0xf17   :  { %v1858_v60 = vmul.f32 %v1856_v18, %v1834_v63 }
 0xf19   :  { %2901 = vmatmul.msk.f32.vlgmr.msrb.gmra.mxu3 %vm42_vm3, %v1858_v60 }
 0xf9c   :  { %v1883_v44 = vpop.f32.mrf.mxu3 }
 0xf9d   :  { %v1886_v17 = vsel %vm66_vm4, %v1883_v44, 0.0 }
 0xf9e   :  { %v1887_v2 = vrot.slane %v1886_v17, 4 }
 0xfa0   :  { %v1888_v3 = vadd.f32 %v1887_v2, %v1886_v17 }
 0xfa2   :  { %v1889_v32 = vrot.slane %v1888_v3, 2 }
 0xfa4   :  { %v1890_v62 = vadd.f32 %v1889_v32, %v1888_v3 }
 0xfa6   :  { %v1891_v36 = vrot.slane %v1890_v62, 1 }
 0xfa8   :  { %v1892_v45 = vadd.f32 %v1891_v36, %v1890_v62 }
 0xfaa   :  { %v1893_v14 = vmul.f32 %v1892_v45, %v3276_v33 }
 0xfac   :  { %v1894_v42 = vsub.f32 %v1883_v44, %v1893_v14 }
 0xfae   :  { %v1895_v27 = vmul.f32 %v1894_v42, %v1894_v42 }
 0xfb0   :  { %v1896_v57 = vsel %vm66_vm4, %v1895_v27, 0.0 }
 0xfb1   :  { %v1897_v54 = vrot.slane %v1896_v57, 4 }
 0xfb3   :  { %v1898_v23 = vadd.f32 %v1897_v54, %v1896_v57 }
 0xfb5   :  { %v1899_v7 = vrot.slane %v1898_v23, 2 }
 0xfb7   :  { %v1900_v61 = vadd.f32 %v1899_v7, %v1898_v23 }
 0xfb9   :  { %v1901_v47 = vrot.slane %v1900_v61, 1 }
 0xfbb   :  { %v1902_v12 = vadd.f32 %v1901_v47, %v1900_v61 }
 0xfbd   :  { %v1903_v4 = vmul.f32 %v1902_v12, %v3276_v33 }
 0xfbf   :  { %v1904_v6 = vadd.f32 1e-05, %v1903_v4 }
 0xfc1   :  { %3195 = vrsqrt.f32 %v1904_v6  ;;  %vm1911_vm11 = vweird.f32 %v1904_v6 }
 0xfc7   :  { %v3196_v8 = vpop.eup %3195 }
 0xfc8   :  { %v1906_v58 = vmul.f32 %v3196_v8, %v1904_v6  ;;  %vm1912_vm15 = vweird.f32 %v3196_v8 }
 0xfc9   :  { %vm1913_vm12 = vmor %vm1911_vm11, %vm1912_vm15 }
 0xfca   :  { %v1907_v22 = vmul.f32 %v3196_v8, %v1906_v58 }
 0xfcc   :  { %v1908_v53 = vmul.f32 0.5, %v1907_v22 }
 0xfce   :  { %v1909_v26 = vsub.f32 1.5, %v1908_v53 }
 0xfd0   :  { %v1910_v1 = vmul.f32 %v3196_v8, %v1909_v26 }
 0xfd2   :  { %v1914_v29 = vsel %vm1913_vm12, %v3196_v8, %v1910_v1  ;;  %v3147_v1 = vld [vmem:[%s4265_s1 + $0x18] ss:$0 sm:$0xff] }
 0xfd3   :  { %v1915_v52 = vmul.f32 %v1914_v29, %v1894_v42 }
 0xfd5   :  { %v1917_v51 = vmul.f32 %v3145_v13, %v1915_v52  ;;  %v1771_v52 = vsub.f32 1.3, %v3890_v37 }
 0xfd7   :  { %v1919_v35 = vadd.f32 %v3146_v34, %v1917_v51  ;;  %v3148_v34 = vld [vmem:[%s4265_s1 + $0x19] ss:$0 sm:$0xff] }
 0xfd9   :  { %v2902_v15 = vmul.f32 -1.442695, %v1919_v35 }
 0xfdb   :  { %3197 = vpow2.f32 %v2902_v15 }
 0xfe1   :  { %v3198_v16 = vpop.eup %3197 }
 0xfe2   :  { %v1923_v55 = vadd.f32 1.0, %v3198_v16 }
 0xfe4   :  { %3199 = vrcp.f32 %v1923_v55  ;;  %v1935_v30 = vand.u32 2147483648, %v1923_v55  ;;  %v1933_v40 = vand.u32 2147483647, %v1923_v55  ;;  %vm1929_vm14 = vweird.f32 %v1923_v55 }
 0xfe6   :  { %v1936_v39 = vor.u32 1.1754944e-38, %v1935_v30  ;;  %vm1934_vm11 = vcmp.eq.f32.partialorder %v1933_v40, 8.507059e+37 }
 0xfea   :  { %v3200_v56 = vpop.eup %3199 }
 0xfeb   :  { %v1925_v63 = vmul.f32 %v3200_v56, %v1923_v55  ;;  %vm1930_vm13 = vweird.f32 %v3200_v56 }
 0xfec   :  { %vm1931_vm15 = vmor %vm1929_vm14, %vm1930_vm13 }
 0xfed   :  { %v1926_v11 = vsub.f32 1.0, %v1925_v63 }
 0xfef   :  { %v1927_v25 = vmul.f32 %v3200_v56, %v1926_v11 }
 0xff1   :  { %v1928_v0 = vadd.f32 %v3200_v56, %v1927_v25 }
 0xff3   :  { %v1932_v38 = vsel %vm1931_vm15, %v3200_v56, %v1928_v0 }
 0xff4   :  { %v1937_v28 = vsel %vm1934_vm11, %v1936_v39, %v1932_v38 }
 0xff5   :  { %1940 = vrot.lane.b32.xlu0 %v1937_v28, %s3224_s30 }
0x1067   :  { %v1941_v20 = vpop.permute.xlu0 %1940 }
0x1068   :  { %v1943_v10 = vmul.f32 %v1941_v20, %v1919_v35  ;;  %v1772_v35 = vmul.f32 %v1771_v52, %v913_v48 }
0x106a   :  { %v1944_v24 = vadd.f32 %v1943_v10, %v1858_v60 }
0x106c   :  { %v3927_v59 = vmul.f32 0.70710677, %v1944_v24 }
0x106e   :  { %1949 = vrot.lane.b32.xlu0 %v3927_v59, %s3225_s12 }
0x10e0   :  { %v1950_v18 = vpop.permute.xlu0 %1949 }
0x10e1   :  { %2903 = vmatmul.msk.f32.vlgmr.msra.gmra.mxu2 %vm223_vm6, %v1950_v18 }
0x1164   :  { %v1970_v44 = vpop.f32.mrf.mxu2 }
0x1165   :  { %v1975_v17 = vsel %vm42_vm3, %v1970_v44, 0.0 }
0x1166   :  { %v1976_v2 = vrot.slane %v1975_v17, 4 }
0x1168   :  { %v1977_v3 = vadd.f32 %v1976_v2, %v1975_v17 }
0x116a   :  { %v1978_v32 = vrot.slane %v1977_v3, 2 }
0x116c   :  { %v1979_v62 = vadd.f32 %v1978_v32, %v1977_v3 }
0x116e   :  { %v1980_v36 = vrot.slane %v1979_v62, 1 }
0x1170   :  { %v1981_v45 = vadd.f32 %v1980_v36, %v1979_v62 }
0x1172   :  { %v1982_v14 = vmul.f32 %v1981_v45, %v3276_v33 }
0x1174   :  { %v1983_v60 = vsub.f32 %v1970_v44, %v1982_v14 }
0x1176   :  { %v1984_v42 = vmul.f32 %v1983_v60, %v1983_v60 }
0x1178   :  { %v1985_v27 = vsel %vm42_vm3, %v1984_v42, 0.0 }
0x1179   :  { %v1986_v57 = vrot.slane %v1985_v27, 4 }
0x117b   :  { %v1987_v54 = vadd.f32 %v1986_v57, %v1985_v27 }
0x117d   :  { %v1988_v23 = vrot.slane %v1987_v54, 2 }
0x117f   :  { %v1989_v7 = vadd.f32 %v1988_v23, %v1987_v54 }
0x1181   :  { %v1990_v61 = vrot.slane %v1989_v7, 1 }
0x1183   :  { %v1991_v47 = vadd.f32 %v1990_v61, %v1989_v7 }
0x1185   :  { %v1992_v12 = vmul.f32 %v1991_v47, %v3276_v33 }
0x1187   :  { %v1993_v4 = vadd.f32 1e-05, %v1992_v12 }
0x1189   :  { %3201 = vrsqrt.f32 %v1993_v4  ;;  %vm2000_vm13 = vweird.f32 %v1993_v4 }
0x118f   :  { %v3202_v6 = vpop.eup %3201 }
0x1190   :  { %v1995_v8 = vmul.f32 %v3202_v6, %v1993_v4  ;;  %vm2001_vm12 = vweird.f32 %v3202_v6 }
0x1191   :  { %vm2002_vm14 = vmor %vm2000_vm13, %vm2001_vm12 }
0x1192   :  { %v1996_v58 = vmul.f32 %v3202_v6, %v1995_v8 }
0x1194   :  { %v1997_v22 = vmul.f32 0.5, %v1996_v58 }
0x1196   :  { %v1998_v53 = vsub.f32 1.5, %v1997_v22 }
0x1198   :  { %v1999_v26 = vmul.f32 %v3202_v6, %v1998_v53 }
0x119a   :  { %v2003_v13 = vsel %vm2002_vm14, %v3202_v6, %v1999_v26 }
0x119b   :  { %v2004_v29 = vmul.f32 %v2003_v13, %v1983_v60 }
0x119d   :  { %v2006_v51 = vmul.f32 %v3147_v1, %v2004_v29 }
0x119f   :  { %v2008_v15 = vadd.f32 %v3148_v34, %v2006_v51 }
0x11a1   :  { %v2009_v16 = vmul.f32 %v2008_v15, %v1772_v35 }
0x11a3   :  { %v2010_v55 = vsel %vm42_vm3, %v2009_v16, -inf }
0x11a4   :  { %2011 = vmax.xlane.f32.xlu0 %v2010_v55 }
0x1217   :  { %v2012_v56 = vpop.xlane.xlu0 %2011 }
0x1218   :  { %v3946_v63 = vsub.f32 %v2009_v16, %v2012_v56 }
0x121a   :  { %v2061_v11 = vperm.slane %v3946_v63, 3  ;;  %v3950_v30 = vperm.slane %v3946_v63, 0  ;;  %v2035_v48 = vperm.slane %v3946_v63, 1  ;;  %v2048_v25 = vperm.slane %v3946_v63, 2 }
0x121b   :  { %v2074_v40 = vperm.slane %v3946_v63, 4  ;;  %v2087_v0 = vperm.slane %v3946_v63, 5  ;;  %v2100_v39 = vperm.slane %v3946_v63, 6  ;;  %v2113_v38 = vperm.slane %v3946_v63, 7 }
0x121c   :  { %2066 = vperm.xlu0 %3071, %v2061_v11   ;;  %2033 = vperm.xlu2 %3070, %v3950_v30   ;;  %v2016_v10 = vrot.slane %v3946_v63, 2  ;;  %v2017_v42 = vrot.slane %v3946_v63, 3  ;;  %v2018_v47 = vrot.slane %v3946_v63, 4  ;;  %v2020_v12 = vrot.slane %v3946_v63, 6 }
0x121d   :  { %2027 = vperm.xlu1 %3069, %v3950_v30   ;;  %v2019_v52 = vrot.slane %v3946_v63, 5  ;;  %v2021_v34 = vrot.slane %v3946_v63, 7 }
0x121e   :  { %v3984_v44 = vperm.slane %v2016_v10, 0  ;;  %v4011_v54 = vperm.slane %v2017_v42, 0  ;;  %v4027_v22 = vperm.slane %v2018_v47, 0  ;;  %v2132_v53 = vperm.slane %v2020_v12, 0 }
0x121f   :  { %v4046_v55 = vperm.slane %v2019_v52, 0  ;;  %v4048_v56 = vperm.slane %v2021_v34, 0 }
0x1224   :  { %3074 = vset.pattern.permute.xlu0 %v3340_v43  ;;  %2046 = vperm.xlu2 %3070, %v2035_v48  }
0x1225   :  { %2040 = vperm.xlu1 %3069, %v2035_v48  }
0x122c   :  { %2312 = vperm.xlu0 %3074, %v3950_v30   ;;  %2059 = vperm.xlu2 %3070, %v2048_v25  }
0x122d   :  { %2053 = vperm.xlu1 %3069, %v2048_v25  }
0x1234   :  { %3077 = vset.pattern.permute.xlu0 %v3315_v21  ;;  %3073 = vset.pattern.permute.xlu2 %v3315_v21 }
0x1235   :  { %3072 = vset.pattern.permute.xlu1 %v3340_v43 }
0x123c   :  { %2332 = vperm.xlu0 %3077, %v2048_v25   ;;  %2079 = vperm.xlu2 %3073, %v2074_v40  }
0x123d   :  { %2072 = vperm.xlu1 %3072, %v2061_v11  }
0x1244   :  { %3078 = vset.pattern.permute.xlu0 %v3340_v43  ;;  %2092 = vperm.xlu2 %3073, %v2087_v0  }
0x1245   :  { %2085 = vperm.xlu1 %3072, %v2074_v40  }
0x124c   :  { %2338 = vperm.xlu0 %3078, %v2048_v25   ;;  %2105 = vperm.xlu2 %3073, %v2100_v39  }
0x124d   :  { %2098 = vperm.xlu1 %3072, %v2087_v0  }
0x1254   :  { %3079 = vset.pattern.permute.xlu0 %v3315_v21  ;;  %2118 = vperm.xlu2 %3073, %v2113_v38  }
0x1255   :  { %2111 = vperm.xlu1 %3072, %v2100_v39  }
0x125c   :  { %2345 = vperm.xlu0 %3079, %v2061_v11   ;;  %2306 = vperm.xlu2 %3073, %v3950_v30  }
0x125d   :  { %2124 = vperm.xlu1 %3072, %v2113_v38  }
0x1264   :  { %3080 = vset.pattern.permute.xlu0 %v3340_v43  ;;  %3076 = vset.pattern.permute.xlu2 %v3340_v43 }
0x1265   :  { %3075 = vset.pattern.permute.xlu1 %v3315_v21 }
0x126c   :  { %2364 = vperm.xlu0 %3080, %v2074_v40   ;;  %2325 = vperm.xlu2 %3076, %v2035_v48  }
0x126d   :  { %2319 = vperm.xlu1 %3075, %v2035_v48  }
0x1274   :  { %2377 = vperm.xlu0 %3080, %v2087_v0   ;;  %2351 = vperm.xlu2 %3076, %v2061_v11  }
0x1275   :  { %2358 = vperm.xlu1 %3075, %v2074_v40  }
0x1276   :  { %v2034_v20 = vpop.permute.xlu2 %2033 }
0x1277   :  { %vm2143_vm15 = vcmp.ge.f32.partialorder %v3950_v30, %v2034_v20 }
0x1278   :  { %v3981_v24 = vsel %vm2143_vm15, 1.0, %v3226_v50 }
0x1279   :  { %v2193_v17 = vsel %vm42_vm3, %v3981_v24, 0.0 }
0x127c   :  { %3083 = vset.pattern.permute.xlu0 %v3315_v21  ;;  %3081 = vset.pattern.permute.xlu2 %v3315_v21 }
0x127d   :  { %2384 = vperm.xlu1 %3075, %v2100_v39  }
0x127e   :  { %v2047_v18 = vpop.permute.xlu2 %2046 }
0x1284   :  { %2397 = vperm.xlu0 %3083, %v2113_v38   ;;  %2371 = vperm.xlu2 %3081, %v2087_v0  }
0x1285   :  { %3082 = vset.pattern.permute.xlu1 %v3340_v43 }
0x1286   :  { %v2060_v62 = vpop.permute.xlu2 %2059 }
0x1287   :  { %vm2147_vm14 = vcmp.ge.f32.partialorder %v3984_v44, %v2060_v62 }
0x1288   :  { %v4007_v27 = vsel %vm2147_vm14, 1.0, %v3226_v50 }
0x1289   :  { %v2205_v23 = vsel %vm42_vm3, %v4007_v27, 0.0 }
0x128c   :  { %3084 = vset.pattern.permute.xlu2 %v3340_v43  ;;  %3097 = vset.pattern.permute.xlu0 %v3227_v5  ;;  %v2015_v43 = vrot.slane %v3946_v63, 1 }
0x128d   :  { %2390 = vperm.xlu1 %3082, %v2100_v39  }
0x128e   :  { %v3988_v2 = vperm.slane %v2015_v43, 0  ;;  %v2067_v4 = vpop.permute.xlu0 %2066 }
0x128f   :  { %v2028_v28 = vpop.permute.xlu1 %2027 }
0x1290   :  { %vm2142_vm13 = vcmp.ge.f32.partialorder %v3950_v30, %v2028_v28  ;;  %vm2145_vm15 = vcmp.ge.f32.partialorder %v3988_v2, %v2047_v18 }
0x1291   :  { %v2904_v60 = vsel %vm2142_vm13, 1.0, %v3226_v50  ;;  %v4017_v61 = vsel %vm2145_vm15, 1.0, %v3226_v50 }
0x1292   :  { %v2190_v57 = vsel %vm42_vm3, %v2904_v60, 0.0  ;;  %v2199_v58 = vsel %vm42_vm3, %v4017_v61, 0.0 }
0x1294   :  { %2403 = vperm.xlu2 %3084, %v2113_v38  }
0x1295   :  { %3091 = vset.pattern.permute.xlu1 %v3227_v5 }
0x1296   :  { %v2080_v6 = vpop.permute.xlu2 %2079 }
0x1297   :  { %v2041_v49 = vpop.permute.xlu1 %2040  ;;  %vm2150_vm15 = vcmp.ge.f32.partialorder %v4027_v22, %v2080_v6  ;;  %v2239_v6 = vmul.f32 %v3981_v24, %v3950_v30 }
0x1298   :  { %vm2144_vm12 = vcmp.ge.f32.partialorder %v3988_v2, %v2041_v49  ;;  %v2912_v25 = vsel %vm2150_vm15, 1.0, %v3226_v50  ;;  %v2238_v49 = vmul.f32 %v2904_v60, %v3950_v30 }
0x1299   :  { %v3996_v32 = vsel %vm2144_vm12, 1.0, %v3226_v50  ;;  %vm2148_vm12 = vcmp.ge.f32.partialorder %v4011_v54, %v2067_v4  ;;  %v2214_v28 = vsel %vm42_vm3, %v2912_v25, 0.0  ;;  %v2243_v4 = vmul.f32 %v4007_v27, %v3984_v44 }
0x129a   :  { %v2196_v45 = vsel %vm42_vm3, %v3996_v32, 0.0  ;;  %v4033_v13 = vsel %vm2148_vm12, 1.0, %v3226_v50  ;;  %v2240_v62 = vmul.f32 %v3996_v32, %v3988_v2 }
0x129b   :  { %v2208_v15 = vsel %vm42_vm3, %v4033_v13, 0.0  ;;  %v2244_v24 = vmul.f32 %v4033_v13, %v4011_v54 }
0x129c   :  { %3085 = vset.pattern.permute.xlu2 %v3227_v5 }
0x129e   :  { %v2093_v16 = vpop.permute.xlu2 %2092 }
0x129f   :  { %v2054_v21 = vpop.permute.xlu1 %2053 }
0x12a0   :  { %vm2146_vm11 = vcmp.ge.f32.partialorder %v3984_v44, %v2054_v21  ;;  %v2254_v21 = vsel %vm42_vm3, %v2238_v49, 0.0 }
0x12a1   :  { %v3993_v3 = vsel %vm2146_vm11, 1.0, %v3226_v50 }
0x12a2   :  { %v2202_v36 = vsel %vm42_vm3, %v3993_v3, 0.0 }
0x12a6   :  { %v2106_v10 = vpop.permute.xlu2 %2105 }
0x12ae   :  { %2194 = vadd.xlane.f32.xlu0 %v2193_v17  ;;  %v2246_v17 = vmul.f32 %v2912_v25, %v4027_v22  ;;  %v2119_v60 = vpop.permute.xlu2 %2118 }
0x12af   :  { %v2073_v5 = vpop.permute.xlu1 %2072  ;;  %vm2156_vm15 = vcmp.ge.f32.partialorder %v4048_v56, %v2119_v60 }
0x12b0   :  { %vm2149_vm11 = vcmp.ge.f32.partialorder %v4011_v54, %v2073_v5 }
0x12b1   :  { %v4022_v8 = vsel %vm2149_vm11, 1.0, %v3226_v50  ;;  %vm2152_vm11 = vcmp.ge.f32.partialorder %v4046_v55, %v2093_v16 }
0x12b2   :  { %v2211_v26 = vsel %vm42_vm3, %v4022_v8, 0.0  ;;  %v2914_v38 = vsel %vm2152_vm11, 1.0, %v3226_v50 }
0x12b3   :  { %v2220_v20 = vsel %vm42_vm3, %v2914_v38, 0.0  ;;  %v2248_v30 = vmul.f32 %v2914_v38, %v4046_v55 }
0x12b5   :  { %v2284_v27 = vsel %vm42_vm3, %v2248_v30, 0.0 }
0x12b6   :  { %2203 = vadd.xlane.f32.xlu0 %v2202_v36  ;;  %v2278_v36 = vsel %vm42_vm3, %v2246_v17, 0.0 }
0x12b7   :  { %v2086_v14 = vpop.permute.xlu1 %2085  ;;  %2197 = vadd.xlane.f32.xlu1 %v2196_v45 }
0x12b8   :  { %vm2151_vm13 = vcmp.ge.f32.partialorder %v4027_v22, %v2086_v14  ;;  %v2260_v14 = vsel %vm42_vm3, %v2240_v62, 0.0 }
0x12b9   :  { %v4041_v35 = vsel %vm2151_vm13, 1.0, %v3226_v50 }
0x12ba   :  { %v2217_v11 = vsel %vm42_vm3, %v4041_v35, 0.0 }
0x12bd   :  { %2191 = vadd.xlane.f32.xlu2 %v2190_v57 }
0x12bf   :  { %v2099_v7 = vpop.permute.xlu1 %2098  ;;  %2206 = vadd.xlane.f32.xlu1 %v2205_v23  ;;  %v2242_v23 = vmul.f32 %v3993_v3, %v3984_v44  ;;  %v2269_v3 = vsel %vm42_vm3, %v2243_v4, 0.0 }
0x12c0   :  { %vm2153_vm13 = vcmp.ge.f32.partialorder %v4046_v55, %v2099_v7  ;;  %v2918_v7 = vsel %vm2156_vm15, 1.0, %v3226_v50 }
0x12c1   :  { %v2915_v43 = vsel %vm2153_vm13, 1.0, %v3226_v50  ;;  %v2266_v47 = vsel %vm42_vm3, %v2242_v23, 0.0  ;;  %v2232_v12 = vsel %vm42_vm3, %v2918_v7, 0.0 }
0x12c2   :  { %v2223_v5 = vsel %vm42_vm3, %v2915_v43, 0.0 }
0x12c5   :  { %2200 = vadd.xlane.f32.xlu2 %v2199_v58  ;;  %v2257_v58 = vsel %vm42_vm3, %v2239_v6, 0.0 }
0x12c7   :  { %v2112_v1 = vpop.permute.xlu1 %2111  ;;  %2212 = vadd.xlane.f32.xlu1 %v2211_v26  ;;  %v2241_v26 = vmul.f32 %v4017_v61, %v3988_v2  ;;  %v2247_v2 = vmul.f32 %v4041_v35, %v4027_v22 }
0x12c8   :  { %vm2155_vm14 = vcmp.ge.f32.partialorder %v2132_v53, %v2112_v1 }
0x12c9   :  { %v2917_v29 = vsel %vm2155_vm14, 1.0, %v3226_v50  ;;  %vm2154_vm14 = vcmp.ge.f32.partialorder %v2132_v53, %v2106_v10  ;;  %v2263_v44 = vsel %vm42_vm3, %v2241_v26, 0.0  ;;  %v2281_v34 = vsel %vm42_vm3, %v2247_v2, 0.0 }
0x12ca   :  { %v4038_v51 = vmul.f32 %v2917_v29, %v2132_v53  ;;  %v2229_v18 = vsel %vm42_vm3, %v2917_v29, 0.0  ;;  %v2916_v45 = vsel %vm2154_vm14, 1.0, %v3226_v50  ;;  %v2307_v29 = vpop.permute.xlu2 %2306 }
0x12cb   :  { %v2250_v42 = vmul.f32 %v2916_v45, %v2132_v53  ;;  %v2226_v57 = vsel %vm42_vm3, %v2916_v45, 0.0  ;;  %v2245_v53 = vmul.f32 %v4022_v8, %v4011_v54  ;;  %v2272_v8 = vsel %vm42_vm3, %v2244_v24, 0.0 }
0x12cc   :  { %v2249_v54 = vmul.f32 %v2915_v43, %v4046_v55  ;;  %v2293_v22 = vsel %vm42_vm3, %v4038_v51, 0.0 }
0x12cd   :  { %2209 = vadd.xlane.f32.xlu2 %v2208_v15  ;;  %v2290_v32 = vsel %vm42_vm3, %v2250_v42, 0.0  ;;  %v2275_v1 = vsel %vm42_vm3, %v2245_v53, 0.0  ;;  %v2313_v15 = vpop.permute.xlu0 %2312 }
0x12ce   :  { %v2287_v13 = vsel %vm42_vm3, %v2249_v54, 0.0 }
0x12cf   :  { %v2125_v48 = vpop.permute.xlu1 %2124  ;;  %2218 = vadd.xlane.f32.xlu1 %v2217_v11 }
0x12d0   :  { %vm2157_vm12 = vcmp.ge.f32.partialorder %v4048_v56, %v2125_v48 }
0x12d1   :  { %v2919_v40 = vsel %vm2157_vm12, 1.0, %v3226_v50 }
0x12d2   :  { %v4057_v0 = vmul.f32 %v2919_v40, %v4048_v56  ;;  %v2235_v39 = vsel %vm42_vm3, %v2919_v40, 0.0  ;;  %v4104_v61 = vpop.permute.xlu2 %2325 }
0x12d3   :  { %2236 = vadd.xlane.f32.xlu0 %v2235_v39  ;;  %v2252_v39 = vmul.f32 %v2918_v7, %v4048_v56 }
0x12d5   :  { %2215 = vadd.xlane.f32.xlu2 %v2214_v28  ;;  %v2333_v11 = vpop.permute.xlu0 %2332  ;;  %v2296_v55 = vsel %vm42_vm3, %v2252_v39, 0.0 }
0x12d7   :  { %2221 = vadd.xlane.f32.xlu1 %v2220_v20 }
0x12da   :  { %v4111_v48 = vpop.permute.xlu2 %2351 }
0x12db   :  { %2255 = vadd.xlane.f32.xlu0 %v2254_v21  ;;  %v2299_v21 = vsel %vm42_vm3, %v4057_v0, 0.0 }
0x12dd   :  { %2230 = vadd.xlane.f32.xlu2 %v2229_v18  ;;  %v2339_v35 = vpop.permute.xlu0 %2338 }
0x12df   :  { %2224 = vadd.xlane.f32.xlu1 %v2223_v5  ;;  %v4099_v52 = vpop.permute.xlu1 %2319 }
0x12e2   :  { %v4117_v40 = vpop.permute.xlu2 %2371 }
0x12e3   :  { %2279 = vadd.xlane.f32.xlu0 %v2278_v36 }
0x12e5   :  { %2261 = vadd.xlane.f32.xlu2 %v2260_v14  ;;  %v2346_v28 = vpop.permute.xlu0 %2345 }
0x12e7   :  { %2227 = vadd.xlane.f32.xlu1 %v2226_v57  ;;  %v4107_v16 = vpop.permute.xlu1 %2358 }
0x12eb   :  { %2291 = vadd.xlane.f32.xlu0 %v2290_v32 }
0x12ed   :  { %2267 = vadd.xlane.f32.xlu2 %v2266_v47  ;;  %v4127_v51 = vpop.permute.xlu0 %2364 }
0x12ee   :  { %v4123_v49 = vpop.permute.xlu2 %2403 }
0x12ef   :  { %2233 = vadd.xlane.f32.xlu1 %v2232_v12  ;;  %v4113_v25 = vpop.permute.xlu1 %2384 }
0x12f5   :  { %2270 = vadd.xlane.f32.xlu2 %v2269_v3  ;;  %v4129_v17 = vpop.permute.xlu0 %2377 }
0x12f7   :  { %2258 = vadd.xlane.f32.xlu1 %v2257_v58 }
0x12fd   :  { %2276 = vadd.xlane.f32.xlu2 %v2275_v1  ;;  %v4131_v62 = vpop.permute.xlu0 %2397 }
0x12ff   :  { %2264 = vadd.xlane.f32.xlu1 %v2263_v44  ;;  %v4120_v38 = vpop.permute.xlu1 %2390 }
0x1305   :  { %2285 = vadd.xlane.f32.xlu2 %v2284_v27 }
0x1307   :  { %2273 = vadd.xlane.f32.xlu1 %v2272_v8 }
0x130f   :  { %2282 = vadd.xlane.f32.xlu1 %v2281_v34 }
0x1317   :  { %2288 = vadd.xlane.f32.xlu1 %v2287_v13 }
0x131f   :  { %2294 = vadd.xlane.f32.xlu1 %v2293_v22 }
0x1321   :  { %v2195_v14 = vpop.xlane.xlu0 %2194 }
0x1322   :  { %v2422_v58 = vmul.f32 %v2313_v15, %v2195_v14 }
0x1324   :  { %v2438_v24 = vadd.f32 1.0, %v2422_v58 }
0x1327   :  { %2297 = vadd.xlane.f32.xlu1 %v2296_v55 }
0x1329   :  { %v2204_v0 = vpop.xlane.xlu0 %2203 }
0x132a   :  { %v2198_v20 = vpop.xlane.xlu1 %2197  ;;  %v2425_v12 = vmul.f32 %v2333_v11, %v2204_v0 }
0x132b   :  { %v2423_v34 = vmul.f32 %v4099_v52, %v2198_v20 }
0x132c   :  { %v2441_v53 = vadd.f32 1.0, %v2425_v12 }
0x132d   :  { %v2439_v22 = vadd.f32 1.0, %v2423_v34 }
0x132f   :  { %2300 = vadd.xlane.f32.xlu1 %v2299_v21 }
0x1330   :  { %v2192_v10 = vpop.xlane.xlu2 %2191 }
0x1331   :  { %v2421_v6 = vmul.f32 %v2307_v29, %v2192_v10 }
0x1332   :  { %v2207_v43 = vpop.xlane.xlu1 %2206 }
0x1333   :  { %v2426_v3 = vmul.f32 %v2339_v35, %v2207_v43  ;;  %v2437_v1 = vadd.f32 1.0, %v2421_v6 }
0x1335   :  { %v2442_v44 = vadd.f32 1.0, %v2426_v3 }
0x1338   :  { %v2201_v18 = vpop.xlane.xlu2 %2200 }
0x1339   :  { %v2424_v13 = vmul.f32 %v4104_v61, %v2201_v18 }
0x133a   :  { %v2213_v56 = vpop.xlane.xlu1 %2212 }
0x133b   :  { %v2440_v35 = vadd.f32 1.0, %v2424_v13  ;;  %v2428_v55 = vmul.f32 %v4111_v48, %v2213_v56 }
0x133d   :  { %v2444_v14 = vadd.f32 1.0, %v2428_v55 }
0x1340   :  { %v2210_v5 = vpop.xlane.xlu2 %2209 }
0x1341   :  { %v2427_v21 = vmul.f32 %v2346_v28, %v2210_v5 }
0x1342   :  { %v2219_v36 = vpop.xlane.xlu1 %2218 }
0x1343   :  { %v2443_v61 = vadd.f32 1.0, %v2427_v21  ;;  %v2430_v56 = vmul.f32 %v4127_v51, %v2219_v36 }
0x1345   :  { %v2446_v28 = vadd.f32 1.0, %v2430_v56 }
0x1346   :  { %v4139_v7 = vpop.xlane.xlu0 %2236 }
0x1348   :  { %v2216_v45 = vpop.xlane.xlu2 %2215 }
0x1349   :  { %v2429_v0 = vmul.f32 %v4107_v16, %v2216_v45 }
0x134a   :  { %v2222_v60 = vpop.xlane.xlu1 %2221 }
0x134b   :  { %v2445_v6 = vadd.f32 1.0, %v2429_v0  ;;  %v2431_v3 = vmul.f32 %v4117_v40, %v2222_v60 }
0x134d   :  { %v2447_v51 = vadd.f32 1.0, %v2431_v3 }
0x134e   :  { %v2256_v26 = vpop.xlane.xlu0 %2255 }
0x134f   :  { %vm2453_vm12 = vcmp.gt.f32.partialorder %v2437_v1, %v2256_v26 }
0x1350   :  { %v4133_v42 = vpop.xlane.xlu2 %2230  ;;  %v2920_v29 = vsel %vm2453_vm12, 1.0, %v3226_v50 }
0x1352   :  { %v4135_v57 = vpop.xlane.xlu1 %2224 }
0x1353   :  { %v2432_v45 = vmul.f32 %v4129_v17, %v4135_v57 }
0x1355   :  { %v2448_v36 = vadd.f32 1.0, %v2432_v45  ;;  %v1763_v45 = vadd.f32 1e-15, %v3890_v37 }
0x1356   :  { %v2280_v12 = vpop.xlane.xlu0 %2279 }
0x1357   :  { %3203 = vlog2.f32 %v1763_v45 }
0x1358   :  { %v2262_v23 = vpop.xlane.xlu2 %2261 }
0x1359   :  { %vm2455_vm15 = vcmp.gt.f32.partialorder %v2439_v22, %v2262_v23 }
0x135a   :  { %v4137_v32 = vpop.xlane.xlu1 %2227  ;;  %v2922_v52 = vsel %vm2455_vm15, 1.0, %v3226_v50 }
0x135b   :  { %v2433_v1 = vmul.f32 %v4113_v25, %v4137_v32 }
0x135e   :  { %v2292_v57 = vpop.xlane.xlu0 %2291 }
0x1360   :  { %v2268_v47 = vpop.xlane.xlu2 %2267 }
0x1361   :  { %vm2457_vm11 = vcmp.gt.f32.partialorder %v2441_v53, %v2268_v47 }
0x1362   :  { %v4141_v4 = vpop.xlane.xlu1 %2233  ;;  %v2924_v27 = vsel %vm2457_vm11, 1.0, %v3226_v50 }
0x1368   :  { %v2271_v30 = vpop.xlane.xlu2 %2270 }
0x1369   :  { %vm2458_vm13 = vcmp.gt.f32.partialorder %v2442_v44, %v2271_v30  ;;  %v2434_v30 = vmul.f32 %v4120_v38, %v4133_v42  ;;  %v2436_v38 = vmul.f32 %v4123_v49, %v4139_v7 }
0x136a   :  { %v2925_v8 = vsel %vm2458_vm13, 1.0, %v3226_v50  ;;  %v2259_v2 = vpop.xlane.xlu1 %2258 }
0x136b   :  { %v3098_v54 = vpack.i.bf16 %v2925_v8, %v2924_v27  ;;  %vm2454_vm14 = vcmp.gt.f32.partialorder %v2438_v24, %v2259_v2  ;;  %v2449_v24 = vadd.f32 1.0, %v2433_v1  ;;  %v2450_v27 = vadd.f32 1.0, %v2434_v30 }
0x136c   :  { %v2921_v15 = vsel %vm2454_vm14, 1.0, %v3226_v50  ;;  %vm2461_vm14 = vcmp.gt.f32.partialorder %v2445_v6, %v2280_v12 }
0x136d   :  { %v3086_v11 = vpack.i.bf16 %v2921_v15, %v2920_v29  ;;  %3099 = vperm.xlu0 %3097, %v3098_v54   ;;  %v2928_v58 = vsel %vm2461_vm14, 1.0, %v3226_v50  ;;  %v2435_v54 = vmul.f32 %v4131_v62, %v4141_v4  ;;  %v2452_v29 = vadd.f32 1.0, %v2436_v38 }
0x136f   :  { %3087 = vperm.xlu2 %3085, %v3086_v11   ;;  %v2451_v42 = vadd.f32 1.0, %v2435_v54 }
0x1370   :  { %v2277_v43 = vpop.xlane.xlu2 %2276 }
0x1371   :  { %vm2460_vm12 = vcmp.gt.f32.partialorder %v2444_v14, %v2277_v43 }
0x1372   :  { %v2265_v39 = vpop.xlane.xlu1 %2264  ;;  %v2927_v23 = vsel %vm2460_vm12, 1.0, %v3226_v50 }
0x1373   :  { %vm2456_vm11 = vcmp.gt.f32.partialorder %v2440_v35, %v2265_v39 }
0x1374   :  { %v2923_v20 = vsel %vm2456_vm11, 1.0, %v3226_v50 }
0x1375   :  { %v3092_v10 = vpack.i.bf16 %v2923_v20, %v2922_v52 }
0x1377   :  { %3093 = vperm.xlu1 %3091, %v3092_v10  }
0x1378   :  { %v2286_v26 = vpop.xlane.xlu2 %2285 }
0x1379   :  { %vm2463_vm11 = vcmp.gt.f32.partialorder %v2447_v51, %v2286_v26 }
0x137a   :  { %v2274_v18 = vpop.xlane.xlu1 %2273  ;;  %v2930_v40 = vsel %vm2463_vm11, 1.0, %v3226_v50 }
0x137b   :  { %vm2459_vm13 = vcmp.gt.f32.partialorder %v2443_v61, %v2274_v18 }
0x137c   :  { %v2926_v48 = vsel %vm2459_vm13, 1.0, %v3226_v50  ;;  %vm2465_vm13 = vcmp.gt.f32.partialorder %v2449_v24, %v2292_v57 }
0x137d   :  { %v3103_v47 = vpack.i.bf16 %v2927_v23, %v2926_v48  ;;  %v2932_v25 = vsel %vm2465_vm13, 1.0, %v3226_v50 }
0x137f   :  { %3104 = vperm.xlu2 %3085, %v3103_v47  }
0x1382   :  { %v2283_v5 = vpop.xlane.xlu1 %2282 }
0x1383   :  { %vm2462_vm15 = vcmp.gt.f32.partialorder %v2446_v28, %v2283_v5 }
0x1384   :  { %v2929_v16 = vsel %vm2462_vm15, 1.0, %v3226_v50 }
0x1385   :  { %v3108_v53 = vpack.i.bf16 %v2929_v16, %v2928_v58 }
0x1387   :  { %3109 = vperm.xlu1 %3091, %v3108_v53  }
0x138a   :  { %v2289_v44 = vpop.xlane.xlu1 %2288 }
0x138b   :  { %vm2464_vm12 = vcmp.gt.f32.partialorder %v2448_v36, %v2289_v44 }
0x138c   :  { %v2931_v60 = vsel %vm2464_vm12, 1.0, %v3226_v50 }
0x138d   :  { %v3113_v17 = vpack.i.bf16 %v2931_v60, %v2930_v40 }
0x138f   :  { %3114 = vperm.xlu2 %3085, %v3113_v17  }
0x1392   :  { %v2295_v8 = vpop.xlane.xlu1 %2294 }
0x1393   :  { %vm2466_vm14 = vcmp.gt.f32.partialorder %v2450_v27, %v2295_v8 }
0x1394   :  { %v2933_v32 = vsel %vm2466_vm14, 1.0, %v3226_v50 }
0x1395   :  { %v3118_v2 = vpack.i.bf16 %v2933_v32, %v2932_v25 }
0x1397   :  { %3119 = vperm.xlu1 %3091, %v3118_v2  }
0x139a   :  { %v2298_v34 = vpop.xlane.xlu1 %2297 }
0x139b   :  { %vm2467_vm15 = vcmp.gt.f32.partialorder %v2451_v42, %v2298_v34 }
0x139c   :  { %v2934_v13 = vsel %vm2467_vm15, 1.0, %v3226_v50 }
0x13a2   :  { %v2301_v15 = vpop.xlane.xlu1 %2300 }
0x13a3   :  { %vm2468_vm11 = vcmp.gt.f32.partialorder %v2452_v29, %v2301_v15  ;;  %v3204_v15 = vpop.eup %3203 }
0x13a4   :  { %v2935_v11 = vsel %vm2468_vm11, 1.0, %v3226_v50 }
0x13a5   :  { %v3123_v22 = vpack.i.bf16 %v2935_v11, %v2934_v13 }
0x13a7   :  { %3124 = vperm.xlu2 %3085, %v3123_v22  }
0x13c9   :  { %v3088_v35 = vpop.permute.xlu2 %3087 }
0x13ca   :  { %v3090_v62 = vunpack.i.h.bf16 %v3088_v35  ;;  %v3089_v4 = vunpack.i.l.bf16 %v3088_v35 }
0x13cc   :  { %v2566_v50 = vperm.slane %v3090_v62, %v3540_v9  ;;  %v2565_v18 = vperm.slane %v3089_v4, %v3537_v31  ;;  %v1946_v4 = vmax.f32 %v3927_v59, 0.0 }
0x13ce   :  { %v2567_v28 = vsel %vm842_vm0, %v2566_v50, %v2565_v18 }
0x13d9   :  { %v3105_v39 = vpop.permute.xlu2 %3104 }
0x13da   :  { %v3107_v48 = vunpack.i.h.bf16 %v3105_v39  ;;  %v3106_v56 = vunpack.i.l.bf16 %v3105_v39 }
0x13dc   :  { %v2575_v53 = vperm.slane %v3107_v48, %v3540_v9  ;;  %v2574_v26 = vperm.slane %v3106_v56, %v3537_v31 }
0x13de   :  { %v2576_v24 = vsel %vm842_vm0, %v2575_v53, %v2574_v26 }
0x13df   :  { %v3100_v21 = vpop.permute.xlu0 %3099 }
0x13e0   :  { %v3102_v14 = vunpack.i.h.bf16 %v3100_v21  ;;  %v3101_v61 = vunpack.i.l.bf16 %v3100_v21  ;;  %v2632_v21 = vld [vmem:[%s4265_s1 + $0x98] sm:$0xff] }
0x13e1   :  { %2652 = vmatpush.msra.mxu0 %v2632_v21 }
0x13e2   :  { %v2572_v12 = vperm.slane %v3102_v14, %v3540_v9  ;;  %v2571_v6 = vperm.slane %v3101_v61, %v3537_v31 }
0x13e4   :  { %v2573_v1 = vsel %vm842_vm0, %v2572_v12, %v2571_v6 }
0x13e9   :  { %v3094_v55 = vpop.permute.xlu1 %3093  ;;  %v3115_v49 = vpop.permute.xlu2 %3114 }
0x13ea   :  { %v3096_v52 = vunpack.i.h.bf16 %v3094_v55  ;;  %v3095_v20 = vunpack.i.l.bf16 %v3094_v55  ;;  %v3117_v51 = vunpack.i.h.bf16 %v3115_v49  ;;  %v3116_v36 = vunpack.i.l.bf16 %v3115_v49  ;;  %v2631_v49 = vld [vmem:[%s4265_s1 + $0x90] sm:$0xff] }
0x13eb   :  { %2653 = vmatpush.msra.mxu0 %v2631_v49 }
0x13ec   :  { %v2569_v7 = vperm.slane %v3096_v52, %v3540_v9  ;;  %v2568_v10 = vperm.slane %v3095_v20, %v3537_v31  ;;  %v2581_v17 = vperm.slane %v3117_v51, %v3540_v9  ;;  %v2580_v57 = vperm.slane %v3116_v36, %v3537_v31 }
0x13ee   :  { %v2570_v47 = vsel %vm842_vm0, %v2569_v7, %v2568_v10  ;;  %v2582_v29 = vsel %vm842_vm0, %v2581_v17, %v2580_v57 }
0x13ef   :  { %v2589_v5 = vsel %vm865_vm1, %v2570_v47, %v2567_v28 }
0x13f0   :  { %v2590_v44 = vsel %vm867_vm2, %v2573_v1, %v2589_v5 }
0x13f1   :  { %v2591_v32 = vsel %vm869_vm5, %v2576_v24, %v2590_v44 }
0x13f9   :  { %v3110_v43 = vpop.permute.xlu1 %3109 }
0x13fa   :  { %v3112_v0 = vunpack.i.h.bf16 %v3110_v43  ;;  %v3111_v23 = vunpack.i.l.bf16 %v3110_v43 }
0x13fc   :  { %v2578_v3 = vperm.slane %v3112_v0, %v3540_v9  ;;  %v2577_v58 = vperm.slane %v3111_v23, %v3537_v31 }
0x13fe   :  { %v2579_v30 = vsel %vm842_vm0, %v2578_v3, %v2577_v58 }
0x13ff   :  { %v2592_v54 = vsel %vm871_vm7, %v2579_v30, %v2591_v32 }
0x1400   :  { %v2593_v11 = vsel %vm873_vm8, %v2582_v29, %v2592_v54 }
0x1401   :  { %v3125_v16 = vpop.permute.xlu2 %3124 }
0x1402   :  { %v3127_v40 = vunpack.i.h.bf16 %v3125_v16  ;;  %v3126_v60 = vunpack.i.l.bf16 %v3125_v16 }
0x1404   :  { %v2587_v2 = vperm.slane %v3127_v40, %v3540_v9  ;;  %v2586_v34 = vperm.slane %v3126_v60, %v3537_v31 }
0x1406   :  { %v2588_v22 = vsel %vm842_vm0, %v2587_v2, %v2586_v34 }
0x1409   :  { %v3120_v27 = vpop.permute.xlu1 %3119 }
0x140a   :  { %v3122_v8 = vunpack.i.h.bf16 %v3120_v27  ;;  %v3121_v25 = vunpack.i.l.bf16 %v3120_v27 }
0x140c   :  { %v2584_v38 = vperm.slane %v3122_v8, %v3540_v9  ;;  %v2583_v42 = vperm.slane %v3121_v25, %v3537_v31  ;;  %v1765_v9 = vmul.f32 0.6931472, %v3204_v15 }
0x140e   :  { %v2585_v13 = vsel %vm842_vm0, %v2584_v38, %v2583_v42  ;;  %v1766_v20 = vmul.f32 %v1765_v9, %v3890_v37  ;;  %v2716_v9 = vld [vmem:[%s4265_s1 + $0xa0] sm:$0xff] }
0x140f   :  { %v2594_v35 = vsel %vm875_vm9, %v2585_v13, %v2593_v11  ;;  %v3149_v11 = vld [vmem:[%s4265_s1 + $0x1a] ss:$0 sm:$0xff] }
0x1410   :  { %v2595_v39 = vsel %vm877_vm10, %v2588_v22, %v2594_v35  ;;  %v1767_v62 = vsel %vm42_vm3, %v1766_v20, 0.0 }
0x1411   :  { %v2597_v55 = vsel %vm42_vm3, %v2595_v39, 0.0  ;;  %v2600_v52 = vmul.f32 %v2595_v39, %v3946_v63  ;;  %v3150_v39 = vld [vmem:[%s4265_s1 + $0x1b] ss:$0 sm:$0xff] }
0x1412   :  { %2598 = vadd.xlane.f32.xlu1 %v2597_v55 }
0x1413   :  { %v2601_v31 = vsel %vm42_vm3, %v2600_v52, 0.0  ;;  %v2717_v52 = vld [vmem:[%s4265_s1 + $0xa8] sm:$0xff] }
0x1414   :  { %2602 = vadd.xlane.f32.xlu2 %v2601_v31  ;;  %2737 = vmatpush.msra.mxu1 %v2717_v52 }
0x1416   :  { %2738 = vmatpush.msra.mxu1 %v2716_v9  ;;  %v905_v9 = vadd.f32 1e-15, %v3583_v41 }
0x141a   :  { %1768 = vadd.xlane.f32.xlu1 %v1767_v62 }
0x1433   :  { %2805 = vrot.lane.b32.xlu1 %v1946_v4, %s3228_s5 }
0x1485   :  { %v2599_v7 = vpop.xlane.xlu1 %2598 }
0x1486   :  { %3205 = vrcp.f32 %v2599_v7  ;;  %v2616_v14 = vand.u32 2147483648, %v2599_v7  ;;  %v2614_v59 = vand.u32 2147483647, %v2599_v7  ;;  %vm2610_vm1 = vweird.f32 %v2599_v7 }
0x1487   :  { %v2603_v50 = vpop.xlane.xlu2 %2602 }
0x1488   :  { %v2617_v0 = vor.u32 1.1754944e-38, %v2616_v14  ;;  %v2936_v23 = vadd.f32 -1.0, %v2603_v50  ;;  %vm2615_vm5 = vcmp.eq.f32.partialorder %v2614_v59, 8.507059e+37 }
0x148c   :  { %v3206_v37 = vpop.eup %3205 }
0x148d   :  { %v2606_v10 = vmul.f32 %v3206_v37, %v2599_v7  ;;  %vm2611_vm0 = vweird.f32 %v3206_v37 }
0x148e   :  { %vm2612_vm2 = vmor %vm2610_vm1, %vm2611_vm0 }
0x148f   :  { %v2607_v43 = vsub.f32 1.0, %v2606_v10 }
0x1491   :  { %v2608_v61 = vmul.f32 %v3206_v37, %v2607_v43 }
0x1493   :  { %v2609_v18 = vadd.f32 %v3206_v37, %v2608_v61 }
0x1495   :  { %v2613_v48 = vsel %vm2612_vm2, %v3206_v37, %v2609_v18 }
0x1496   :  { %v2618_v56 = vsel %vm2615_vm5, %v2617_v0, %v2613_v48 }
0x1497   :  { %v2619_v47 = vmul.f32 %v2936_v23, %v2618_v56 }
0x1499   :  { %v2620_v12 = vsub.f32 %v3946_v63, %v2619_v47 }
0x149b   :  { %v2621_v6 = vmax.f32 %v2620_v12, 0.0 }
0x149d   :  { %v2630_v28 = vmul.f32 %v2621_v6, %v3271_v19  ;;  %v2622_v5 = vadd.f32 1e-15, %v2621_v6 }
0x149f   :  { %2937 = vmatmul.msk.f32.vlgmr.msra.gmra.mxu0 %vm42_vm3, %v2630_v28  ;;  %3207 = vlog2.f32 %v2622_v5 }
0x14a5   :  { %v3208_v3 = vpop.eup %3207 }
0x14a6   :  { %v2624_v58 = vmul.f32 0.6931472, %v3208_v3 }
0x14a8   :  { %v2625_v16 = vmul.f32 %v2624_v58, %v2621_v6 }
0x14aa   :  { %v2626_v45 = vsel %vm42_vm3, %v2625_v16, 0.0 }
0x14ab   :  { %2627 = vadd.xlane.f32.xlu2 %v2626_v45 }
0x151c   :  { %v2655_v53 = vpop.f32.mrf.mxu0 }
0x151d   :  { %v2658_v26 = vsel %vm66_vm4, %v2655_v53, 0.0 }
0x151e   :  { %v2659_v51 = vrot.slane %v2658_v26, 4 }
0x1520   :  { %v2660_v36 = vadd.f32 %v2659_v51, %v2658_v26 }
0x1522   :  { %v2661_v1 = vrot.slane %v2660_v36, 2 }
0x1524   :  { %v2662_v63 = vadd.f32 %v2661_v1, %v2660_v36 }
0x1526   :  { %v2663_v44 = vrot.slane %v2662_v63, 1 }
0x1528   :  { %v2664_v40 = vadd.f32 %v2663_v44, %v2662_v63 }
0x152a   :  { %v2665_v19 = vmul.f32 %v2664_v40, %v3276_v33 }
0x152c   :  { %v2666_v60 = vsub.f32 %v2655_v53, %v2665_v19 }
0x152e   :  { %v2667_v30 = vmul.f32 %v2666_v60, %v2666_v60 }
0x1530   :  { %v2668_v24 = vsel %vm66_vm4, %v2667_v30, 0.0 }
0x1531   :  { %v2669_v17 = vrot.slane %v2668_v24, 4 }
0x1533   :  { %v2670_v57 = vadd.f32 %v2669_v17, %v2668_v24 }
0x1535   :  { %v2671_v27 = vrot.slane %v2670_v57, 2 }
0x1537   :  { %v2672_v8 = vadd.f32 %v2671_v27, %v2670_v57  ;;  %v3151_v27 = vld [vmem:[%s4265_s1 + $0x1c] ss:$0 sm:$0xff] }
0x1539   :  { %v2673_v25 = vrot.slane %v2672_v8, 1 }
0x153b   :  { %v2674_v32 = vadd.f32 %v2673_v25, %v2672_v8 }
0x153d   :  { %v2675_v2 = vmul.f32 %v2674_v32, %v3276_v33 }
0x153f   :  { %v2676_v34 = vadd.f32 1e-05, %v2675_v2 }
0x1541   :  { %3209 = vrsqrt.f32 %v2676_v34  ;;  %vm2683_vm8 = vweird.f32 %v2676_v34 }
0x1547   :  { %v3210_v54 = vpop.eup %3209 }
0x1548   :  { %v2678_v38 = vmul.f32 %v3210_v54, %v2676_v34  ;;  %vm2684_vm7 = vweird.f32 %v3210_v54 }
0x1549   :  { %vm2685_vm9 = vmor %vm2683_vm8, %vm2684_vm7  ;;  %vm2814_vm7 = vcmask 195584   ;;  %vm2816_vm8 = vcmask 203776  }
0x154a   :  { %v2679_v42 = vmul.f32 %v3210_v54, %v2678_v38 }
0x154c   :  { %v2680_v29 = vmul.f32 0.5, %v2679_v42 }
0x154e   :  { %v2681_v15 = vsub.f32 1.5, %v2680_v29 }
0x1550   :  { %v2682_v13 = vmul.f32 %v3210_v54, %v2681_v15 }
0x1552   :  { %v2686_v22 = vsel %vm2685_vm9, %v3210_v54, %v2682_v13 }
0x1553   :  { %v2687_v35 = vmul.f32 %v2686_v22, %v2666_v60 }
0x1555   :  { %v2689_v55 = vmul.f32 %v3149_v11, %v2687_v35 }
0x1557   :  { %v2691_v31 = vadd.f32 %v3150_v39, %v2689_v55 }
0x1559   :  { %v2938_v20 = vmul.f32 -1.442695, %v2691_v31 }
0x155b   :  { %3211 = vpow2.f32 %v2938_v20 }
0x1561   :  { %v3212_v62 = vpop.eup %3211 }
0x1562   :  { %v2695_v4 = vadd.f32 1.0, %v3212_v62 }
0x1564   :  { %3213 = vrcp.f32 %v2695_v4  ;;  %v2707_v37 = vand.u32 2147483648, %v2695_v4  ;;  %v2705_v43 = vand.u32 2147483647, %v2695_v4  ;;  %vm2701_vm12 = vweird.f32 %v2695_v4 }
0x1566   :  { %v2708_v61 = vor.u32 1.1754944e-38, %v2707_v37  ;;  %vm2706_vm14 = vcmp.eq.f32.partialorder %v2705_v43, 8.507059e+37  ;;  %v1769_v43 = vpop.xlane.xlu1 %1768 }
0x156a   :  { %v3214_v21 = vpop.eup %3213 }
0x156b   :  { %v2697_v49 = vmul.f32 %v3214_v21, %v2695_v4  ;;  %vm2702_vm10 = vweird.f32 %v3214_v21 }
0x156c   :  { %vm2703_vm13 = vmor %vm2701_vm12, %vm2702_vm10 }
0x156d   :  { %v2698_v7 = vsub.f32 1.0, %v2697_v49 }
0x156f   :  { %v2699_v10 = vmul.f32 %v3214_v21, %v2698_v7 }
0x1571   :  { %v2700_v14 = vadd.f32 %v3214_v21, %v2699_v10 }
0x1573   :  { %v2704_v59 = vsel %vm2703_vm13, %v3214_v21, %v2700_v14  ;;  %v2628_v14 = vpop.xlane.xlu2 %2627 }
0x1574   :  { %v2709_v50 = vsel %vm2706_vm14, %v2708_v61, %v2704_v59 }
0x1575   :  { %2712 = vrot.lane.b32.xlu0 %v2709_v50, %s3224_s30  ;;  %v2806_v50 = vpop.permute.xlu1 %2805 }
0x15e7   :  { %v2713_v18 = vpop.permute.xlu0 %2712 }
0x15e8   :  { %v4240_v0 = vmul.f32 %v2713_v18, %v2691_v31  ;;  %v1087_v18 = vmax.f32 %v3620_v46, 0.0 }
0x15ea   :  { %2939 = vmatmul.msk.f32.vlgmr.msra.gmra.mxu1 %vm42_vm3, %v4240_v0 }
0x1667   :  { %v2740_v23 = vpop.f32.mrf.mxu1 }
0x1668   :  { %v2743_v48 = vsel %vm66_vm4, %v2740_v23, 0.0 }
0x1669   :  { %v2744_v56 = vrot.slane %v2743_v48, 4 }
0x166b   :  { %v2745_v47 = vadd.f32 %v2744_v56, %v2743_v48 }
0x166d   :  { %v2746_v12 = vrot.slane %v2745_v47, 2 }
0x166f   :  { %v2747_v6 = vadd.f32 %v2746_v12, %v2745_v47 }
0x1671   :  { %v2748_v28 = vrot.slane %v2747_v6, 1 }
0x1673   :  { %v2749_v5 = vadd.f32 %v2748_v28, %v2747_v6 }
0x1675   :  { %v2750_v3 = vmul.f32 %v2749_v5, %v3276_v33 }
0x1677   :  { %v2751_v58 = vsub.f32 %v2740_v23, %v2750_v3 }
0x1679   :  { %v2752_v16 = vmul.f32 %v2751_v58, %v2751_v58 }
0x167b   :  { %v2753_v45 = vsel %vm66_vm4, %v2752_v16, 0.0 }
0x167c   :  { %v2754_v53 = vrot.slane %v2753_v45, 4 }
0x167e   :  { %v2755_v26 = vadd.f32 %v2754_v53, %v2753_v45 }
0x1680   :  { %v2756_v51 = vrot.slane %v2755_v26, 2 }
0x1682   :  { %v2757_v36 = vadd.f32 %v2756_v51, %v2755_v26 }
0x1684   :  { %v2758_v1 = vrot.slane %v2757_v36, 1 }
0x1686   :  { %v2759_v63 = vadd.f32 %v2758_v1, %v2757_v36 }
0x1688   :  { %v2760_v44 = vmul.f32 %v2759_v63, %v3276_v33  ;;  %v3152_v33 = vld [vmem:[%s4265_s1 + $0x1d] ss:$0 sm:$0xff]  ;;  %s3229_s1 = smov 16  }
0x168a   :  { %v2761_v40 = vadd.f32 1e-05, %v2760_v44 }
0x168c   :  { %3215 = vrsqrt.f32 %v2761_v40  ;;  %vm2768_vm11 = vweird.f32 %v2761_v40 }
0x1692   :  { %v3216_v19 = vpop.eup %3215 }
0x1693   :  { %v2763_v60 = vmul.f32 %v3216_v19, %v2761_v40  ;;  %vm2769_vm15 = vweird.f32 %v3216_v19 }
0x1694   :  { %vm2770_vm0 = vmor %vm2768_vm11, %vm2769_vm15 }
0x1695   :  { %v2764_v30 = vmul.f32 %v3216_v19, %v2763_v60 }
0x1697   :  { %v2765_v24 = vmul.f32 0.5, %v2764_v30 }
0x1699   :  { %v2766_v17 = vsub.f32 1.5, %v2765_v24 }
0x169b   :  { %v2767_v57 = vmul.f32 %v3216_v19, %v2766_v17 }
0x169d   :  { %v2771_v8 = vsel %vm2770_vm0, %v3216_v19, %v2767_v57 }
0x169e   :  { %v2772_v25 = vmul.f32 %v2771_v8, %v2751_v58 }
0x16a0   :  { %v2774_v32 = vmul.f32 %v3151_v27, %v2772_v25 }
0x16a2   :  { %v2776_v2 = vadd.f32 %v3152_v33, %v2774_v32 }
0x16a4   :  { %v2940_v34 = vmul.f32 -1.442695, %v2776_v2 }
0x16a6   :  { %3217 = vpow2.f32 %v2940_v34 }
0x16ac   :  { %v3218_v54 = vpop.eup %3217 }
0x16ad   :  { %v2780_v38 = vadd.f32 1.0, %v3218_v54 }
0x16af   :  { %3219 = vrcp.f32 %v2780_v38  ;;  %v2792_v13 = vand.u32 2147483648, %v2780_v38  ;;  %v2790_v22 = vand.u32 2147483647, %v2780_v38  ;;  %vm2786_vm1 = vweird.f32 %v2780_v38 }
0x16b0   :  { %3221 = vlog2.f32 %v905_v9 }
0x16b1   :  { %v2793_v39 = vor.u32 1.1754944e-38, %v2792_v13  ;;  %vm2791_vm5 = vcmp.eq.f32.partialorder %v2790_v22, 8.507059e+37 }
0x16b5   :  { %v3220_v42 = vpop.eup %3219 }
0x16b6   :  { %v2782_v29 = vmul.f32 %v3220_v42, %v2780_v38  ;;  %vm2787_vm4 = vweird.f32 %v3220_v42  ;;  %v3222_v31 = vpop.eup %3221 }
0x16b7   :  { %vm2788_vm2 = vmor %vm2786_vm1, %vm2787_vm4  ;;  %v907_v20 = vmul.f32 0.6931472, %v3222_v31 }
0x16b8   :  { %v2783_v15 = vsub.f32 1.0, %v2782_v29 }
0x16b9   :  { %v908_v62 = vmul.f32 %v907_v20, %v3583_v41  ;;  %v2812_v41 = vsel %vm223_vm6, %v1087_v18, %v2806_v50 }
0x16ba   :  { %v2784_v11 = vmul.f32 %v3220_v42, %v2783_v15 }
0x16bb   :  { %v909_v4 = vsel %vm42_vm3, %v908_v62, 0.0 }
0x16bc   :  { %v2785_v35 = vadd.f32 %v3220_v42, %v2784_v11 }
0x16be   :  { %v2789_v55 = vsel %vm2788_vm2, %v3220_v42, %v2785_v35 }
0x16bf   :  { %v2794_v52 = vsel %vm2791_vm5, %v2793_v39, %v2789_v55 }
0x16c0   :  { %2797 = vrot.lane.b32.xlu0 %v2794_v52, %s3224_s30 }
0x16ea   :  { %910 = vadd.xlane.f32.xlu0 %v909_v4 }
0x1732   :  { %v2798_v21 = vpop.permute.xlu0 %2797 }
0x1733   :  { %v2800_v49 = vmul.f32 %v2798_v21, %v2776_v2 }
0x1735   :  { %v2801_v7 = vadd.f32 %v2800_v49, %v4240_v0 }
0x1737   :  { %v2802_v37 = vmul.f32 0.70710677, %v2801_v7 }
0x1739   :  { %v2803_v10 = vmax.f32 %v2802_v37, 0.0 }
0x173b   :  { %2809 = vrot.lane.b32.xlu2 %v2803_v10, %s3229_s1 }
0x175d   :  { %v911_v61 = vpop.xlane.xlu0 %910 }
0x175e   :  { %v1770_v59 = vadd.f32 %v1769_v43, %v911_v61 }
0x1760   :  { %v2629_v23 = vadd.f32 %v2628_v14, %v1770_v59 }
0x1795   :  { %v2810_v48 = vpop.permute.xlu2 %2809 }
0x1796   :  { %v2813_v56 = vsel %vm42_vm3, %v2812_v41, %v2810_v48 }
0x1797   :  { %v2815_v0 = vsel %vm2814_vm7, %v2813_v56, %v2629_v23 }
0x1798   :  { %v2817_v47 = vsel %vm2816_vm8, %v2815_v0, 0.0 }
0x1799   :  { %2818 = vst [vmem:[%s4268_s3] sm:$0xff] %v2817_v47 }

</bundles_post_ra>
